<compile_context>
chip_gen: v7x
topology: tpu7x:2x2x1
jax: 0.10.0
libtpu: 0.0.40
codegen_flags: <defaults>
</compile_context>

<pallas_src>
import jax
import jax.numpy as jnp
from jax.experimental import pallas as pl
from jax.experimental.pallas import tpu as pltpu

# ----------------------------- config --------------------------------------
B = 8            # batch
H = 128          # hidden_size
E = 128          # emb_size (== hidden_size, as in the PyTorch module defaults)
L = 4            # hidden_layers
WIDEN = 2
HW = H * WIDEN
LN_EPS = 1e-5
N_TIME = 1000    # nn.Embedding(1000, emb_size)


# --------------------------- shared math ------------------------------------
def _silu_and_grad(y):
    """One sigmoid -> both silu(y) and d silu(y)/dy."""
    s = 1.0 / (1.0 + jnp.exp(-y))
    return y * s, s * (1.0 + y * (1.0 - s))


def _silu(y):
    return y / (1.0 + jnp.exp(-y))


# ----------------------------- kernel ---------------------------------------
def energy_grad_kernel(
    x_ref, temb_ref,
    wi_ref, bi_ref,
    lng_ref, lnb_ref,
    w1_ref, b1_ref,          # w1 = [ffw ; ffew]  (L, H+E, HW) bf16 ; b1 = ffb+ffeb
    ffiw_ref, ffib_ref,      # (L, HW, HW) bf16 ; (L, 1, HW) f32
    ffow_ref, ffob_ref,      # (L, HW, H)  bf16 ; (L, 1, H)  f32
    wo_ref, bo_ref,          # (H, 2) f32 ; (1, 2) f32
    grad_ref,
):
    f32 = jnp.float32
    bf16 = jnp.bfloat16

    x = x_ref[...]              # (B, 2) f32
    temb = temb_ref[...]        # (B, E) f32
    wi = wi_ref[...]            # (2, E) f32
    bi = bi_ref[...]            # (1, E) f32

    # ---- input_mlp: K=2 contraction done as broadcasts (stays off the MXU) ----
    v = x[:, 0:1] * wi[0:1, :] + x[:, 1:2] * wi[1:2, :] + bi       # (B, E) f32
    # tangents for dx = e0 and dx = e1 (hoisted broadcasts)
    t1 = jnp.broadcast_to(wi[0:1, :], (B, E))
    t2 = jnp.broadcast_to(wi[1:2, :], (B, E))

    # temb block of the fused [primal; tangent1; tangent2] LHS (tangents carry
    # zero temb).  Hoisted: identical for every layer.
    temb3 = jnp.concatenate(
        [temb.astype(bf16), jnp.zeros((2 * B, E), bf16)], axis=0)  # (3B, E)

    # ---- residual Blocks (statically unrolled) ----
    for l in range(L):
        g = lng_ref[l]          # (1, H)   f32
        be = lnb_ref[l]         # (1, H)   f32
        w1 = w1_ref[l]          # (H+E, HW) bf16
        b1 = b1_ref[l]          # (1, HW)  f32
        wi2 = ffiw_ref[l]       # (HW, HW) bf16
        bi2 = ffib_ref[l]       # (1, HW)  f32
        wo2 = ffow_ref[l]       # (HW, H)  bf16
        bo2 = ffob_ref[l]       # (1, H)   f32

        # LayerNorm + SiLU, primal (f32)
        mu = jnp.mean(v, axis=-1, keepdims=True)
        vc = v - mu
        var = jnp.mean(vc * vc, axis=-1, keepdims=True)
        inv_sigma = jax.lax.rsqrt(var + LN_EPS)
        yhat = vc * inv_sigma
        y = yhat * g + be
        a, sgy = _silu_and_grad(y)

        # LayerNorm + SiLU JVP (shares primal statistics; f32)
        def ln_act_jvp(tv):
            dmu = jnp.mean(tv, axis=-1, keepdims=True)
            half_dvar = jnp.mean(vc * tv, axis=-1, keepdims=True)     # 0.5*dvar
            dyhat = (tv - dmu) * inv_sigma - yhat * (half_dvar * inv_sigma * inv_sigma)
            return sgy * (dyhat * g)

        da1 = ln_act_jvp(t1)
        da2 = ln_act_jvp(t2)

        # fused matmul 1: [a|temb ; da1|0 ; da2|0] @ [ffw ; ffew]  (one MXU push)
        lhs1 = jnp.concatenate(
            [jnp.concatenate([a, da1, da2], axis=0).astype(bf16), temb3],
            axis=-1)                                                  # (3B, H+E)
        u1 = jnp.dot(lhs1, w1, preferred_element_type=f32)            # (3B, HW)
        h1 = u1[:B] + b1
        h2, sgh1 = _silu_and_grad(h1)
        dh2_1 = sgh1 * u1[B:2 * B]
        dh2_2 = sgh1 * u1[2 * B:]

        # fused matmul 2: ff_in
        lhs2 = jnp.concatenate([h2, dh2_1, dh2_2], axis=0).astype(bf16)
        u2 = jnp.dot(lhs2, wi2, preferred_element_type=f32)           # (3B, HW)
        h3 = u2[:B] + bi2
        h4, sgh3 = _silu_and_grad(h3)
        dh4_1 = sgh3 * u2[B:2 * B]
        dh4_2 = sgh3 * u2[2 * B:]

        # fused matmul 3: ff_out + residual
        lhs3 = jnp.concatenate([h4, dh4_1, dh4_2], axis=0).astype(bf16)
        u3 = jnp.dot(lhs3, wo2, preferred_element_type=f32)           # (3B, H)
        v = v + u3[:B] + bo2
        t1 = t1 + u3[B:2 * B]
        t2 = t2 + u3[2 * B:]

    # ---- output_mlp: one fused (3B,H)@(H,2) ----
    wo = wo_ref[...].astype(bf16)   # (H, 2)
    bo = bo_ref[...]                # (1, 2)
    lhs_o = jnp.concatenate([v, t1, t2], axis=0).astype(bf16)         # (3B, H)
    uo = jnp.dot(lhs_o, wo, preferred_element_type=f32)               # (3B, 2)
    m = uo[:B] + bo                                                   # (B, 2)
    dm1 = uo[B:2 * B]                                                 # J[:, 0]
    dm2 = uo[2 * B:]                                                  # J[:, 1]

    # ---- salimans energy gradient (f32) ----
    r = x - m                                                         # (B, 2)
    g0 = 2.0 * r[:, 0:1] - 2.0 * jnp.sum(r * dm1, axis=-1, keepdims=True)
    g1 = 2.0 * r[:, 1:2] - 2.0 * jnp.sum(r * dm2, axis=-1, keepdims=True)
    grad_ref[:, 0:1] = g0
    grad_ref[:, 1:2] = g1


# ----------------------------- wrapper ---------------------------------------
def prepare_params(p):
    """One-time layout/dtype prep: concat ffw||ffew, fold biases, cast MXU weights to bf16."""
    return dict(
        emb_table=p["emb_table"],
        wi=p["wi"], bi=p["bi"],
        lng=p["lng"], lnb=p["lnb"],
        w1=jnp.concatenate([p["ffw"], p["ffew"]], axis=1).astype(jnp.bfloat16),
        b1=(p["ffb"] + p["ffeb"]).astype(jnp.float32),
        ffiw=p["ffiw"].astype(jnp.bfloat16),
        ffib=p["ffib"],
        ffow=p["ffow"].astype(jnp.bfloat16),
        ffob=p["ffob"],
        wo=p["wo"], bo=p["bo"],
    )


@jax.jit
def energy_mlp_forward(x, t, prep):
    """x: (B, 2) f32, t: (B,) int32 -> grad of salimans energy wrt x, (B, 2)."""
    t_emb = prep["emb_table"][t]      # embedding gather: JAX glue
    vmem = pl.BlockSpec(memory_space=pltpu.MemorySpace.VMEM)
    args = (
        x, t_emb,
        prep["wi"], prep["bi"],
        prep["lng"], prep["lnb"],
        prep["w1"], prep["b1"],
        prep["ffiw"], prep["ffib"],
        prep["ffow"], prep["ffob"],
        prep["wo"], prep["bo"],
    )
    return pl.pallas_call(
        energy_grad_kernel,
        out_shape=jax.ShapeDtypeStruct((B, 2), jnp.float32),
        in_specs=[vmem] * len(args),
        out_specs=vmem,
        compiler_params=pltpu.CompilerParams(vmem_limit_bytes=16 << 20),
    )(*args)


# --------------------------- param init --------------------------------------
def init_params(key):
    ks = jax.random.split(key, 16)

    def lin(k, fan_in, fan_out):
        bound = 1.0 / jnp.sqrt(float(fan_in))
        kw, kb = jax.random.split(k)
        w = jax.random.uniform(kw, (fan_in, fan_out), jnp.float32, -bound, bound)
        b = jax.random.uniform(kb, (1, fan_out), jnp.float32, -bound, bound)
        return w, b

    def lin_stack(k, fan_in, fan_out):
        ws, bs = [], []
        for kk in jax.random.split(k, L):
            w, b = lin(kk, fan_in, fan_out)
            ws.append(w)
            bs.append(b)
        return jnp.stack(ws), jnp.stack(bs)

    wi, bi = lin(ks[0], 2, E)
    ffw, ffb = lin_stack(ks[1], H, HW)
    ffew, ffeb = lin_stack(ks[2], E, HW)
    ffiw, ffib = lin_stack(ks[3], HW, HW)
    ffow, ffob = lin_stack(ks[4], HW, H)
    wo, bo = lin(ks[5], H, 2)
    emb_table = jax.random.normal(ks[6], (N_TIME, E), jnp.float32)

    return dict(
        emb_table=emb_table,
        wi=wi, bi=bi,
        lng=jnp.ones((L, 1, H), jnp.float32),
        lnb=jnp.zeros((L, 1, H), jnp.float32),
        ffw=ffw, ffb=ffb,
        ffew=ffew, ffeb=ffeb,
        ffiw=ffiw, ffib=ffib,
        ffow=ffow, ffob=ffob,
        wo=wo, bo=bo,
    )


# --------------------------- JAX reference -----------------------------------
def _mlp_ref(x, t_emb, p):
    hi = jax.lax.Precision.HIGHEST
    v = jnp.dot(x, p["wi"], precision=hi) + p["bi"][0]
    for l in range(L):
        mu = v.mean(-1, keepdims=True)
        var = ((v - mu) ** 2).mean(-1, keepdims=True)
        y = (v - mu) / jnp.sqrt(var + LN_EPS) * p["lng"][l, 0] + p["lnb"][l, 0]
        a = _silu(y)
        h = jnp.dot(a, p["ffw"][l], precision=hi) + p["ffb"][l, 0]
        h = h + jnp.dot(t_emb, p["ffew"][l], precision=hi) + p["ffeb"][l, 0]
        h = _silu(h)
        h = _silu(jnp.dot(h, p["ffiw"][l], precision=hi) + p["ffib"][l, 0])
        h = jnp.dot(h, p["ffow"][l], precision=hi) + p["ffob"][l, 0]
        v = v + h
    return jnp.dot(v, p["wo"], precision=hi) + p["bo"][0]


def _energy_ref(x, t_emb, p):
    m = _mlp_ref(x, t_emb, p)
    return ((x - m) ** 2).sum(-1)


# ------------------------------- main ----------------------------------------
if __name__ == "__main__":
    key = jax.random.PRNGKey(0)
    kp, kx, kt = jax.random.split(key, 3)
    params = init_params(kp)
    prep = prepare_params(params)
    x = jax.random.normal(kx, (B, 2), jnp.float32)
    t = jax.random.randint(kt, (B,), 0, N_TIME, jnp.int32)

    grad_kernel = jax.block_until_ready(energy_mlp_forward(x, t, prep))

    # pure-JAX reference: grad of summed salimans energy wrt x (f32)
    t_emb = params["emb_table"][t]
    grad_ref = jax.grad(lambda xx: _energy_ref(xx, t_emb, params).sum())(x)

    err = float(jnp.max(jnp.abs(grad_kernel - grad_ref)))
    scale = float(jnp.max(jnp.abs(grad_ref))) + 1e-6
    assert err / scale < 1e-2, f"mismatch: abs err {err}, scale {scale}"

    print("KERNEL_OK")
</pallas_src>

<mosaic_0001>
module attributes {stable_mosaic.version = 11 : i64} {
  func.func @energy_grad_kernel(%arg0: memref<8x2xf32, #tpu.memory_space<vmem>>, %arg1: memref<8x128xf32, #tpu.memory_space<vmem>>, %arg2: memref<2x128xf32, #tpu.memory_space<vmem>>, %arg3: memref<1x128xf32, #tpu.memory_space<vmem>>, %arg4: memref<4x1x128xf32, #tpu.memory_space<vmem>>, %arg5: memref<4x1x128xf32, #tpu.memory_space<vmem>>, %arg6: memref<4x256x256xbf16, #tpu.memory_space<vmem>>, %arg7: memref<4x1x256xf32, #tpu.memory_space<vmem>>, %arg8: memref<4x256x256xbf16, #tpu.memory_space<vmem>>, %arg9: memref<4x1x256xf32, #tpu.memory_space<vmem>>, %arg10: memref<4x256x128xbf16, #tpu.memory_space<vmem>>, %arg11: memref<4x1x128xf32, #tpu.memory_space<vmem>>, %arg12: memref<128x2xf32, #tpu.memory_space<vmem>>, %arg13: memref<1x2xf32, #tpu.memory_space<vmem>>, %arg14: memref<8x2xf32, #tpu.memory_space<vmem>>) attributes {dimension_semantics = [], scalar_prefetch = 0 : i64, scratch_operands = 0 : i64, tpu.core_type = #tpu.core_type<tc>} {
    %c0 = arith.constant 0 : index
    %c0_0 = arith.constant 0 : index
    %0 = vector.load %arg0[%c0, %c0_0] : memref<8x2xf32, #tpu.memory_space<vmem>>, vector<8x2xf32>
    %c0_1 = arith.constant 0 : index
    %c0_2 = arith.constant 0 : index
    %1 = vector.load %arg1[%c0_1, %c0_2] : memref<8x128xf32, #tpu.memory_space<vmem>>, vector<8x128xf32>
    %c0_3 = arith.constant 0 : index
    %c0_4 = arith.constant 0 : index
    %2 = vector.load %arg2[%c0_3, %c0_4] : memref<2x128xf32, #tpu.memory_space<vmem>>, vector<2x128xf32>
    %c0_5 = arith.constant 0 : index
    %c0_6 = arith.constant 0 : index
    %3 = vector.load %arg3[%c0_5, %c0_6] : memref<1x128xf32, #tpu.memory_space<vmem>>, vector<1x128xf32>
    %4 = vector.extract_strided_slice %0 {offsets = [0, 0], sizes = [8, 1], strides = [1, 1]} : vector<8x2xf32> to vector<8x1xf32>
    %5 = vector.extract_strided_slice %2 {offsets = [0, 0], sizes = [1, 128], strides = [1, 1]} : vector<2x128xf32> to vector<1x128xf32>
    %6 = vector.broadcast %4 : vector<8x1xf32> to vector<8x128xf32>
    %7 = vector.broadcast %5 : vector<1x128xf32> to vector<8x128xf32>
    %8 = arith.mulf %6, %7 : vector<8x128xf32>
    %9 = vector.extract_strided_slice %0 {offsets = [0, 1], sizes = [8, 1], strides = [1, 1]} : vector<8x2xf32> to vector<8x1xf32>
    %10 = vector.extract_strided_slice %2 {offsets = [1, 0], sizes = [1, 128], strides = [1, 1]} : vector<2x128xf32> to vector<1x128xf32>
    %11 = vector.broadcast %9 : vector<8x1xf32> to vector<8x128xf32>
    %12 = vector.broadcast %10 : vector<1x128xf32> to vector<8x128xf32>
    %13 = arith.mulf %11, %12 : vector<8x128xf32>
    %14 = arith.addf %8, %13 : vector<8x128xf32>
    %15 = vector.broadcast %3 : vector<1x128xf32> to vector<8x128xf32>
    %16 = arith.addf %14, %15 : vector<8x128xf32>
    %17 = vector.extract_strided_slice %2 {offsets = [0, 0], sizes = [1, 128], strides = [1, 1]} : vector<2x128xf32> to vector<1x128xf32>
    %18 = vector.shape_cast %17 : vector<1x128xf32> to vector<1x128xf32>
    %19 = vector.broadcast %18 : vector<1x128xf32> to vector<8x128xf32>
    %20 = vector.extract_strided_slice %2 {offsets = [1, 0], sizes = [1, 128], strides = [1, 1]} : vector<2x128xf32> to vector<1x128xf32>
    %21 = vector.shape_cast %20 : vector<1x128xf32> to vector<1x128xf32>
    %22 = vector.broadcast %21 : vector<1x128xf32> to vector<8x128xf32>
    %23 = arith.truncf %1 : vector<8x128xf32> to vector<8x128xbf16>
    %cst = arith.constant 0.000000e+00 : bf16
    %24 = vector.broadcast %cst : bf16 to vector<16x128xbf16>
    %25 = tpu.concatenate %23, %24 in 0 : vector<8x128xbf16>, vector<16x128xbf16> -> vector<24x128xbf16>
    %c0_7 = arith.constant 0 : index
    %c0_8 = arith.constant 0 : index
    %c0_9 = arith.constant 0 : index
    %26 = vector.load %arg4[%c0_7, %c0_8, %c0_9] : memref<4x1x128xf32, #tpu.memory_space<vmem>>, vector<1x1x128xf32>
    %27 = vector.shape_cast %26 : vector<1x1x128xf32> to vector<1x128xf32>
    %c0_10 = arith.constant 0 : index
    %c0_11 = arith.constant 0 : index
    %c0_12 = arith.constant 0 : index
    %28 = vector.load %arg5[%c0_10, %c0_11, %c0_12] : memref<4x1x128xf32, #tpu.memory_space<vmem>>, vector<1x1x128xf32>
    %29 = vector.shape_cast %28 : vector<1x1x128xf32> to vector<1x128xf32>
    %c0_13 = arith.constant 0 : index
    %c0_14 = arith.constant 0 : index
    %c0_15 = arith.constant 0 : index
    %30 = vector.load %arg6[%c0_13, %c0_14, %c0_15] : memref<4x256x256xbf16, #tpu.memory_space<vmem>>, vector<1x256x256xbf16>
    %31 = vector.shape_cast %30 : vector<1x256x256xbf16> to vector<256x256xbf16>
    %c0_16 = arith.constant 0 : index
    %c0_17 = arith.constant 0 : index
    %c0_18 = arith.constant 0 : index
    %32 = vector.load %arg7[%c0_16, %c0_17, %c0_18] : memref<4x1x256xf32, #tpu.memory_space<vmem>>, vector<1x1x256xf32>
    %33 = vector.shape_cast %32 : vector<1x1x256xf32> to vector<1x256xf32>
    %c0_19 = arith.constant 0 : index
    %c0_20 = arith.constant 0 : index
    %c0_21 = arith.constant 0 : index
    %34 = vector.load %arg8[%c0_19, %c0_20, %c0_21] : memref<4x256x256xbf16, #tpu.memory_space<vmem>>, vector<1x256x256xbf16>
    %35 = vector.shape_cast %34 : vector<1x256x256xbf16> to vector<256x256xbf16>
    %c0_22 = arith.constant 0 : index
    %c0_23 = arith.constant 0 : index
    %c0_24 = arith.constant 0 : index
    %36 = vector.load %arg9[%c0_22, %c0_23, %c0_24] : memref<4x1x256xf32, #tpu.memory_space<vmem>>, vector<1x1x256xf32>
    %37 = vector.shape_cast %36 : vector<1x1x256xf32> to vector<1x256xf32>
    %c0_25 = arith.constant 0 : index
    %c0_26 = arith.constant 0 : index
    %c0_27 = arith.constant 0 : index
    %38 = vector.load %arg10[%c0_25, %c0_26, %c0_27] : memref<4x256x128xbf16, #tpu.memory_space<vmem>>, vector<1x256x128xbf16>
    %39 = vector.shape_cast %38 : vector<1x256x128xbf16> to vector<256x128xbf16>
    %c0_28 = arith.constant 0 : index
    %c0_29 = arith.constant 0 : index
    %c0_30 = arith.constant 0 : index
    %40 = vector.load %arg11[%c0_28, %c0_29, %c0_30] : memref<4x1x128xf32, #tpu.memory_space<vmem>>, vector<1x1x128xf32>
    %41 = vector.shape_cast %40 : vector<1x1x128xf32> to vector<1x128xf32>
    %cst_31 = arith.constant dense<0.000000e+00> : vector<8xf32>
    %42 = vector.multi_reduction <add>, %16, %cst_31 [1] : vector<8x128xf32> to vector<8xf32>
    %43 = vector.shape_cast %42 : vector<8xf32> to vector<8x1xf32>
    %cst_32 = arith.constant 1.280000e+02 : f32
    %44 = vector.broadcast %cst_32 : f32 to vector<8x1xf32>
    %45 = arith.divf %43, %44 : vector<8x1xf32>
    %46 = vector.broadcast %45 : vector<8x1xf32> to vector<8x128xf32>
    %47 = arith.subf %16, %46 : vector<8x128xf32>
    %48 = arith.mulf %47, %47 : vector<8x128xf32>
    %cst_33 = arith.constant dense<0.000000e+00> : vector<8xf32>
    %49 = vector.multi_reduction <add>, %48, %cst_33 [1] : vector<8x128xf32> to vector<8xf32>
    %50 = vector.shape_cast %49 : vector<8xf32> to vector<8x1xf32>
    %cst_34 = arith.constant 1.280000e+02 : f32
    %51 = vector.broadcast %cst_34 : f32 to vector<8x1xf32>
    %52 = arith.divf %50, %51 : vector<8x1xf32>
    %cst_35 = arith.constant 9.99999974E-6 : f32
    %53 = vector.broadcast %cst_35 : f32 to vector<8x1xf32>
    %54 = arith.addf %52, %53 : vector<8x1xf32>
    %55 = math.rsqrt %54 : vector<8x1xf32>
    %56 = vector.broadcast %55 : vector<8x1xf32> to vector<8x128xf32>
    %57 = arith.mulf %47, %56 : vector<8x128xf32>
    %58 = vector.broadcast %27 : vector<1x128xf32> to vector<8x128xf32>
    %59 = arith.mulf %57, %58 : vector<8x128xf32>
    %60 = vector.broadcast %29 : vector<1x128xf32> to vector<8x128xf32>
    %61 = arith.addf %59, %60 : vector<8x128xf32>
    %cst_36 = arith.constant 0.000000e+00 : f32
    %62 = vector.broadcast %cst_36 : f32 to vector<8x128xf32>
    %63 = arith.subf %62, %61 : vector<8x128xf32>
    %64 = math.exp %63 : vector<8x128xf32>
    %cst_37 = arith.constant 1.000000e+00 : f32
    %65 = vector.broadcast %cst_37 : f32 to vector<8x128xf32>
    %66 = arith.addf %65, %64 : vector<8x128xf32>
    %cst_38 = arith.constant 1.000000e+00 : f32
    %67 = vector.broadcast %cst_38 : f32 to vector<8x128xf32>
    %68 = arith.divf %67, %66 : vector<8x128xf32>
    %69 = arith.mulf %61, %68 : vector<8x128xf32>
    %cst_39 = arith.constant 1.000000e+00 : f32
    %70 = vector.broadcast %cst_39 : f32 to vector<8x128xf32>
    %71 = arith.subf %70, %68 : vector<8x128xf32>
    %72 = arith.mulf %61, %71 : vector<8x128xf32>
    %cst_40 = arith.constant 1.000000e+00 : f32
    %73 = vector.broadcast %cst_40 : f32 to vector<8x128xf32>
    %74 = arith.addf %73, %72 : vector<8x128xf32>
    %75 = arith.mulf %68, %74 : vector<8x128xf32>
    %cst_41 = arith.constant dense<0.000000e+00> : vector<8xf32>
    %76 = vector.multi_reduction <add>, %19, %cst_41 [1] : vector<8x128xf32> to vector<8xf32>
    %77 = vector.shape_cast %76 : vector<8xf32> to vector<8x1xf32>
    %cst_42 = arith.constant 1.280000e+02 : f32
    %78 = vector.broadcast %cst_42 : f32 to vector<8x1xf32>
    %79 = arith.divf %77, %78 : vector<8x1xf32>
    %80 = arith.mulf %47, %19 : vector<8x128xf32>
    %cst_43 = arith.constant dense<0.000000e+00> : vector<8xf32>
    %81 = vector.multi_reduction <add>, %80, %cst_43 [1] : vector<8x128xf32> to vector<8xf32>
    %82 = vector.shape_cast %81 : vector<8xf32> to vector<8x1xf32>
    %cst_44 = arith.constant 1.280000e+02 : f32
    %83 = vector.broadcast %cst_44 : f32 to vector<8x1xf32>
    %84 = arith.divf %82, %83 : vector<8x1xf32>
    %85 = vector.broadcast %79 : vector<8x1xf32> to vector<8x128xf32>
    %86 = arith.subf %19, %85 : vector<8x128xf32>
    %87 = vector.broadcast %55 : vector<8x1xf32> to vector<8x128xf32>
    %88 = arith.mulf %86, %87 : vector<8x128xf32>
    %89 = arith.mulf %84, %55 : vector<8x1xf32>
    %90 = arith.mulf %89, %55 : vector<8x1xf32>
    %91 = vector.broadcast %90 : vector<8x1xf32> to vector<8x128xf32>
    %92 = arith.mulf %57, %91 : vector<8x128xf32>
    %93 = arith.subf %88, %92 : vector<8x128xf32>
    %94 = vector.broadcast %27 : vector<1x128xf32> to vector<8x128xf32>
    %95 = arith.mulf %93, %94 : vector<8x128xf32>
    %96 = arith.mulf %75, %95 : vector<8x128xf32>
    %cst_45 = arith.constant dense<0.000000e+00> : vector<8xf32>
    %97 = vector.multi_reduction <add>, %22, %cst_45 [1] : vector<8x128xf32> to vector<8xf32>
    %98 = vector.shape_cast %97 : vector<8xf32> to vector<8x1xf32>
    %cst_46 = arith.constant 1.280000e+02 : f32
    %99 = vector.broadcast %cst_46 : f32 to vector<8x1xf32>
    %100 = arith.divf %98, %99 : vector<8x1xf32>
    %101 = arith.mulf %47, %22 : vector<8x128xf32>
    %cst_47 = arith.constant dense<0.000000e+00> : vector<8xf32>
    %102 = vector.multi_reduction <add>, %101, %cst_47 [1] : vector<8x128xf32> to vector<8xf32>
    %103 = vector.shape_cast %102 : vector<8xf32> to vector<8x1xf32>
    %cst_48 = arith.constant 1.280000e+02 : f32
    %104 = vector.broadcast %cst_48 : f32 to vector<8x1xf32>
    %105 = arith.divf %103, %104 : vector<8x1xf32>
    %106 = vector.broadcast %100 : vector<8x1xf32> to vector<8x128xf32>
    %107 = arith.subf %22, %106 : vector<8x128xf32>
    %108 = vector.broadcast %55 : vector<8x1xf32> to vector<8x128xf32>
    %109 = arith.mulf %107, %108 : vector<8x128xf32>
    %110 = arith.mulf %105, %55 : vector<8x1xf32>
    %111 = arith.mulf %110, %55 : vector<8x1xf32>
    %112 = vector.broadcast %111 : vector<8x1xf32> to vector<8x128xf32>
    %113 = arith.mulf %57, %112 : vector<8x128xf32>
    %114 = arith.subf %109, %113 : vector<8x128xf32>
    %115 = vector.broadcast %27 : vector<1x128xf32> to vector<8x128xf32>
    %116 = arith.mulf %114, %115 : vector<8x128xf32>
    %117 = arith.mulf %75, %116 : vector<8x128xf32>
    %118 = tpu.concatenate %69, %96, %117 in 0 : vector<8x128xf32>, vector<8x128xf32>, vector<8x128xf32> -> vector<24x128xf32>
    %119 = arith.truncf %118 : vector<24x128xf32> to vector<24x128xbf16>
    %120 = tpu.concatenate %119, %25 in 1 : vector<24x128xbf16>, vector<24x128xbf16> -> vector<24x256xbf16>
    %cst_49 = arith.constant dense<0.000000e+00> : vector<24x256xf32>
    %121 = tpu.matmul %120, %31, %cst_49 {dimension_numbers = #tpu.dot_dimension_numbers<[1], [0], [0], [1], [0, 0, 1, 1], [], []>} : vector<24x256xbf16>, vector<256x256xbf16>, vector<24x256xf32> -> vector<24x256xf32>
    %122 = vector.extract_strided_slice %121 {offsets = [0, 0], sizes = [8, 256], strides = [1, 1]} : vector<24x256xf32> to vector<8x256xf32>
    %123 = vector.broadcast %33 : vector<1x256xf32> to vector<8x256xf32>
    %124 = arith.addf %122, %123 : vector<8x256xf32>
    %cst_50 = arith.constant 0.000000e+00 : f32
    %125 = vector.broadcast %cst_50 : f32 to vector<8x256xf32>
    %126 = arith.subf %125, %124 : vector<8x256xf32>
    %127 = math.exp %126 : vector<8x256xf32>
    %cst_51 = arith.constant 1.000000e+00 : f32
    %128 = vector.broadcast %cst_51 : f32 to vector<8x256xf32>
    %129 = arith.addf %128, %127 : vector<8x256xf32>
    %cst_52 = arith.constant 1.000000e+00 : f32
    %130 = vector.broadcast %cst_52 : f32 to vector<8x256xf32>
    %131 = arith.divf %130, %129 : vector<8x256xf32>
    %132 = arith.mulf %124, %131 : vector<8x256xf32>
    %cst_53 = arith.constant 1.000000e+00 : f32
    %133 = vector.broadcast %cst_53 : f32 to vector<8x256xf32>
    %134 = arith.subf %133, %131 : vector<8x256xf32>
    %135 = arith.mulf %124, %134 : vector<8x256xf32>
    %cst_54 = arith.constant 1.000000e+00 : f32
    %136 = vector.broadcast %cst_54 : f32 to vector<8x256xf32>
    %137 = arith.addf %136, %135 : vector<8x256xf32>
    %138 = arith.mulf %131, %137 : vector<8x256xf32>
    %139 = vector.extract_strided_slice %121 {offsets = [8, 0], sizes = [8, 256], strides = [1, 1]} : vector<24x256xf32> to vector<8x256xf32>
    %140 = arith.mulf %138, %139 : vector<8x256xf32>
    %141 = vector.extract_strided_slice %121 {offsets = [16, 0], sizes = [8, 256], strides = [1, 1]} : vector<24x256xf32> to vector<8x256xf32>
    %142 = arith.mulf %138, %141 : vector<8x256xf32>
    %143 = tpu.concatenate %132, %140, %142 in 0 : vector<8x256xf32>, vector<8x256xf32>, vector<8x256xf32> -> vector<24x256xf32>
    %144 = arith.truncf %143 : vector<24x256xf32> to vector<24x256xbf16>
    %cst_55 = arith.constant dense<0.000000e+00> : vector<24x256xf32>
    %145 = tpu.matmul %144, %35, %cst_55 {dimension_numbers = #tpu.dot_dimension_numbers<[1], [0], [0], [1], [0, 0, 1, 1], [], []>} : vector<24x256xbf16>, vector<256x256xbf16>, vector<24x256xf32> -> vector<24x256xf32>
    %146 = vector.extract_strided_slice %145 {offsets = [0, 0], sizes = [8, 256], strides = [1, 1]} : vector<24x256xf32> to vector<8x256xf32>
    %147 = vector.broadcast %37 : vector<1x256xf32> to vector<8x256xf32>
    %148 = arith.addf %146, %147 : vector<8x256xf32>
    %cst_56 = arith.constant 0.000000e+00 : f32
    %149 = vector.broadcast %cst_56 : f32 to vector<8x256xf32>
    %150 = arith.subf %149, %148 : vector<8x256xf32>
    %151 = math.exp %150 : vector<8x256xf32>
    %cst_57 = arith.constant 1.000000e+00 : f32
    %152 = vector.broadcast %cst_57 : f32 to vector<8x256xf32>
    %153 = arith.addf %152, %151 : vector<8x256xf32>
    %cst_58 = arith.constant 1.000000e+00 : f32
    %154 = vector.broadcast %cst_58 : f32 to vector<8x256xf32>
    %155 = arith.divf %154, %153 : vector<8x256xf32>
    %156 = arith.mulf %148, %155 : vector<8x256xf32>
    %cst_59 = arith.constant 1.000000e+00 : f32
    %157 = vector.broadcast %cst_59 : f32 to vector<8x256xf32>
    %158 = arith.subf %157, %155 : vector<8x256xf32>
    %159 = arith.mulf %148, %158 : vector<8x256xf32>
    %cst_60 = arith.constant 1.000000e+00 : f32
    %160 = vector.broadcast %cst_60 : f32 to vector<8x256xf32>
    %161 = arith.addf %160, %159 : vector<8x256xf32>
    %162 = arith.mulf %155, %161 : vector<8x256xf32>
    %163 = vector.extract_strided_slice %145 {offsets = [8, 0], sizes = [8, 256], strides = [1, 1]} : vector<24x256xf32> to vector<8x256xf32>
    %164 = arith.mulf %162, %163 : vector<8x256xf32>
    %165 = vector.extract_strided_slice %145 {offsets = [16, 0], sizes = [8, 256], strides = [1, 1]} : vector<24x256xf32> to vector<8x256xf32>
    %166 = arith.mulf %162, %165 : vector<8x256xf32>
    %167 = tpu.concatenate %156, %164, %166 in 0 : vector<8x256xf32>, vector<8x256xf32>, vector<8x256xf32> -> vector<24x256xf32>
    %168 = arith.truncf %167 : vector<24x256xf32> to vector<24x256xbf16>
    %cst_61 = arith.constant dense<0.000000e+00> : vector<24x128xf32>
    %169 = tpu.matmul %168, %39, %cst_61 {dimension_numbers = #tpu.dot_dimension_numbers<[1], [0], [0], [1], [0, 0, 1, 1], [], []>} : vector<24x256xbf16>, vector<256x128xbf16>, vector<24x128xf32> -> vector<24x128xf32>
    %170 = vector.extract_strided_slice %169 {offsets = [0, 0], sizes = [8, 128], strides = [1, 1]} : vector<24x128xf32> to vector<8x128xf32>
    %171 = arith.addf %16, %170 : vector<8x128xf32>
    %172 = vector.broadcast %41 : vector<1x128xf32> to vector<8x128xf32>
    %173 = arith.addf %171, %172 : vector<8x128xf32>
    %174 = vector.extract_strided_slice %169 {offsets = [8, 0], sizes = [8, 128], strides = [1, 1]} : vector<24x128xf32> to vector<8x128xf32>
    %175 = arith.addf %19, %174 : vector<8x128xf32>
    %176 = vector.extract_strided_slice %169 {offsets = [16, 0], sizes = [8, 128], strides = [1, 1]} : vector<24x128xf32> to vector<8x128xf32>
    %177 = arith.addf %22, %176 : vector<8x128xf32>
    %c1 = arith.constant 1 : index
    %c0_62 = arith.constant 0 : index
    %c0_63 = arith.constant 0 : index
    %178 = vector.load %arg4[%c1, %c0_62, %c0_63] : memref<4x1x128xf32, #tpu.memory_space<vmem>>, vector<1x1x128xf32>
    %179 = vector.shape_cast %178 : vector<1x1x128xf32> to vector<1x128xf32>
    %c1_64 = arith.constant 1 : index
    %c0_65 = arith.constant 0 : index
    %c0_66 = arith.constant 0 : index
    %180 = vector.load %arg5[%c1_64, %c0_65, %c0_66] : memref<4x1x128xf32, #tpu.memory_space<vmem>>, vector<1x1x128xf32>
    %181 = vector.shape_cast %180 : vector<1x1x128xf32> to vector<1x128xf32>
    %c1_67 = arith.constant 1 : index
    %c0_68 = arith.constant 0 : index
    %c0_69 = arith.constant 0 : index
    %182 = vector.load %arg6[%c1_67, %c0_68, %c0_69] : memref<4x256x256xbf16, #tpu.memory_space<vmem>>, vector<1x256x256xbf16>
    %183 = vector.shape_cast %182 : vector<1x256x256xbf16> to vector<256x256xbf16>
    %c1_70 = arith.constant 1 : index
    %c0_71 = arith.constant 0 : index
    %c0_72 = arith.constant 0 : index
    %184 = vector.load %arg7[%c1_70, %c0_71, %c0_72] : memref<4x1x256xf32, #tpu.memory_space<vmem>>, vector<1x1x256xf32>
    %185 = vector.shape_cast %184 : vector<1x1x256xf32> to vector<1x256xf32>
    %c1_73 = arith.constant 1 : index
    %c0_74 = arith.constant 0 : index
    %c0_75 = arith.constant 0 : index
    %186 = vector.load %arg8[%c1_73, %c0_74, %c0_75] : memref<4x256x256xbf16, #tpu.memory_space<vmem>>, vector<1x256x256xbf16>
    %187 = vector.shape_cast %186 : vector<1x256x256xbf16> to vector<256x256xbf16>
    %c1_76 = arith.constant 1 : index
    %c0_77 = arith.constant 0 : index
    %c0_78 = arith.constant 0 : index
    %188 = vector.load %arg9[%c1_76, %c0_77, %c0_78] : memref<4x1x256xf32, #tpu.memory_space<vmem>>, vector<1x1x256xf32>
    %189 = vector.shape_cast %188 : vector<1x1x256xf32> to vector<1x256xf32>
    %c1_79 = arith.constant 1 : index
    %c0_80 = arith.constant 0 : index
    %c0_81 = arith.constant 0 : index
    %190 = vector.load %arg10[%c1_79, %c0_80, %c0_81] : memref<4x256x128xbf16, #tpu.memory_space<vmem>>, vector<1x256x128xbf16>
    %191 = vector.shape_cast %190 : vector<1x256x128xbf16> to vector<256x128xbf16>
    %c1_82 = arith.constant 1 : index
    %c0_83 = arith.constant 0 : index
    %c0_84 = arith.constant 0 : index
    %192 = vector.load %arg11[%c1_82, %c0_83, %c0_84] : memref<4x1x128xf32, #tpu.memory_space<vmem>>, vector<1x1x128xf32>
    %193 = vector.shape_cast %192 : vector<1x1x128xf32> to vector<1x128xf32>
    %cst_85 = arith.constant dense<0.000000e+00> : vector<8xf32>
    %194 = vector.multi_reduction <add>, %173, %cst_85 [1] : vector<8x128xf32> to vector<8xf32>
    %195 = vector.shape_cast %194 : vector<8xf32> to vector<8x1xf32>
    %cst_86 = arith.constant 1.280000e+02 : f32
    %196 = vector.broadcast %cst_86 : f32 to vector<8x1xf32>
    %197 = arith.divf %195, %196 : vector<8x1xf32>
    %198 = vector.broadcast %197 : vector<8x1xf32> to vector<8x128xf32>
    %199 = arith.subf %173, %198 : vector<8x128xf32>
    %200 = arith.mulf %199, %199 : vector<8x128xf32>
    %cst_87 = arith.constant dense<0.000000e+00> : vector<8xf32>
    %201 = vector.multi_reduction <add>, %200, %cst_87 [1] : vector<8x128xf32> to vector<8xf32>
    %202 = vector.shape_cast %201 : vector<8xf32> to vector<8x1xf32>
    %cst_88 = arith.constant 1.280000e+02 : f32
    %203 = vector.broadcast %cst_88 : f32 to vector<8x1xf32>
    %204 = arith.divf %202, %203 : vector<8x1xf32>
    %cst_89 = arith.constant 9.99999974E-6 : f32
    %205 = vector.broadcast %cst_89 : f32 to vector<8x1xf32>
    %206 = arith.addf %204, %205 : vector<8x1xf32>
    %207 = math.rsqrt %206 : vector<8x1xf32>
    %208 = vector.broadcast %207 : vector<8x1xf32> to vector<8x128xf32>
    %209 = arith.mulf %199, %208 : vector<8x128xf32>
    %210 = vector.broadcast %179 : vector<1x128xf32> to vector<8x128xf32>
    %211 = arith.mulf %209, %210 : vector<8x128xf32>
    %212 = vector.broadcast %181 : vector<1x128xf32> to vector<8x128xf32>
    %213 = arith.addf %211, %212 : vector<8x128xf32>
    %cst_90 = arith.constant 0.000000e+00 : f32
    %214 = vector.broadcast %cst_90 : f32 to vector<8x128xf32>
    %215 = arith.subf %214, %213 : vector<8x128xf32>
    %216 = math.exp %215 : vector<8x128xf32>
    %cst_91 = arith.constant 1.000000e+00 : f32
    %217 = vector.broadcast %cst_91 : f32 to vector<8x128xf32>
    %218 = arith.addf %217, %216 : vector<8x128xf32>
    %cst_92 = arith.constant 1.000000e+00 : f32
    %219 = vector.broadcast %cst_92 : f32 to vector<8x128xf32>
    %220 = arith.divf %219, %218 : vector<8x128xf32>
    %221 = arith.mulf %213, %220 : vector<8x128xf32>
    %cst_93 = arith.constant 1.000000e+00 : f32
    %222 = vector.broadcast %cst_93 : f32 to vector<8x128xf32>
    %223 = arith.subf %222, %220 : vector<8x128xf32>
    %224 = arith.mulf %213, %223 : vector<8x128xf32>
    %cst_94 = arith.constant 1.000000e+00 : f32
    %225 = vector.broadcast %cst_94 : f32 to vector<8x128xf32>
    %226 = arith.addf %225, %224 : vector<8x128xf32>
    %227 = arith.mulf %220, %226 : vector<8x128xf32>
    %cst_95 = arith.constant dense<0.000000e+00> : vector<8xf32>
    %228 = vector.multi_reduction <add>, %175, %cst_95 [1] : vector<8x128xf32> to vector<8xf32>
    %229 = vector.shape_cast %228 : vector<8xf32> to vector<8x1xf32>
    %cst_96 = arith.constant 1.280000e+02 : f32
    %230 = vector.broadcast %cst_96 : f32 to vector<8x1xf32>
    %231 = arith.divf %229, %230 : vector<8x1xf32>
    %232 = arith.mulf %199, %175 : vector<8x128xf32>
    %cst_97 = arith.constant dense<0.000000e+00> : vector<8xf32>
    %233 = vector.multi_reduction <add>, %232, %cst_97 [1] : vector<8x128xf32> to vector<8xf32>
    %234 = vector.shape_cast %233 : vector<8xf32> to vector<8x1xf32>
    %cst_98 = arith.constant 1.280000e+02 : f32
    %235 = vector.broadcast %cst_98 : f32 to vector<8x1xf32>
    %236 = arith.divf %234, %235 : vector<8x1xf32>
    %237 = vector.broadcast %231 : vector<8x1xf32> to vector<8x128xf32>
    %238 = arith.subf %175, %237 : vector<8x128xf32>
    %239 = vector.broadcast %207 : vector<8x1xf32> to vector<8x128xf32>
    %240 = arith.mulf %238, %239 : vector<8x128xf32>
    %241 = arith.mulf %236, %207 : vector<8x1xf32>
    %242 = arith.mulf %241, %207 : vector<8x1xf32>
    %243 = vector.broadcast %242 : vector<8x1xf32> to vector<8x128xf32>
    %244 = arith.mulf %209, %243 : vector<8x128xf32>
    %245 = arith.subf %240, %244 : vector<8x128xf32>
    %246 = vector.broadcast %179 : vector<1x128xf32> to vector<8x128xf32>
    %247 = arith.mulf %245, %246 : vector<8x128xf32>
    %248 = arith.mulf %227, %247 : vector<8x128xf32>
    %cst_99 = arith.constant dense<0.000000e+00> : vector<8xf32>
    %249 = vector.multi_reduction <add>, %177, %cst_99 [1] : vector<8x128xf32> to vector<8xf32>
    %250 = vector.shape_cast %249 : vector<8xf32> to vector<8x1xf32>
    %cst_100 = arith.constant 1.280000e+02 : f32
    %251 = vector.broadcast %cst_100 : f32 to vector<8x1xf32>
    %252 = arith.divf %250, %251 : vector<8x1xf32>
    %253 = arith.mulf %199, %177 : vector<8x128xf32>
    %cst_101 = arith.constant dense<0.000000e+00> : vector<8xf32>
    %254 = vector.multi_reduction <add>, %253, %cst_101 [1] : vector<8x128xf32> to vector<8xf32>
    %255 = vector.shape_cast %254 : vector<8xf32> to vector<8x1xf32>
    %cst_102 = arith.constant 1.280000e+02 : f32
    %256 = vector.broadcast %cst_102 : f32 to vector<8x1xf32>
    %257 = arith.divf %255, %256 : vector<8x1xf32>
    %258 = vector.broadcast %252 : vector<8x1xf32> to vector<8x128xf32>
    %259 = arith.subf %177, %258 : vector<8x128xf32>
    %260 = vector.broadcast %207 : vector<8x1xf32> to vector<8x128xf32>
    %261 = arith.mulf %259, %260 : vector<8x128xf32>
    %262 = arith.mulf %257, %207 : vector<8x1xf32>
    %263 = arith.mulf %262, %207 : vector<8x1xf32>
    %264 = vector.broadcast %263 : vector<8x1xf32> to vector<8x128xf32>
    %265 = arith.mulf %209, %264 : vector<8x128xf32>
    %266 = arith.subf %261, %265 : vector<8x128xf32>
    %267 = vector.broadcast %179 : vector<1x128xf32> to vector<8x128xf32>
    %268 = arith.mulf %266, %267 : vector<8x128xf32>
    %269 = arith.mulf %227, %268 : vector<8x128xf32>
    %270 = tpu.concatenate %221, %248, %269 in 0 : vector<8x128xf32>, vector<8x128xf32>, vector<8x128xf32> -> vector<24x128xf32>
    %271 = arith.truncf %270 : vector<24x128xf32> to vector<24x128xbf16>
    %272 = tpu.concatenate %271, %25 in 1 : vector<24x128xbf16>, vector<24x128xbf16> -> vector<24x256xbf16>
    %cst_103 = arith.constant dense<0.000000e+00> : vector<24x256xf32>
    %273 = tpu.matmul %272, %183, %cst_103 {dimension_numbers = #tpu.dot_dimension_numbers<[1], [0], [0], [1], [0, 0, 1, 1], [], []>} : vector<24x256xbf16>, vector<256x256xbf16>, vector<24x256xf32> -> vector<24x256xf32>
    %274 = vector.extract_strided_slice %273 {offsets = [0, 0], sizes = [8, 256], strides = [1, 1]} : vector<24x256xf32> to vector<8x256xf32>
    %275 = vector.broadcast %185 : vector<1x256xf32> to vector<8x256xf32>
    %276 = arith.addf %274, %275 : vector<8x256xf32>
    %cst_104 = arith.constant 0.000000e+00 : f32
    %277 = vector.broadcast %cst_104 : f32 to vector<8x256xf32>
    %278 = arith.subf %277, %276 : vector<8x256xf32>
    %279 = math.exp %278 : vector<8x256xf32>
    %cst_105 = arith.constant 1.000000e+00 : f32
    %280 = vector.broadcast %cst_105 : f32 to vector<8x256xf32>
    %281 = arith.addf %280, %279 : vector<8x256xf32>
    %cst_106 = arith.constant 1.000000e+00 : f32
    %282 = vector.broadcast %cst_106 : f32 to vector<8x256xf32>
    %283 = arith.divf %282, %281 : vector<8x256xf32>
    %284 = arith.mulf %276, %283 : vector<8x256xf32>
    %cst_107 = arith.constant 1.000000e+00 : f32
    %285 = vector.broadcast %cst_107 : f32 to vector<8x256xf32>
    %286 = arith.subf %285, %283 : vector<8x256xf32>
    %287 = arith.mulf %276, %286 : vector<8x256xf32>
    %cst_108 = arith.constant 1.000000e+00 : f32
    %288 = vector.broadcast %cst_108 : f32 to vector<8x256xf32>
    %289 = arith.addf %288, %287 : vector<8x256xf32>
    %290 = arith.mulf %283, %289 : vector<8x256xf32>
    %291 = vector.extract_strided_slice %273 {offsets = [8, 0], sizes = [8, 256], strides = [1, 1]} : vector<24x256xf32> to vector<8x256xf32>
    %292 = arith.mulf %290, %291 : vector<8x256xf32>
    %293 = vector.extract_strided_slice %273 {offsets = [16, 0], sizes = [8, 256], strides = [1, 1]} : vector<24x256xf32> to vector<8x256xf32>
    %294 = arith.mulf %290, %293 : vector<8x256xf32>
    %295 = tpu.concatenate %284, %292, %294 in 0 : vector<8x256xf32>, vector<8x256xf32>, vector<8x256xf32> -> vector<24x256xf32>
    %296 = arith.truncf %295 : vector<24x256xf32> to vector<24x256xbf16>
    %cst_109 = arith.constant dense<0.000000e+00> : vector<24x256xf32>
    %297 = tpu.matmul %296, %187, %cst_109 {dimension_numbers = #tpu.dot_dimension_numbers<[1], [0], [0], [1], [0, 0, 1, 1], [], []>} : vector<24x256xbf16>, vector<256x256xbf16>, vector<24x256xf32> -> vector<24x256xf32>
    %298 = vector.extract_strided_slice %297 {offsets = [0, 0], sizes = [8, 256], strides = [1, 1]} : vector<24x256xf32> to vector<8x256xf32>
    %299 = vector.broadcast %189 : vector<1x256xf32> to vector<8x256xf32>
    %300 = arith.addf %298, %299 : vector<8x256xf32>
    %cst_110 = arith.constant 0.000000e+00 : f32
    %301 = vector.broadcast %cst_110 : f32 to vector<8x256xf32>
    %302 = arith.subf %301, %300 : vector<8x256xf32>
    %303 = math.exp %302 : vector<8x256xf32>
    %cst_111 = arith.constant 1.000000e+00 : f32
    %304 = vector.broadcast %cst_111 : f32 to vector<8x256xf32>
    %305 = arith.addf %304, %303 : vector<8x256xf32>
    %cst_112 = arith.constant 1.000000e+00 : f32
    %306 = vector.broadcast %cst_112 : f32 to vector<8x256xf32>
    %307 = arith.divf %306, %305 : vector<8x256xf32>
    %308 = arith.mulf %300, %307 : vector<8x256xf32>
    %cst_113 = arith.constant 1.000000e+00 : f32
    %309 = vector.broadcast %cst_113 : f32 to vector<8x256xf32>
    %310 = arith.subf %309, %307 : vector<8x256xf32>
    %311 = arith.mulf %300, %310 : vector<8x256xf32>
    %cst_114 = arith.constant 1.000000e+00 : f32
    %312 = vector.broadcast %cst_114 : f32 to vector<8x256xf32>
    %313 = arith.addf %312, %311 : vector<8x256xf32>
    %314 = arith.mulf %307, %313 : vector<8x256xf32>
    %315 = vector.extract_strided_slice %297 {offsets = [8, 0], sizes = [8, 256], strides = [1, 1]} : vector<24x256xf32> to vector<8x256xf32>
    %316 = arith.mulf %314, %315 : vector<8x256xf32>
    %317 = vector.extract_strided_slice %297 {offsets = [16, 0], sizes = [8, 256], strides = [1, 1]} : vector<24x256xf32> to vector<8x256xf32>
    %318 = arith.mulf %314, %317 : vector<8x256xf32>
    %319 = tpu.concatenate %308, %316, %318 in 0 : vector<8x256xf32>, vector<8x256xf32>, vector<8x256xf32> -> vector<24x256xf32>
    %320 = arith.truncf %319 : vector<24x256xf32> to vector<24x256xbf16>
    %cst_115 = arith.constant dense<0.000000e+00> : vector<24x128xf32>
    %321 = tpu.matmul %320, %191, %cst_115 {dimension_numbers = #tpu.dot_dimension_numbers<[1], [0], [0], [1], [0, 0, 1, 1], [], []>} : vector<24x256xbf16>, vector<256x128xbf16>, vector<24x128xf32> -> vector<24x128xf32>
    %322 = vector.extract_strided_slice %321 {offsets = [0, 0], sizes = [8, 128], strides = [1, 1]} : vector<24x128xf32> to vector<8x128xf32>
    %323 = arith.addf %173, %322 : vector<8x128xf32>
    %324 = vector.broadcast %193 : vector<1x128xf32> to vector<8x128xf32>
    %325 = arith.addf %323, %324 : vector<8x128xf32>
    %326 = vector.extract_strided_slice %321 {offsets = [8, 0], sizes = [8, 128], strides = [1, 1]} : vector<24x128xf32> to vector<8x128xf32>
    %327 = arith.addf %175, %326 : vector<8x128xf32>
    %328 = vector.extract_strided_slice %321 {offsets = [16, 0], sizes = [8, 128], strides = [1, 1]} : vector<24x128xf32> to vector<8x128xf32>
    %329 = arith.addf %177, %328 : vector<8x128xf32>
    %c2 = arith.constant 2 : index
    %c0_116 = arith.constant 0 : index
    %c0_117 = arith.constant 0 : index
    %330 = vector.load %arg4[%c2, %c0_116, %c0_117] : memref<4x1x128xf32, #tpu.memory_space<vmem>>, vector<1x1x128xf32>
    %331 = vector.shape_cast %330 : vector<1x1x128xf32> to vector<1x128xf32>
    %c2_118 = arith.constant 2 : index
    %c0_119 = arith.constant 0 : index
    %c0_120 = arith.constant 0 : index
    %332 = vector.load %arg5[%c2_118, %c0_119, %c0_120] : memref<4x1x128xf32, #tpu.memory_space<vmem>>, vector<1x1x128xf32>
    %333 = vector.shape_cast %332 : vector<1x1x128xf32> to vector<1x128xf32>
    %c2_121 = arith.constant 2 : index
    %c0_122 = arith.constant 0 : index
    %c0_123 = arith.constant 0 : index
    %334 = vector.load %arg6[%c2_121, %c0_122, %c0_123] : memref<4x256x256xbf16, #tpu.memory_space<vmem>>, vector<1x256x256xbf16>
    %335 = vector.shape_cast %334 : vector<1x256x256xbf16> to vector<256x256xbf16>
    %c2_124 = arith.constant 2 : index
    %c0_125 = arith.constant 0 : index
    %c0_126 = arith.constant 0 : index
    %336 = vector.load %arg7[%c2_124, %c0_125, %c0_126] : memref<4x1x256xf32, #tpu.memory_space<vmem>>, vector<1x1x256xf32>
    %337 = vector.shape_cast %336 : vector<1x1x256xf32> to vector<1x256xf32>
    %c2_127 = arith.constant 2 : index
    %c0_128 = arith.constant 0 : index
    %c0_129 = arith.constant 0 : index
    %338 = vector.load %arg8[%c2_127, %c0_128, %c0_129] : memref<4x256x256xbf16, #tpu.memory_space<vmem>>, vector<1x256x256xbf16>
    %339 = vector.shape_cast %338 : vector<1x256x256xbf16> to vector<256x256xbf16>
    %c2_130 = arith.constant 2 : index
    %c0_131 = arith.constant 0 : index
    %c0_132 = arith.constant 0 : index
    %340 = vector.load %arg9[%c2_130, %c0_131, %c0_132] : memref<4x1x256xf32, #tpu.memory_space<vmem>>, vector<1x1x256xf32>
    %341 = vector.shape_cast %340 : vector<1x1x256xf32> to vector<1x256xf32>
    %c2_133 = arith.constant 2 : index
    %c0_134 = arith.constant 0 : index
    %c0_135 = arith.constant 0 : index
    %342 = vector.load %arg10[%c2_133, %c0_134, %c0_135] : memref<4x256x128xbf16, #tpu.memory_space<vmem>>, vector<1x256x128xbf16>
    %343 = vector.shape_cast %342 : vector<1x256x128xbf16> to vector<256x128xbf16>
    %c2_136 = arith.constant 2 : index
    %c0_137 = arith.constant 0 : index
    %c0_138 = arith.constant 0 : index
    %344 = vector.load %arg11[%c2_136, %c0_137, %c0_138] : memref<4x1x128xf32, #tpu.memory_space<vmem>>, vector<1x1x128xf32>
    %345 = vector.shape_cast %344 : vector<1x1x128xf32> to vector<1x128xf32>
    %cst_139 = arith.constant dense<0.000000e+00> : vector<8xf32>
    %346 = vector.multi_reduction <add>, %325, %cst_139 [1] : vector<8x128xf32> to vector<8xf32>
    %347 = vector.shape_cast %346 : vector<8xf32> to vector<8x1xf32>
    %cst_140 = arith.constant 1.280000e+02 : f32
    %348 = vector.broadcast %cst_140 : f32 to vector<8x1xf32>
    %349 = arith.divf %347, %348 : vector<8x1xf32>
    %350 = vector.broadcast %349 : vector<8x1xf32> to vector<8x128xf32>
    %351 = arith.subf %325, %350 : vector<8x128xf32>
    %352 = arith.mulf %351, %351 : vector<8x128xf32>
    %cst_141 = arith.constant dense<0.000000e+00> : vector<8xf32>
    %353 = vector.multi_reduction <add>, %352, %cst_141 [1] : vector<8x128xf32> to vector<8xf32>
    %354 = vector.shape_cast %353 : vector<8xf32> to vector<8x1xf32>
    %cst_142 = arith.constant 1.280000e+02 : f32
    %355 = vector.broadcast %cst_142 : f32 to vector<8x1xf32>
    %356 = arith.divf %354, %355 : vector<8x1xf32>
    %cst_143 = arith.constant 9.99999974E-6 : f32
    %357 = vector.broadcast %cst_143 : f32 to vector<8x1xf32>
    %358 = arith.addf %356, %357 : vector<8x1xf32>
    %359 = math.rsqrt %358 : vector<8x1xf32>
    %360 = vector.broadcast %359 : vector<8x1xf32> to vector<8x128xf32>
    %361 = arith.mulf %351, %360 : vector<8x128xf32>
    %362 = vector.broadcast %331 : vector<1x128xf32> to vector<8x128xf32>
    %363 = arith.mulf %361, %362 : vector<8x128xf32>
    %364 = vector.broadcast %333 : vector<1x128xf32> to vector<8x128xf32>
    %365 = arith.addf %363, %364 : vector<8x128xf32>
    %cst_144 = arith.constant 0.000000e+00 : f32
    %366 = vector.broadcast %cst_144 : f32 to vector<8x128xf32>
    %367 = arith.subf %366, %365 : vector<8x128xf32>
    %368 = math.exp %367 : vector<8x128xf32>
    %cst_145 = arith.constant 1.000000e+00 : f32
    %369 = vector.broadcast %cst_145 : f32 to vector<8x128xf32>
    %370 = arith.addf %369, %368 : vector<8x128xf32>
    %cst_146 = arith.constant 1.000000e+00 : f32
    %371 = vector.broadcast %cst_146 : f32 to vector<8x128xf32>
    %372 = arith.divf %371, %370 : vector<8x128xf32>
    %373 = arith.mulf %365, %372 : vector<8x128xf32>
    %cst_147 = arith.constant 1.000000e+00 : f32
    %374 = vector.broadcast %cst_147 : f32 to vector<8x128xf32>
    %375 = arith.subf %374, %372 : vector<8x128xf32>
    %376 = arith.mulf %365, %375 : vector<8x128xf32>
    %cst_148 = arith.constant 1.000000e+00 : f32
    %377 = vector.broadcast %cst_148 : f32 to vector<8x128xf32>
    %378 = arith.addf %377, %376 : vector<8x128xf32>
    %379 = arith.mulf %372, %378 : vector<8x128xf32>
    %cst_149 = arith.constant dense<0.000000e+00> : vector<8xf32>
    %380 = vector.multi_reduction <add>, %327, %cst_149 [1] : vector<8x128xf32> to vector<8xf32>
    %381 = vector.shape_cast %380 : vector<8xf32> to vector<8x1xf32>
    %cst_150 = arith.constant 1.280000e+02 : f32
    %382 = vector.broadcast %cst_150 : f32 to vector<8x1xf32>
    %383 = arith.divf %381, %382 : vector<8x1xf32>
    %384 = arith.mulf %351, %327 : vector<8x128xf32>
    %cst_151 = arith.constant dense<0.000000e+00> : vector<8xf32>
    %385 = vector.multi_reduction <add>, %384, %cst_151 [1] : vector<8x128xf32> to vector<8xf32>
    %386 = vector.shape_cast %385 : vector<8xf32> to vector<8x1xf32>
    %cst_152 = arith.constant 1.280000e+02 : f32
    %387 = vector.broadcast %cst_152 : f32 to vector<8x1xf32>
    %388 = arith.divf %386, %387 : vector<8x1xf32>
    %389 = vector.broadcast %383 : vector<8x1xf32> to vector<8x128xf32>
    %390 = arith.subf %327, %389 : vector<8x128xf32>
    %391 = vector.broadcast %359 : vector<8x1xf32> to vector<8x128xf32>
    %392 = arith.mulf %390, %391 : vector<8x128xf32>
    %393 = arith.mulf %388, %359 : vector<8x1xf32>
    %394 = arith.mulf %393, %359 : vector<8x1xf32>
    %395 = vector.broadcast %394 : vector<8x1xf32> to vector<8x128xf32>
    %396 = arith.mulf %361, %395 : vector<8x128xf32>
    %397 = arith.subf %392, %396 : vector<8x128xf32>
    %398 = vector.broadcast %331 : vector<1x128xf32> to vector<8x128xf32>
    %399 = arith.mulf %397, %398 : vector<8x128xf32>
    %400 = arith.mulf %379, %399 : vector<8x128xf32>
    %cst_153 = arith.constant dense<0.000000e+00> : vector<8xf32>
    %401 = vector.multi_reduction <add>, %329, %cst_153 [1] : vector<8x128xf32> to vector<8xf32>
    %402 = vector.shape_cast %401 : vector<8xf32> to vector<8x1xf32>
    %cst_154 = arith.constant 1.280000e+02 : f32
    %403 = vector.broadcast %cst_154 : f32 to vector<8x1xf32>
    %404 = arith.divf %402, %403 : vector<8x1xf32>
    %405 = arith.mulf %351, %329 : vector<8x128xf32>
    %cst_155 = arith.constant dense<0.000000e+00> : vector<8xf32>
    %406 = vector.multi_reduction <add>, %405, %cst_155 [1] : vector<8x128xf32> to vector<8xf32>
    %407 = vector.shape_cast %406 : vector<8xf32> to vector<8x1xf32>
    %cst_156 = arith.constant 1.280000e+02 : f32
    %408 = vector.broadcast %cst_156 : f32 to vector<8x1xf32>
    %409 = arith.divf %407, %408 : vector<8x1xf32>
    %410 = vector.broadcast %404 : vector<8x1xf32> to vector<8x128xf32>
    %411 = arith.subf %329, %410 : vector<8x128xf32>
    %412 = vector.broadcast %359 : vector<8x1xf32> to vector<8x128xf32>
    %413 = arith.mulf %411, %412 : vector<8x128xf32>
    %414 = arith.mulf %409, %359 : vector<8x1xf32>
    %415 = arith.mulf %414, %359 : vector<8x1xf32>
    %416 = vector.broadcast %415 : vector<8x1xf32> to vector<8x128xf32>
    %417 = arith.mulf %361, %416 : vector<8x128xf32>
    %418 = arith.subf %413, %417 : vector<8x128xf32>
    %419 = vector.broadcast %331 : vector<1x128xf32> to vector<8x128xf32>
    %420 = arith.mulf %418, %419 : vector<8x128xf32>
    %421 = arith.mulf %379, %420 : vector<8x128xf32>
    %422 = tpu.concatenate %373, %400, %421 in 0 : vector<8x128xf32>, vector<8x128xf32>, vector<8x128xf32> -> vector<24x128xf32>
    %423 = arith.truncf %422 : vector<24x128xf32> to vector<24x128xbf16>
    %424 = tpu.concatenate %423, %25 in 1 : vector<24x128xbf16>, vector<24x128xbf16> -> vector<24x256xbf16>
    %cst_157 = arith.constant dense<0.000000e+00> : vector<24x256xf32>
    %425 = tpu.matmul %424, %335, %cst_157 {dimension_numbers = #tpu.dot_dimension_numbers<[1], [0], [0], [1], [0, 0, 1, 1], [], []>} : vector<24x256xbf16>, vector<256x256xbf16>, vector<24x256xf32> -> vector<24x256xf32>
    %426 = vector.extract_strided_slice %425 {offsets = [0, 0], sizes = [8, 256], strides = [1, 1]} : vector<24x256xf32> to vector<8x256xf32>
    %427 = vector.broadcast %337 : vector<1x256xf32> to vector<8x256xf32>
    %428 = arith.addf %426, %427 : vector<8x256xf32>
    %cst_158 = arith.constant 0.000000e+00 : f32
    %429 = vector.broadcast %cst_158 : f32 to vector<8x256xf32>
    %430 = arith.subf %429, %428 : vector<8x256xf32>
    %431 = math.exp %430 : vector<8x256xf32>
    %cst_159 = arith.constant 1.000000e+00 : f32
    %432 = vector.broadcast %cst_159 : f32 to vector<8x256xf32>
    %433 = arith.addf %432, %431 : vector<8x256xf32>
    %cst_160 = arith.constant 1.000000e+00 : f32
    %434 = vector.broadcast %cst_160 : f32 to vector<8x256xf32>
    %435 = arith.divf %434, %433 : vector<8x256xf32>
    %436 = arith.mulf %428, %435 : vector<8x256xf32>
    %cst_161 = arith.constant 1.000000e+00 : f32
    %437 = vector.broadcast %cst_161 : f32 to vector<8x256xf32>
    %438 = arith.subf %437, %435 : vector<8x256xf32>
    %439 = arith.mulf %428, %438 : vector<8x256xf32>
    %cst_162 = arith.constant 1.000000e+00 : f32
    %440 = vector.broadcast %cst_162 : f32 to vector<8x256xf32>
    %441 = arith.addf %440, %439 : vector<8x256xf32>
    %442 = arith.mulf %435, %441 : vector<8x256xf32>
    %443 = vector.extract_strided_slice %425 {offsets = [8, 0], sizes = [8, 256], strides = [1, 1]} : vector<24x256xf32> to vector<8x256xf32>
    %444 = arith.mulf %442, %443 : vector<8x256xf32>
    %445 = vector.extract_strided_slice %425 {offsets = [16, 0], sizes = [8, 256], strides = [1, 1]} : vector<24x256xf32> to vector<8x256xf32>
    %446 = arith.mulf %442, %445 : vector<8x256xf32>
    %447 = tpu.concatenate %436, %444, %446 in 0 : vector<8x256xf32>, vector<8x256xf32>, vector<8x256xf32> -> vector<24x256xf32>
    %448 = arith.truncf %447 : vector<24x256xf32> to vector<24x256xbf16>
    %cst_163 = arith.constant dense<0.000000e+00> : vector<24x256xf32>
    %449 = tpu.matmul %448, %339, %cst_163 {dimension_numbers = #tpu.dot_dimension_numbers<[1], [0], [0], [1], [0, 0, 1, 1], [], []>} : vector<24x256xbf16>, vector<256x256xbf16>, vector<24x256xf32> -> vector<24x256xf32>
    %450 = vector.extract_strided_slice %449 {offsets = [0, 0], sizes = [8, 256], strides = [1, 1]} : vector<24x256xf32> to vector<8x256xf32>
    %451 = vector.broadcast %341 : vector<1x256xf32> to vector<8x256xf32>
    %452 = arith.addf %450, %451 : vector<8x256xf32>
    %cst_164 = arith.constant 0.000000e+00 : f32
    %453 = vector.broadcast %cst_164 : f32 to vector<8x256xf32>
    %454 = arith.subf %453, %452 : vector<8x256xf32>
    %455 = math.exp %454 : vector<8x256xf32>
    %cst_165 = arith.constant 1.000000e+00 : f32
    %456 = vector.broadcast %cst_165 : f32 to vector<8x256xf32>
    %457 = arith.addf %456, %455 : vector<8x256xf32>
    %cst_166 = arith.constant 1.000000e+00 : f32
    %458 = vector.broadcast %cst_166 : f32 to vector<8x256xf32>
    %459 = arith.divf %458, %457 : vector<8x256xf32>
    %460 = arith.mulf %452, %459 : vector<8x256xf32>
    %cst_167 = arith.constant 1.000000e+00 : f32
    %461 = vector.broadcast %cst_167 : f32 to vector<8x256xf32>
    %462 = arith.subf %461, %459 : vector<8x256xf32>
    %463 = arith.mulf %452, %462 : vector<8x256xf32>
    %cst_168 = arith.constant 1.000000e+00 : f32
    %464 = vector.broadcast %cst_168 : f32 to vector<8x256xf32>
    %465 = arith.addf %464, %463 : vector<8x256xf32>
    %466 = arith.mulf %459, %465 : vector<8x256xf32>
    %467 = vector.extract_strided_slice %449 {offsets = [8, 0], sizes = [8, 256], strides = [1, 1]} : vector<24x256xf32> to vector<8x256xf32>
    %468 = arith.mulf %466, %467 : vector<8x256xf32>
    %469 = vector.extract_strided_slice %449 {offsets = [16, 0], sizes = [8, 256], strides = [1, 1]} : vector<24x256xf32> to vector<8x256xf32>
    %470 = arith.mulf %466, %469 : vector<8x256xf32>
    %471 = tpu.concatenate %460, %468, %470 in 0 : vector<8x256xf32>, vector<8x256xf32>, vector<8x256xf32> -> vector<24x256xf32>
    %472 = arith.truncf %471 : vector<24x256xf32> to vector<24x256xbf16>
    %cst_169 = arith.constant dense<0.000000e+00> : vector<24x128xf32>
    %473 = tpu.matmul %472, %343, %cst_169 {dimension_numbers = #tpu.dot_dimension_numbers<[1], [0], [0], [1], [0, 0, 1, 1], [], []>} : vector<24x256xbf16>, vector<256x128xbf16>, vector<24x128xf32> -> vector<24x128xf32>
    %474 = vector.extract_strided_slice %473 {offsets = [0, 0], sizes = [8, 128], strides = [1, 1]} : vector<24x128xf32> to vector<8x128xf32>
    %475 = arith.addf %325, %474 : vector<8x128xf32>
    %476 = vector.broadcast %345 : vector<1x128xf32> to vector<8x128xf32>
    %477 = arith.addf %475, %476 : vector<8x128xf32>
    %478 = vector.extract_strided_slice %473 {offsets = [8, 0], sizes = [8, 128], strides = [1, 1]} : vector<24x128xf32> to vector<8x128xf32>
    %479 = arith.addf %327, %478 : vector<8x128xf32>
    %480 = vector.extract_strided_slice %473 {offsets = [16, 0], sizes = [8, 128], strides = [1, 1]} : vector<24x128xf32> to vector<8x128xf32>
    %481 = arith.addf %329, %480 : vector<8x128xf32>
    %c3 = arith.constant 3 : index
    %c0_170 = arith.constant 0 : index
    %c0_171 = arith.constant 0 : index
    %482 = vector.load %arg4[%c3, %c0_170, %c0_171] : memref<4x1x128xf32, #tpu.memory_space<vmem>>, vector<1x1x128xf32>
    %483 = vector.shape_cast %482 : vector<1x1x128xf32> to vector<1x128xf32>
    %c3_172 = arith.constant 3 : index
    %c0_173 = arith.constant 0 : index
    %c0_174 = arith.constant 0 : index
    %484 = vector.load %arg5[%c3_172, %c0_173, %c0_174] : memref<4x1x128xf32, #tpu.memory_space<vmem>>, vector<1x1x128xf32>
    %485 = vector.shape_cast %484 : vector<1x1x128xf32> to vector<1x128xf32>
    %c3_175 = arith.constant 3 : index
    %c0_176 = arith.constant 0 : index
    %c0_177 = arith.constant 0 : index
    %486 = vector.load %arg6[%c3_175, %c0_176, %c0_177] : memref<4x256x256xbf16, #tpu.memory_space<vmem>>, vector<1x256x256xbf16>
    %487 = vector.shape_cast %486 : vector<1x256x256xbf16> to vector<256x256xbf16>
    %c3_178 = arith.constant 3 : index
    %c0_179 = arith.constant 0 : index
    %c0_180 = arith.constant 0 : index
    %488 = vector.load %arg7[%c3_178, %c0_179, %c0_180] : memref<4x1x256xf32, #tpu.memory_space<vmem>>, vector<1x1x256xf32>
    %489 = vector.shape_cast %488 : vector<1x1x256xf32> to vector<1x256xf32>
    %c3_181 = arith.constant 3 : index
    %c0_182 = arith.constant 0 : index
    %c0_183 = arith.constant 0 : index
    %490 = vector.load %arg8[%c3_181, %c0_182, %c0_183] : memref<4x256x256xbf16, #tpu.memory_space<vmem>>, vector<1x256x256xbf16>
    %491 = vector.shape_cast %490 : vector<1x256x256xbf16> to vector<256x256xbf16>
    %c3_184 = arith.constant 3 : index
    %c0_185 = arith.constant 0 : index
    %c0_186 = arith.constant 0 : index
    %492 = vector.load %arg9[%c3_184, %c0_185, %c0_186] : memref<4x1x256xf32, #tpu.memory_space<vmem>>, vector<1x1x256xf32>
    %493 = vector.shape_cast %492 : vector<1x1x256xf32> to vector<1x256xf32>
    %c3_187 = arith.constant 3 : index
    %c0_188 = arith.constant 0 : index
    %c0_189 = arith.constant 0 : index
    %494 = vector.load %arg10[%c3_187, %c0_188, %c0_189] : memref<4x256x128xbf16, #tpu.memory_space<vmem>>, vector<1x256x128xbf16>
    %495 = vector.shape_cast %494 : vector<1x256x128xbf16> to vector<256x128xbf16>
    %c3_190 = arith.constant 3 : index
    %c0_191 = arith.constant 0 : index
    %c0_192 = arith.constant 0 : index
    %496 = vector.load %arg11[%c3_190, %c0_191, %c0_192] : memref<4x1x128xf32, #tpu.memory_space<vmem>>, vector<1x1x128xf32>
    %497 = vector.shape_cast %496 : vector<1x1x128xf32> to vector<1x128xf32>
    %cst_193 = arith.constant dense<0.000000e+00> : vector<8xf32>
    %498 = vector.multi_reduction <add>, %477, %cst_193 [1] : vector<8x128xf32> to vector<8xf32>
    %499 = vector.shape_cast %498 : vector<8xf32> to vector<8x1xf32>
    %cst_194 = arith.constant 1.280000e+02 : f32
    %500 = vector.broadcast %cst_194 : f32 to vector<8x1xf32>
    %501 = arith.divf %499, %500 : vector<8x1xf32>
    %502 = vector.broadcast %501 : vector<8x1xf32> to vector<8x128xf32>
    %503 = arith.subf %477, %502 : vector<8x128xf32>
    %504 = arith.mulf %503, %503 : vector<8x128xf32>
    %cst_195 = arith.constant dense<0.000000e+00> : vector<8xf32>
    %505 = vector.multi_reduction <add>, %504, %cst_195 [1] : vector<8x128xf32> to vector<8xf32>
    %506 = vector.shape_cast %505 : vector<8xf32> to vector<8x1xf32>
    %cst_196 = arith.constant 1.280000e+02 : f32
    %507 = vector.broadcast %cst_196 : f32 to vector<8x1xf32>
    %508 = arith.divf %506, %507 : vector<8x1xf32>
    %cst_197 = arith.constant 9.99999974E-6 : f32
    %509 = vector.broadcast %cst_197 : f32 to vector<8x1xf32>
    %510 = arith.addf %508, %509 : vector<8x1xf32>
    %511 = math.rsqrt %510 : vector<8x1xf32>
    %512 = vector.broadcast %511 : vector<8x1xf32> to vector<8x128xf32>
    %513 = arith.mulf %503, %512 : vector<8x128xf32>
    %514 = vector.broadcast %483 : vector<1x128xf32> to vector<8x128xf32>
    %515 = arith.mulf %513, %514 : vector<8x128xf32>
    %516 = vector.broadcast %485 : vector<1x128xf32> to vector<8x128xf32>
    %517 = arith.addf %515, %516 : vector<8x128xf32>
    %cst_198 = arith.constant 0.000000e+00 : f32
    %518 = vector.broadcast %cst_198 : f32 to vector<8x128xf32>
    %519 = arith.subf %518, %517 : vector<8x128xf32>
    %520 = math.exp %519 : vector<8x128xf32>
    %cst_199 = arith.constant 1.000000e+00 : f32
    %521 = vector.broadcast %cst_199 : f32 to vector<8x128xf32>
    %522 = arith.addf %521, %520 : vector<8x128xf32>
    %cst_200 = arith.constant 1.000000e+00 : f32
    %523 = vector.broadcast %cst_200 : f32 to vector<8x128xf32>
    %524 = arith.divf %523, %522 : vector<8x128xf32>
    %525 = arith.mulf %517, %524 : vector<8x128xf32>
    %cst_201 = arith.constant 1.000000e+00 : f32
    %526 = vector.broadcast %cst_201 : f32 to vector<8x128xf32>
    %527 = arith.subf %526, %524 : vector<8x128xf32>
    %528 = arith.mulf %517, %527 : vector<8x128xf32>
    %cst_202 = arith.constant 1.000000e+00 : f32
    %529 = vector.broadcast %cst_202 : f32 to vector<8x128xf32>
    %530 = arith.addf %529, %528 : vector<8x128xf32>
    %531 = arith.mulf %524, %530 : vector<8x128xf32>
    %cst_203 = arith.constant dense<0.000000e+00> : vector<8xf32>
    %532 = vector.multi_reduction <add>, %479, %cst_203 [1] : vector<8x128xf32> to vector<8xf32>
    %533 = vector.shape_cast %532 : vector<8xf32> to vector<8x1xf32>
    %cst_204 = arith.constant 1.280000e+02 : f32
    %534 = vector.broadcast %cst_204 : f32 to vector<8x1xf32>
    %535 = arith.divf %533, %534 : vector<8x1xf32>
    %536 = arith.mulf %503, %479 : vector<8x128xf32>
    %cst_205 = arith.constant dense<0.000000e+00> : vector<8xf32>
    %537 = vector.multi_reduction <add>, %536, %cst_205 [1] : vector<8x128xf32> to vector<8xf32>
    %538 = vector.shape_cast %537 : vector<8xf32> to vector<8x1xf32>
    %cst_206 = arith.constant 1.280000e+02 : f32
    %539 = vector.broadcast %cst_206 : f32 to vector<8x1xf32>
    %540 = arith.divf %538, %539 : vector<8x1xf32>
    %541 = vector.broadcast %535 : vector<8x1xf32> to vector<8x128xf32>
    %542 = arith.subf %479, %541 : vector<8x128xf32>
    %543 = vector.broadcast %511 : vector<8x1xf32> to vector<8x128xf32>
    %544 = arith.mulf %542, %543 : vector<8x128xf32>
    %545 = arith.mulf %540, %511 : vector<8x1xf32>
    %546 = arith.mulf %545, %511 : vector<8x1xf32>
    %547 = vector.broadcast %546 : vector<8x1xf32> to vector<8x128xf32>
    %548 = arith.mulf %513, %547 : vector<8x128xf32>
    %549 = arith.subf %544, %548 : vector<8x128xf32>
    %550 = vector.broadcast %483 : vector<1x128xf32> to vector<8x128xf32>
    %551 = arith.mulf %549, %550 : vector<8x128xf32>
    %552 = arith.mulf %531, %551 : vector<8x128xf32>
    %cst_207 = arith.constant dense<0.000000e+00> : vector<8xf32>
    %553 = vector.multi_reduction <add>, %481, %cst_207 [1] : vector<8x128xf32> to vector<8xf32>
    %554 = vector.shape_cast %553 : vector<8xf32> to vector<8x1xf32>
    %cst_208 = arith.constant 1.280000e+02 : f32
    %555 = vector.broadcast %cst_208 : f32 to vector<8x1xf32>
    %556 = arith.divf %554, %555 : vector<8x1xf32>
    %557 = arith.mulf %503, %481 : vector<8x128xf32>
    %cst_209 = arith.constant dense<0.000000e+00> : vector<8xf32>
    %558 = vector.multi_reduction <add>, %557, %cst_209 [1] : vector<8x128xf32> to vector<8xf32>
    %559 = vector.shape_cast %558 : vector<8xf32> to vector<8x1xf32>
    %cst_210 = arith.constant 1.280000e+02 : f32
    %560 = vector.broadcast %cst_210 : f32 to vector<8x1xf32>
    %561 = arith.divf %559, %560 : vector<8x1xf32>
    %562 = vector.broadcast %556 : vector<8x1xf32> to vector<8x128xf32>
    %563 = arith.subf %481, %562 : vector<8x128xf32>
    %564 = vector.broadcast %511 : vector<8x1xf32> to vector<8x128xf32>
    %565 = arith.mulf %563, %564 : vector<8x128xf32>
    %566 = arith.mulf %561, %511 : vector<8x1xf32>
    %567 = arith.mulf %566, %511 : vector<8x1xf32>
    %568 = vector.broadcast %567 : vector<8x1xf32> to vector<8x128xf32>
    %569 = arith.mulf %513, %568 : vector<8x128xf32>
    %570 = arith.subf %565, %569 : vector<8x128xf32>
    %571 = vector.broadcast %483 : vector<1x128xf32> to vector<8x128xf32>
    %572 = arith.mulf %570, %571 : vector<8x128xf32>
    %573 = arith.mulf %531, %572 : vector<8x128xf32>
    %574 = tpu.concatenate %525, %552, %573 in 0 : vector<8x128xf32>, vector<8x128xf32>, vector<8x128xf32> -> vector<24x128xf32>
    %575 = arith.truncf %574 : vector<24x128xf32> to vector<24x128xbf16>
    %576 = tpu.concatenate %575, %25 in 1 : vector<24x128xbf16>, vector<24x128xbf16> -> vector<24x256xbf16>
    %cst_211 = arith.constant dense<0.000000e+00> : vector<24x256xf32>
    %577 = tpu.matmul %576, %487, %cst_211 {dimension_numbers = #tpu.dot_dimension_numbers<[1], [0], [0], [1], [0, 0, 1, 1], [], []>} : vector<24x256xbf16>, vector<256x256xbf16>, vector<24x256xf32> -> vector<24x256xf32>
    %578 = vector.extract_strided_slice %577 {offsets = [0, 0], sizes = [8, 256], strides = [1, 1]} : vector<24x256xf32> to vector<8x256xf32>
    %579 = vector.broadcast %489 : vector<1x256xf32> to vector<8x256xf32>
    %580 = arith.addf %578, %579 : vector<8x256xf32>
    %cst_212 = arith.constant 0.000000e+00 : f32
    %581 = vector.broadcast %cst_212 : f32 to vector<8x256xf32>
    %582 = arith.subf %581, %580 : vector<8x256xf32>
    %583 = math.exp %582 : vector<8x256xf32>
    %cst_213 = arith.constant 1.000000e+00 : f32
    %584 = vector.broadcast %cst_213 : f32 to vector<8x256xf32>
    %585 = arith.addf %584, %583 : vector<8x256xf32>
    %cst_214 = arith.constant 1.000000e+00 : f32
    %586 = vector.broadcast %cst_214 : f32 to vector<8x256xf32>
    %587 = arith.divf %586, %585 : vector<8x256xf32>
    %588 = arith.mulf %580, %587 : vector<8x256xf32>
    %cst_215 = arith.constant 1.000000e+00 : f32
    %589 = vector.broadcast %cst_215 : f32 to vector<8x256xf32>
    %590 = arith.subf %589, %587 : vector<8x256xf32>
    %591 = arith.mulf %580, %590 : vector<8x256xf32>
    %cst_216 = arith.constant 1.000000e+00 : f32
    %592 = vector.broadcast %cst_216 : f32 to vector<8x256xf32>
    %593 = arith.addf %592, %591 : vector<8x256xf32>
    %594 = arith.mulf %587, %593 : vector<8x256xf32>
    %595 = vector.extract_strided_slice %577 {offsets = [8, 0], sizes = [8, 256], strides = [1, 1]} : vector<24x256xf32> to vector<8x256xf32>
    %596 = arith.mulf %594, %595 : vector<8x256xf32>
    %597 = vector.extract_strided_slice %577 {offsets = [16, 0], sizes = [8, 256], strides = [1, 1]} : vector<24x256xf32> to vector<8x256xf32>
    %598 = arith.mulf %594, %597 : vector<8x256xf32>
    %599 = tpu.concatenate %588, %596, %598 in 0 : vector<8x256xf32>, vector<8x256xf32>, vector<8x256xf32> -> vector<24x256xf32>
    %600 = arith.truncf %599 : vector<24x256xf32> to vector<24x256xbf16>
    %cst_217 = arith.constant dense<0.000000e+00> : vector<24x256xf32>
    %601 = tpu.matmul %600, %491, %cst_217 {dimension_numbers = #tpu.dot_dimension_numbers<[1], [0], [0], [1], [0, 0, 1, 1], [], []>} : vector<24x256xbf16>, vector<256x256xbf16>, vector<24x256xf32> -> vector<24x256xf32>
    %602 = vector.extract_strided_slice %601 {offsets = [0, 0], sizes = [8, 256], strides = [1, 1]} : vector<24x256xf32> to vector<8x256xf32>
    %603 = vector.broadcast %493 : vector<1x256xf32> to vector<8x256xf32>
    %604 = arith.addf %602, %603 : vector<8x256xf32>
    %cst_218 = arith.constant 0.000000e+00 : f32
    %605 = vector.broadcast %cst_218 : f32 to vector<8x256xf32>
    %606 = arith.subf %605, %604 : vector<8x256xf32>
    %607 = math.exp %606 : vector<8x256xf32>
    %cst_219 = arith.constant 1.000000e+00 : f32
    %608 = vector.broadcast %cst_219 : f32 to vector<8x256xf32>
    %609 = arith.addf %608, %607 : vector<8x256xf32>
    %cst_220 = arith.constant 1.000000e+00 : f32
    %610 = vector.broadcast %cst_220 : f32 to vector<8x256xf32>
    %611 = arith.divf %610, %609 : vector<8x256xf32>
    %612 = arith.mulf %604, %611 : vector<8x256xf32>
    %cst_221 = arith.constant 1.000000e+00 : f32
    %613 = vector.broadcast %cst_221 : f32 to vector<8x256xf32>
    %614 = arith.subf %613, %611 : vector<8x256xf32>
    %615 = arith.mulf %604, %614 : vector<8x256xf32>
    %cst_222 = arith.constant 1.000000e+00 : f32
    %616 = vector.broadcast %cst_222 : f32 to vector<8x256xf32>
    %617 = arith.addf %616, %615 : vector<8x256xf32>
    %618 = arith.mulf %611, %617 : vector<8x256xf32>
    %619 = vector.extract_strided_slice %601 {offsets = [8, 0], sizes = [8, 256], strides = [1, 1]} : vector<24x256xf32> to vector<8x256xf32>
    %620 = arith.mulf %618, %619 : vector<8x256xf32>
    %621 = vector.extract_strided_slice %601 {offsets = [16, 0], sizes = [8, 256], strides = [1, 1]} : vector<24x256xf32> to vector<8x256xf32>
    %622 = arith.mulf %618, %621 : vector<8x256xf32>
    %623 = tpu.concatenate %612, %620, %622 in 0 : vector<8x256xf32>, vector<8x256xf32>, vector<8x256xf32> -> vector<24x256xf32>
    %624 = arith.truncf %623 : vector<24x256xf32> to vector<24x256xbf16>
    %cst_223 = arith.constant dense<0.000000e+00> : vector<24x128xf32>
    %625 = tpu.matmul %624, %495, %cst_223 {dimension_numbers = #tpu.dot_dimension_numbers<[1], [0], [0], [1], [0, 0, 1, 1], [], []>} : vector<24x256xbf16>, vector<256x128xbf16>, vector<24x128xf32> -> vector<24x128xf32>
    %626 = vector.extract_strided_slice %625 {offsets = [0, 0], sizes = [8, 128], strides = [1, 1]} : vector<24x128xf32> to vector<8x128xf32>
    %627 = arith.addf %477, %626 : vector<8x128xf32>
    %628 = vector.broadcast %497 : vector<1x128xf32> to vector<8x128xf32>
    %629 = arith.addf %627, %628 : vector<8x128xf32>
    %630 = vector.extract_strided_slice %625 {offsets = [8, 0], sizes = [8, 128], strides = [1, 1]} : vector<24x128xf32> to vector<8x128xf32>
    %631 = arith.addf %479, %630 : vector<8x128xf32>
    %632 = vector.extract_strided_slice %625 {offsets = [16, 0], sizes = [8, 128], strides = [1, 1]} : vector<24x128xf32> to vector<8x128xf32>
    %633 = arith.addf %481, %632 : vector<8x128xf32>
    %c0_224 = arith.constant 0 : index
    %c0_225 = arith.constant 0 : index
    %634 = vector.load %arg12[%c0_224, %c0_225] : memref<128x2xf32, #tpu.memory_space<vmem>>, vector<128x2xf32>
    %635 = arith.truncf %634 : vector<128x2xf32> to vector<128x2xbf16>
    %c0_226 = arith.constant 0 : index
    %c0_227 = arith.constant 0 : index
    %636 = vector.load %arg13[%c0_226, %c0_227] : memref<1x2xf32, #tpu.memory_space<vmem>>, vector<1x2xf32>
    %637 = tpu.concatenate %629, %631, %633 in 0 : vector<8x128xf32>, vector<8x128xf32>, vector<8x128xf32> -> vector<24x128xf32>
    %638 = arith.truncf %637 : vector<24x128xf32> to vector<24x128xbf16>
    %cst_228 = arith.constant dense<0.000000e+00> : vector<24x2xf32>
    %639 = tpu.matmul %638, %635, %cst_228 {dimension_numbers = #tpu.dot_dimension_numbers<[1], [0], [0], [1], [0, 0, 1, 1], [], []>} : vector<24x128xbf16>, vector<128x2xbf16>, vector<24x2xf32> -> vector<24x2xf32>
    %640 = vector.extract_strided_slice %639 {offsets = [0, 0], sizes = [8, 2], strides = [1, 1]} : vector<24x2xf32> to vector<8x2xf32>
    %641 = vector.broadcast %636 : vector<1x2xf32> to vector<8x2xf32>
    %642 = arith.addf %640, %641 : vector<8x2xf32>
    %643 = vector.extract_strided_slice %639 {offsets = [8, 0], sizes = [8, 2], strides = [1, 1]} : vector<24x2xf32> to vector<8x2xf32>
    %644 = vector.extract_strided_slice %639 {offsets = [16, 0], sizes = [8, 2], strides = [1, 1]} : vector<24x2xf32> to vector<8x2xf32>
    %645 = arith.subf %0, %642 : vector<8x2xf32>
    %646 = vector.extract_strided_slice %645 {offsets = [0, 0], sizes = [8, 1], strides = [1, 1]} : vector<8x2xf32> to vector<8x1xf32>
    %cst_229 = arith.constant 2.000000e+00 : f32
    %647 = vector.broadcast %cst_229 : f32 to vector<8x1xf32>
    %648 = arith.mulf %647, %646 : vector<8x1xf32>
    %649 = arith.mulf %645, %643 : vector<8x2xf32>
    %cst_230 = arith.constant dense<0.000000e+00> : vector<8xf32>
    %650 = vector.multi_reduction <add>, %649, %cst_230 [1] : vector<8x2xf32> to vector<8xf32>
    %651 = vector.shape_cast %650 : vector<8xf32> to vector<8x1xf32>
    %cst_231 = arith.constant 2.000000e+00 : f32
    %652 = vector.broadcast %cst_231 : f32 to vector<8x1xf32>
    %653 = arith.mulf %652, %651 : vector<8x1xf32>
    %654 = arith.subf %648, %653 : vector<8x1xf32>
    %655 = vector.extract_strided_slice %645 {offsets = [0, 1], sizes = [8, 1], strides = [1, 1]} : vector<8x2xf32> to vector<8x1xf32>
    %cst_232 = arith.constant 2.000000e+00 : f32
    %656 = vector.broadcast %cst_232 : f32 to vector<8x1xf32>
    %657 = arith.mulf %656, %655 : vector<8x1xf32>
    %658 = arith.mulf %645, %644 : vector<8x2xf32>
    %cst_233 = arith.constant dense<0.000000e+00> : vector<8xf32>
    %659 = vector.multi_reduction <add>, %658, %cst_233 [1] : vector<8x2xf32> to vector<8xf32>
    %660 = vector.shape_cast %659 : vector<8xf32> to vector<8x1xf32>
    %cst_234 = arith.constant 2.000000e+00 : f32
    %661 = vector.broadcast %cst_234 : f32 to vector<8x1xf32>
    %662 = arith.mulf %661, %660 : vector<8x1xf32>
    %663 = arith.subf %657, %662 : vector<8x1xf32>
    %c0_235 = arith.constant 0 : index
    %c0_236 = arith.constant 0 : index
    %664 = vector.load %arg14[%c0_235, %c0_236] : memref<8x2xf32, #tpu.memory_space<vmem>>, vector<8x1xf32>
    tpu.vector_store %arg14[%c0_235, %c0_236], %654 {strides = array<i32>} : memref<8x2xf32, #tpu.memory_space<vmem>>, vector<8x1xf32>,
    %c0_237 = arith.constant 0 : index
    %c1_238 = arith.constant 1 : index
    %665 = vector.load %arg14[%c0_237, %c1_238] : memref<8x2xf32, #tpu.memory_space<vmem>>, vector<8x1xf32>
    tpu.vector_store %arg14[%c0_237, %c1_238], %663 {strides = array<i32>} : memref<8x2xf32, #tpu.memory_space<vmem>>, vector<8x1xf32>,
    return
  }
}

</mosaic_0001>

<bundles_post_ra>
// kernel: energy_mlp_forward.1
= control target key start
LH: loop header
LB: loop body
LE: loop exit
PB: predicated region body
PF: predicated region fallthrough
CT: control target
= control target key end

     0   :  { %19 = vsyncpa [#allocation3], 0  ;;  %s5089_s0 = inlined_call_operand.vmem [shape: f32[8,2], index: 0, kind: input, shape index: {}]   ;;  %s5090_s1 = inlined_call_operand.vmem [shape: f32[8,128], index: 1, kind: input, shape index: {}]   ;;  %s5091_s2 = inlined_call_operand.vmem [shape: f32[2,128], index: 2, kind: input, shape index: {}]   ;;  %s5092_s3 = inlined_call_operand.vmem [shape: f32[1,128], index: 3, kind: input, shape index: {}]   ;;  %s5093_s4 = inlined_call_operand.vmem [shape: f32[4,1,128], index: 4, kind: input, shape index: {}]   ;;  %s5094_s5 = inlined_call_operand.vmem [shape: f32[4,1,128], index: 5, kind: input, shape index: {}]   ;;  %s5095_s6 = inlined_call_operand.hbm [shape: bf16[4,256,256], index: 6, kind: input, shape index: {}]   ;;  %s5096_s7 = inlined_call_operand.vmem [shape: f32[4,1,256], index: 7, kind: input, shape index: {}]   ;;  %s5097_s8 = inlined_call_operand.hbm [shape: bf16[4,256,256], index: 8, kind: input, shape index: {}]   ;;  %s5098_s9 = inlined_call_operand.vmem [shape: f32[4,1,256], index: 9, kind: input, shape index: {}]   ;;  %s5099_s10 = inlined_call_operand.hbm [shape: bf16[4,256,128], index: 10, kind: input, shape index: {}]   ;;  %s5100_s11 = inlined_call_operand.vmem [shape: f32[4,1,128], index: 11, kind: input, shape index: {}]   ;;  %s5101_s12 = inlined_call_operand.vmem [shape: f32[128,2], index: 12, kind: input, shape index: {}]   ;;  %s5102_s13 = inlined_call_operand.vmem [shape: f32[1,2], index: 13, kind: input, shape index: {}]   ;;  %s5103_s14 = inlined_call_operand.vmem [shape: f32[8,2], index: 14, kind: output, shape index: {}]  }
   0x1   :  { %20 = vsyncpa [#allocation5], 0  ;;  %s4695_s29 = smov [#allocation4]   ;;  %s4696_s15 = smov [#allocation2]  }
   0x2   :  { %s52_s30 = sshll.u32 %s4695_s29, 4  ;;  %s38_s16 = sshll.u32 %s4696_s15, 4  ;;  %s53_s30 = int_to_ptr.vmem [resolvable:$true] %s52_s30  ;;  %s4779_s16 = int_to_ptr.vmem [resolvable:$true] %s38_s16 }
   0x3   :  { %s4625_s19 = scalar_lea.hbm %s5097_s8, 16384 }
   0x4   :  { %p4626_p0 = scmp.ne.s32.totalorder %s5097_s8, %s4625_s19  ;;  %p4629_p1 = scmp.lt.u32.totalorder %s4625_s19, %s5097_s8 }
   0x6   :  { %p4631_p2 = pnand %p4629_p1, %p4626_p0 }
   0x8   :  { %4634 = shalt.err (!%p4631_p2)
}
   0x9   :  { %s4635_s24 = scalar_lea.vmem %s53_s30, 16384  ;;  %p4640_p4 = scmp.lt.s32.totalorder %s53_s30, %s53_s30 }
   0xa   :  { %p4636_p3 = scmp.ne.s32.totalorder %s53_s30, %s4635_s24  ;;  %p4641_p5 = scmp.lt.s32.totalorder %s4635_s24, %s4635_s24 }
   0xc   :  { %p4642_p6 = por %p4641_p5, %p4640_p4 }
   0xe   :  { %p4643_p7 = pnand %p4642_p6, %p4636_p3 }
  0x10   :  { %4646 = shalt.err (!%p4643_p7)
}
  0x11   :  { %s4697_s25 = smov 128   ;;  %s4698_s26 = smov 8  }
  0x12   :  { %58 = dma.hbm_to_vmem [thread:$0]  %s5097_s8, 16384, %s53_s30, [#allocation5], %s4697_s25, %s4697_s25, %s4698_s26  }
  0x13   :  { %s4647_s17 = scalar_lea.hbm %s5095_s6, 16384 }
  0x14   :  { %p4648_p8 = scmp.ne.s32.totalorder %s5095_s6, %s4647_s17  ;;  %p4651_p9 = scmp.lt.u32.totalorder %s4647_s17, %s5095_s6 }
  0x16   :  { %p4653_p10 = pnand %p4651_p9, %p4648_p8 }
  0x18   :  { %4656 = shalt.err (!%p4653_p10)
}
  0x19   :  { %s4657_s22 = scalar_lea.vmem %s4779_s16, 16384  ;;  %p4662_p12 = scmp.lt.s32.totalorder %s4779_s16, %s4779_s16 }
  0x1a   :  { %p4658_p11 = scmp.ne.s32.totalorder %s4779_s16, %s4657_s22  ;;  %p4663_p13 = scmp.lt.s32.totalorder %s4657_s22, %s4657_s22 }
  0x1c   :  { %p4664_p0 = por %p4663_p13, %p4662_p12 }
  0x1e   :  { %p4665_p1 = pnand %p4664_p0, %p4658_p11 }
  0x20   :  { %4668 = shalt.err (!%p4665_p1)
}
  0x21   :  { %44 = dma.hbm_to_vmem [thread:$0]  %s5095_s6, 16384, %s4779_s16, [#allocation3], %s4697_s25, %s4697_s25, %s4698_s26  }
  0x22   :  { %s4699_s23 = smov [#allocation6]   ;;  %s4669_s29 = scalar_lea.hbm %s5099_s10, 8192 }
  0x23   :  { %s66_s24 = sshll.u32 %s4699_s23, 4  ;;  %p4670_p2 = scmp.ne.s32.totalorder %s5099_s10, %s4669_s29  ;;  %s67_s24 = int_to_ptr.vmem [resolvable:$true] %s66_s24 }
  0x24   :  { %p4673_p3 = scmp.lt.u32.totalorder %s4669_s29, %s5099_s10 }
  0x26   :  { %p4675_p4 = pnand %p4673_p3, %p4670_p2 }
  0x28   :  { %4678 = shalt.err (!%p4675_p4)
}
  0x29   :  { %s4679_s20 = scalar_lea.vmem %s67_s24, 8192  ;;  %p4684_p6 = scmp.lt.s32.totalorder %s67_s24, %s67_s24 }
  0x2a   :  { %p4680_p5 = scmp.ne.s32.totalorder %s67_s24, %s4679_s20  ;;  %p4685_p7 = scmp.lt.s32.totalorder %s4679_s20, %s4679_s20 }
  0x2c   :  { %p4686_p8 = por %p4685_p7, %p4684_p6 }
  0x2e   :  { %p4687_p9 = pnand %p4686_p8, %p4680_p5 }
  0x30   :  { %4690 = shalt.err (!%p4687_p9)
}
  0x31   :  { %s4700_s6 = smov 64   ;;  %s4701_s16 = smov 4  }
  0x32   :  { %72 = dma.hbm_to_vmem [thread:$0]  %s5099_s10, 8192, %s67_s24, [#allocation5], %s4700_s6, %s4700_s6, %s4701_s16  }
  0x33   :  { %4691 = dma.done.wait [#allocation3], 16384  }
  0x34   :  { %4692 = vsyncadd [#allocation3], 4294950912 }
  0x35   :  { %4693 = dma.done.wait [#allocation5], 24576  }
  0x36   :  { %4694 = vsyncadd [#allocation5], 4294942720  ;;  %v4702_v0 = vmov 0   ;;  %v89_v1 = vld [vmem:[%s5089_s0] sm:$0xff]  ;;  %v4703_v2 = vmov 1   ;;  %v98_v3 = vlaneseq  ;;  %vm121_vm0 = vcmask 1043456  }
  0x37   :  { %4086 = vset.pattern.permute.xlu0 %v4702_v0  ;;  %v91_v6 = vld [vmem:[%s5091_s2] sm:$0x3]  ;;  %v4088_v17 = vld [vmem:[#allocation2 + $0x4] ss:$8 sps:$4 sm:$0xff]   ;;  %v4091_v25 = vld [vmem:[#allocation2 + $0x14] ss:$8 sps:$4 sm:$0xff]  }
  0x38   :  { %95 = vperm.xlu0 %4086, %v89_v1   ;;  %v99_v4 = vshrl.u32 %v98_v3, 7  ;;  %v3582_v14 = vld [vmem:[%s5092_s3] ss:$0 sm:$0xff]  ;;  %456 = vmatprep.subr.bf16.mxu0 %v4088_v17  ;;  %v4093_v26 = vld [vmem:[#allocation2 + $0x10] ss:$8 sps:$4 sm:$0xff]   ;;  %vm3560_vm1 = vcmask 15360  }
  0x39   :  { %v4090_v18 = vld [vmem:[#allocation2] ss:$8 sps:$4 sm:$0xff]   ;;  %v4094_v27 = vld [vmem:[#allocation2 + $0x24] ss:$8 sps:$4 sm:$0xff]   ;;  %v4097_v29 = vld [vmem:[#allocation2 + $0x34] ss:$8 sps:$4 sm:$0xff]  }
  0x3a   :  { %v4826_v5 = vsub.s32 0, %v99_v4  ;;  %v4835_v8 = vsub.s32 1, %v99_v4  ;;  %457 = vmatpush1.bf16.msra.mxu0 %v4090_v18  ;;  %v4096_v28 = vld [vmem:[#allocation2 + $0x20] ss:$8 sps:$4 sm:$0xff]   ;;  %v4099_v30 = vld [vmem:[#allocation2 + $0x30] ss:$8 sps:$4 sm:$0xff]  }
  0x3b   :  { %458 = vmatprep.subr.bf16.mxu0 %v4091_v25  ;;  %v4100_v31 = vld [vmem:[#allocation2 + $0x44] ss:$8 sps:$4 sm:$0xff]   ;;  %v4102_v32 = vld [vmem:[#allocation2 + $0x40] ss:$8 sps:$4 sm:$0xff]   ;;  %v4103_v33 = vld [vmem:[#allocation2 + $0x54] ss:$8 sps:$4 sm:$0xff]  }
  0x3c   :  { %4087 = vset.pattern.permute.xlu0 %v4703_v2  ;;  %v4832_v7 = vrot.slane %v91_v6, %v4826_v5  ;;  %v4838_v10 = vrot.slane %v91_v6, %v4835_v8  ;;  %v4105_v34 = vld [vmem:[#allocation2 + $0x50] ss:$8 sps:$4 sm:$0xff]   ;;  %v4106_v35 = vld [vmem:[#allocation2 + $0x64] ss:$8 sps:$4 sm:$0xff]   ;;  %v4108_v36 = vld [vmem:[#allocation2 + $0x60] ss:$8 sps:$4 sm:$0xff]  }
  0x3d   :  { %104 = vperm.xlu0 %4087, %v89_v1   ;;  %v4109_v37 = vld [vmem:[#allocation2 + $0x74] ss:$8 sps:$4 sm:$0xff]   ;;  %v4111_v38 = vld [vmem:[#allocation2 + $0x70] ss:$8 sps:$4 sm:$0xff]   ;;  %v4112_v39 = vld [vmem:[#allocation2 + $0x84] ss:$8 sps:$4 sm:$0xff]  }
  0x3e   :  { %459 = vmatpush1.bf16.msra.mxu0 %v4093_v26  ;;  %v4114_v40 = vld [vmem:[#allocation2 + $0x80] ss:$8 sps:$4 sm:$0xff]   ;;  %v4115_v41 = vld [vmem:[#allocation2 + $0x94] ss:$8 sps:$4 sm:$0xff]   ;;  %v4117_v44 = vld [vmem:[#allocation2 + $0x90] ss:$8 sps:$4 sm:$0xff]  }
  0x3f   :  { %460 = vmatprep.subr.bf16.mxu0 %v4094_v27  ;;  %v90_v42 = vld [vmem:[%s5090_s1] sm:$0xff]  ;;  %v4121_v47 = vld [vmem:[#allocation2 + $0xb4] ss:$8 sps:$4 sm:$0xff]   ;;  %v4123_v48 = vld [vmem:[#allocation2 + $0xb0] ss:$8 sps:$4 sm:$0xff]   ;;  %vm3572_vm2 = vcmask 7168  }
  0x40   :  { %v4861_v43 = vpack.c.bf16 %v90_v42, %v90_v42  ;;  %v4118_v45 = vld [vmem:[#allocation2 + $0xa4] ss:$8 sps:$4 sm:$0xff]   ;;  %v4120_v46 = vld [vmem:[#allocation2 + $0xa0] ss:$8 sps:$4 sm:$0xff]   ;;  %v4127_v51 = vld [vmem:[#allocation2 + $0xd4] ss:$8 sps:$4 sm:$0xff]  }
  0x41   :  { %v4124_v49 = vld [vmem:[#allocation2 + $0xc4] ss:$8 sps:$4 sm:$0xff]   ;;  %v4126_v50 = vld [vmem:[#allocation2 + $0xc0] ss:$8 sps:$4 sm:$0xff]   ;;  %v4129_v52 = vld [vmem:[#allocation2 + $0xd0] ss:$8 sps:$4 sm:$0xff]  }
  0x42   :  { %461 = vmatpush1.bf16.msra.mxu0 %v4096_v28  ;;  %3617 = vmatprep.mubr.msk.bf16.mxu0 %vm121_vm0, %v4861_v43  ;;  %v4130_v53 = vld [vmem:[#allocation2 + $0xe4] ss:$8 sps:$4 sm:$0xff]   ;;  %v4132_v54 = vld [vmem:[#allocation2 + $0xe0] ss:$8 sps:$4 sm:$0xff]   ;;  %v4133_v55 = vld [vmem:[#allocation2 + $0xf4] ss:$8 sps:$4 sm:$0xff]  }
  0x43   :  { %462 = vmatprep.subr.bf16.mxu0 %v4097_v29  ;;  %v4135_v56 = vld [vmem:[#allocation2 + $0xf0] ss:$8 sps:$4 sm:$0xff]   ;;  %v4136_v57 = vld [vmem:[#allocation4 + $0x4] ss:$8 sps:$4 sm:$0xff]   ;;  %v4138_v58 = vld [vmem:[#allocation4] ss:$8 sps:$4 sm:$0xff]  }
  0x44   :  { %v4139_v59 = vld [vmem:[#allocation4 + $0x14] ss:$8 sps:$4 sm:$0xff]   ;;  %710 = vmatprep.subr.bf16.mxu1 %v4136_v57  ;;  %v4141_v60 = vld [vmem:[#allocation4 + $0x10] ss:$8 sps:$4 sm:$0xff]   ;;  %v4142_v61 = vld [vmem:[#allocation4 + $0x24] ss:$8 sps:$4 sm:$0xff]  }
  0x45   :  { %711 = vmatpush1.bf16.msra.mxu1 %v4138_v58  ;;  %v4144_v62 = vld [vmem:[#allocation4 + $0x20] ss:$8 sps:$4 sm:$0xff]   ;;  %v4145_v63 = vld [vmem:[#allocation4 + $0x34] ss:$8 sps:$4 sm:$0xff]   ;;  %v4147_v1 = vld [vmem:[#allocation4 + $0x30] ss:$8 sps:$4 sm:$0xff]  }
  0x46   :  { %463 = vmatpush1.bf16.msra.mxu0 %v4099_v30  ;;  %712 = vmatprep.subr.bf16.mxu1 %v4139_v59  ;;  %v4148_v2 = vld [vmem:[#allocation4 + $0x44] ss:$8 sps:$4 sm:$0xff]   ;;  %v4150_v3 = vld [vmem:[#allocation4 + $0x40] ss:$8 sps:$4 sm:$0xff]   ;;  %v4157_v59 = vld [vmem:[#allocation4 + $0x74] ss:$8 sps:$4 sm:$0xff]  }
  0x47   :  { %464 = vmatprep.subr.bf16.mxu0 %v4100_v31  ;;  %v4154_v57 = vld [vmem:[#allocation4 + $0x64] ss:$8 sps:$4 sm:$0xff]   ;;  %v4156_v58 = vld [vmem:[#allocation4 + $0x60] ss:$8 sps:$4 sm:$0xff]   ;;  %vm3574_vm3 = vcmask 15368  }
  0x49   :  { %713 = vmatpush1.bf16.msra.mxu1 %v4141_v60  ;;  %v4159_v60 = vld [vmem:[#allocation4 + $0x70] ss:$8 sps:$4 sm:$0xff]  }
  0x4a   :  { %465 = vmatpush1.bf16.msra.mxu0 %v4102_v32  ;;  %714 = vmatprep.subr.bf16.mxu1 %v4142_v61  ;;  %v4160_v61 = vld [vmem:[#allocation4 + $0x84] ss:$8 sps:$4 sm:$0xff]  }
  0x4b   :  { %466 = vmatprep.subr.bf16.mxu0 %v4103_v33 }
  0x4d   :  { %715 = vmatpush1.bf16.msra.mxu1 %v4144_v62  ;;  %v4162_v62 = vld [vmem:[#allocation4 + $0x80] ss:$8 sps:$4 sm:$0xff]  }
  0x4e   :  { %467 = vmatpush1.bf16.msra.mxu0 %v4105_v34  ;;  %716 = vmatprep.subr.bf16.mxu1 %v4145_v63  ;;  %v4163_v63 = vld [vmem:[#allocation4 + $0x94] ss:$8 sps:$4 sm:$0xff]  }
  0x4f   :  { %468 = vmatprep.subr.bf16.mxu0 %v4106_v35 }
  0x51   :  { %717 = vmatpush1.bf16.msra.mxu1 %v4147_v1  ;;  %v4165_v1 = vld [vmem:[#allocation4 + $0x90] ss:$8 sps:$4 sm:$0xff]  }
  0x52   :  { %469 = vmatpush1.bf16.msra.mxu0 %v4108_v36  ;;  %718 = vmatprep.subr.bf16.mxu1 %v4148_v2  ;;  %v4166_v2 = vld [vmem:[#allocation4 + $0xa4] ss:$8 sps:$4 sm:$0xff]  }
  0x53   :  { %470 = vmatprep.subr.bf16.mxu0 %v4109_v37 }
  0x55   :  { %719 = vmatpush1.bf16.msra.mxu1 %v4150_v3  ;;  %v4168_v3 = vld [vmem:[#allocation4 + $0xa0] ss:$8 sps:$4 sm:$0xff]  }
  0x56   :  { %471 = vmatpush1.bf16.msra.mxu0 %v4111_v38 }
  0x57   :  { %472 = vmatprep.subr.bf16.mxu0 %v4112_v39 }
  0x5a   :  { %473 = vmatpush1.bf16.msra.mxu0 %v4114_v40 }
  0x5b   :  { %474 = vmatprep.subr.bf16.mxu0 %v4115_v41 }
  0x5c   :  { %264 = vadd.xlane.f32.xlu0 %v4832_v7 }
  0x5e   :  { %475 = vmatpush1.bf16.msra.mxu0 %v4117_v44 }
  0x5f   :  { %476 = vmatprep.subr.bf16.mxu0 %v4118_v45 }
  0x62   :  { %477 = vmatpush1.bf16.msra.mxu0 %v4120_v46 }
  0x63   :  { %478 = vmatprep.subr.bf16.mxu0 %v4121_v47 }
  0x66   :  { %479 = vmatpush1.bf16.msra.mxu0 %v4123_v48 }
  0x67   :  { %480 = vmatprep.subr.bf16.mxu0 %v4124_v49 }
  0x6a   :  { %481 = vmatpush1.bf16.msra.mxu0 %v4126_v50 }
  0x6b   :  { %482 = vmatprep.subr.bf16.mxu0 %v4127_v51 }
  0x6e   :  { %483 = vmatpush1.bf16.msra.mxu0 %v4129_v52 }
  0x6f   :  { %484 = vmatprep.subr.bf16.mxu0 %v4130_v53 }
  0x72   :  { %485 = vmatpush1.bf16.msra.mxu0 %v4132_v54 }
  0x73   :  { %486 = vmatprep.subr.bf16.mxu0 %v4133_v55  ;;  %v4151_v55 = vld [vmem:[#allocation4 + $0x54] ss:$8 sps:$4 sm:$0xff]  }
  0x74   :  { %720 = vmatprep.subr.bf16.mxu1 %v4151_v55 }
  0x76   :  { %487 = vmatpush1.bf16.msra.mxu0 %v4135_v56  ;;  %v4153_v56 = vld [vmem:[#allocation4 + $0x50] ss:$8 sps:$4 sm:$0xff]  }
  0x77   :  { %721 = vmatpush1.bf16.msra.mxu1 %v4153_v56 }
  0x78   :  { %722 = vmatprep.subr.bf16.mxu1 %v4154_v57 }
  0x7b   :  { %723 = vmatpush1.bf16.msra.mxu1 %v4156_v58 }
  0x7c   :  { %724 = vmatprep.subr.bf16.mxu1 %v4157_v59 }
  0x7f   :  { %725 = vmatpush1.bf16.msra.mxu1 %v4159_v60 }
  0x80   :  { %726 = vmatprep.subr.bf16.mxu1 %v4160_v61  ;;  %v4184_v61 = vld [vmem:[#allocation6 + $0x40] sm:$0xff]  }
  0x81   :  { %3935 = vmatprep.subr.bf16.mxu0 %v4184_v61 }
  0x83   :  { %727 = vmatpush1.bf16.msra.mxu1 %v4162_v62  ;;  %v4185_v62 = vld [vmem:[#allocation6] sm:$0xff]  }
  0x84   :  { %728 = vmatprep.subr.bf16.mxu1 %v4163_v63  ;;  %v4186_v63 = vld [vmem:[#allocation6 + $0x48] sm:$0xff]  }
  0x87   :  { %729 = vmatpush1.bf16.msra.mxu1 %v4165_v1  ;;  %v4187_v1 = vld [vmem:[#allocation6 + $0x8] sm:$0xff]  }
  0x88   :  { %730 = vmatprep.subr.bf16.mxu1 %v4166_v2  ;;  %v4188_v2 = vld [vmem:[#allocation6 + $0x50] sm:$0xff]  }
  0x8b   :  { %731 = vmatpush1.bf16.msra.mxu1 %v4168_v3  ;;  %v4189_v3 = vld [vmem:[#allocation6 + $0x10] sm:$0xff]  }
  0xb7   :  { %v96_v9 = vpop.permute.xlu0 %95 }
  0xb8   :  { %v102_v12 = vmul.f32 %v4832_v7, %v96_v9 }
  0xbc   :  { %v105_v11 = vpop.permute.xlu0 %104 }
  0xbd   :  { %v111_v13 = vmul.f32 %v4838_v10, %v105_v11 }
  0xbf   :  { %v112_v15 = vadd.f32 %v111_v13, %v102_v12  ;;  %v3583_v12 = vld [vmem:[%s5093_s4] ss:$0 sm:$0xff] }
  0xc1   :  { %v4845_v16 = vadd.f32 %v3582_v14, %v112_v15  ;;  %v3584_v14 = vld [vmem:[%s5094_s5] ss:$0 sm:$0xff] }
  0xc3   :  { %227 = vadd.xlane.f32.xlu1 %v4845_v16 }
  0xe9   :  { %v265_v26 = vpop.xlane.xlu0 %264 }
  0xea   :  { %v266_v28 = vmul.f32 0.0078125, %v265_v26 }
  0xec   :  { %v271_v32 = vsub.f32 %v4832_v7, %v266_v28 }
 0x150   :  { %v228_v19 = vpop.xlane.xlu1 %227 }
 0x151   :  { %v230_v20 = vmul.f32 0.0078125, %v228_v19 }
 0x153   :  { %v4849_v21 = vsub.f32 %v4845_v16, %v230_v20 }
 0x155   :  { %v232_v22 = vmul.f32 %v4849_v21, %v4849_v21  ;;  %v267_v23 = vmul.f32 %v4849_v21, %v4832_v7  ;;  %v282_v24 = vmul.f32 %v4849_v21, %v4838_v10 }
 0x157   :  { %233 = vadd.xlane.f32.xlu1 %v232_v22 }
 0x15b   :  { %268 = vadd.xlane.f32.xlu1 %v267_v23 }
 0x15f   :  { %283 = vadd.xlane.f32.xlu1 %v282_v24 }
 0x163   :  { %279 = vadd.xlane.f32.xlu1 %v4838_v10 }
 0x1e4   :  { %v234_v4 = vpop.xlane.xlu1 %233 }
 0x1e5   :  { %v235_v6 = vmul.f32 0.0078125, %v234_v4  ;;  %v4169_v4 = vld [vmem:[#allocation4 + $0xb4] ss:$8 sps:$4 sm:$0xff]  }
 0x1e6   :  { %732 = vmatprep.subr.bf16.mxu1 %v4169_v4  ;;  %v4190_v4 = vld [vmem:[#allocation6 + $0x58] sm:$0xff]  }
 0x1e7   :  { %v236_v9 = vadd.f32 1e-05, %v235_v6  ;;  %v4171_v6 = vld [vmem:[#allocation4 + $0xb0] ss:$8 sps:$4 sm:$0xff]  }
 0x1e8   :  { %v269_v20 = vpop.xlane.xlu1 %268  ;;  %733 = vmatpush1.bf16.msra.mxu1 %v4171_v6  ;;  %v4191_v6 = vld [vmem:[#allocation6 + $0x18] sm:$0xff]  }
 0x1e9   :  { %4536 = vrsqrt.f32 %v236_v9  ;;  %v270_v24 = vmul.f32 0.0078125, %v269_v20  ;;  %v4172_v9 = vld [vmem:[#allocation4 + $0xc4] ss:$8 sps:$4 sm:$0xff]  }
 0x1ea   :  { %734 = vmatprep.subr.bf16.mxu1 %v4172_v9  ;;  %v4192_v9 = vld [vmem:[#allocation6 + $0x60] sm:$0xff]  }
 0x1ec   :  { %v284_v25 = vpop.xlane.xlu1 %283 }
 0x1f0   :  { %v280_v30 = vpop.xlane.xlu1 %279 }
 0x1f1   :  { %v281_v34 = vmul.f32 0.0078125, %v280_v30 }
 0x1f3   :  { %v4537_v11 = vpop.eup %4536  ;;  %v286_v40 = vsub.f32 %v4838_v10, %v281_v34 }
 0x1f4   :  { %v238_v13 = vmul.f32 %v4537_v11, %v4849_v21  ;;  %v273_v27 = vmul.f32 %v4537_v11, %v270_v24  ;;  %v285_v21 = vmul.f32 0.0078125, %v284_v25  ;;  %v272_v37 = vmul.f32 %v4537_v11, %v271_v32 }
 0x1f5   :  { %v287_v45 = vmul.f32 %v4537_v11, %v286_v40 }
 0x1f6   :  { %v245_v15 = vmul.f32 %v3583_v12, %v238_v13  ;;  %v274_v29 = vmul.f32 %v4537_v11, %v273_v27  ;;  %v288_v31 = vmul.f32 %v4537_v11, %v285_v21 }
 0x1f8   :  { %v252_v17 = vadd.f32 %v3584_v14, %v245_v15  ;;  %v275_v33 = vmul.f32 %v274_v29, %v238_v13  ;;  %v289_v36 = vmul.f32 %v4537_v11, %v288_v31  ;;  %v4174_v11 = vld [vmem:[#allocation4 + $0xc0] ss:$8 sps:$4 sm:$0xff]   ;;  %v4178_v14 = vld [vmem:[#allocation4 + $0xe4] ss:$8 sps:$4 sm:$0xff]  }
 0x1f9   :  { %735 = vmatpush1.bf16.msra.mxu1 %v4174_v11  ;;  %v4180_v15 = vld [vmem:[#allocation4 + $0xe0] ss:$8 sps:$4 sm:$0xff]  }
 0x1fa   :  { %v253_v18 = vsub.f32 0.0, %v252_v17  ;;  %v276_v39 = vsub.f32 %v272_v37, %v275_v33  ;;  %v290_v42 = vmul.f32 %v289_v36, %v238_v13  ;;  %v4177_v13 = vld [vmem:[#allocation4 + $0xd0] ss:$8 sps:$4 sm:$0xff]   ;;  %v4193_v11 = vld [vmem:[#allocation6 + $0x20] sm:$0xff]  }
 0x1fc   :  { %v254_v19 = vmul.f32 1.442695, %v253_v18  ;;  %v277_v47 = vmul.f32 %v3583_v12, %v276_v39  ;;  %v291_v48 = vsub.f32 %v287_v45, %v290_v42  ;;  %v4183_v18 = vld [vmem:[#allocation4 + $0xf0] ss:$8 sps:$4 sm:$0xff]  }
 0x1fe   :  { %4538 = vpow2.f32 %v254_v19  ;;  %v292_v52 = vmul.f32 %v3583_v12, %v291_v48  ;;  %v4175_v12 = vld [vmem:[#allocation4 + $0xd4] ss:$8 sps:$4 sm:$0xff]   ;;  %v160_v19 = vld [vmem:[%s5096_s7] sm:$0x3] }
 0x1ff   :  { %736 = vmatprep.subr.bf16.mxu1 %v4175_v12  ;;  %v511_v20 = vrot.slane %v160_v19, %v4826_v5  ;;  %v4194_v12 = vld [vmem:[#allocation6 + $0x68] sm:$0xff]  }
 0x200   :  { %737 = vmatpush1.bf16.msra.mxu1 %v4177_v13  ;;  %v4195_v13 = vld [vmem:[#allocation6 + $0x28] sm:$0xff]  }
 0x201   :  { %738 = vmatprep.subr.bf16.mxu1 %v4178_v14  ;;  %v4196_v14 = vld [vmem:[#allocation6 + $0x70] sm:$0xff]  }
 0x204   :  { %739 = vmatpush1.bf16.msra.mxu1 %v4180_v15  ;;  %v4197_v15 = vld [vmem:[#allocation6 + $0x30] sm:$0xff]  }
 0x208   :  { %v4539_v22 = vpop.eup %4538 }
 0x209   :  { %v256_v23 = vadd.f32 1.0, %v4539_v22  ;;  %v515_v22 = vrot.slane %v160_v19, %v4835_v8  ;;  %v193_v19 = vld [vmem:[%s5098_s9] sm:$0x3] }
 0x20b   :  { %4540 = vrcp.f32 %v256_v23 }
 0x215   :  { %v4541_v35 = vpop.eup %4540 }
 0x216   :  { %v260_v38 = vsub.f32 1.0, %v4541_v35  ;;  %v259_v49 = vmul.f32 %v4541_v35, %v252_v17 }
 0x218   :  { %v261_v41 = vmul.f32 %v260_v38, %v252_v17  ;;  %v4181_v17 = vld [vmem:[#allocation4 + $0xf4] ss:$8 sps:$4 sm:$0xff]  }
 0x219   :  { %740 = vmatprep.subr.bf16.mxu1 %v4181_v17  ;;  %v4198_v17 = vld [vmem:[#allocation6 + $0x78] sm:$0xff]  }
 0x21a   :  { %v262_v44 = vadd.f32 1.0, %v261_v41  ;;  %741 = vmatpush1.bf16.msra.mxu1 %v4183_v18  ;;  %v4199_v18 = vld [vmem:[#allocation6 + $0x38] sm:$0xff]  }
 0x21c   :  { %v263_v46 = vmul.f32 %v4541_v35, %v262_v44 }
 0x21e   :  { %v278_v50 = vmul.f32 %v277_v47, %v263_v46  ;;  %v293_v53 = vmul.f32 %v292_v52, %v263_v46 }
 0x220   :  { %v294_v51 = vpack.c.bf16 %v278_v50, %v259_v49  ;;  %v295_v54 = vpack.c.bf16 %v293_v53, %v293_v53 }
 0x222   :  { %489 = vmatmul.mubr.bf16.vlgmr.msra.gmra.mrb[0].mxu0 %v294_v51 }
 0x223   :  { %498 = vmatprep.mubr.bf16.mxu0 %v4702_v0  ;;  %3936 = vmatpush3.bf16.msra.mxu0 %v4185_v62 }
 0x224   :  { %3937 = vmatprep.subr.bf16.mxu0 %v4186_v63 }
 0x227   :  { %3938 = vmatpush3.bf16.msra.mxu0 %v4187_v1 }
 0x228   :  { %3939 = vmatprep.subr.bf16.mxu0 %v4188_v2 }
 0x22a   :  { %499 = vmatmul.mubr.bf16.gmra.mrb[4].mxu0 %v295_v54 }
 0x22b   :  { %3940 = vmatpush3.bf16.msra.mxu0 %v4189_v3  ;;  %v3666_v3 = vld [vmem:[%s5100_s11] ss:$0 sm:$0xff] }
 0x22c   :  { %3941 = vmatprep.subr.bf16.mxu0 %v4190_v4 }
 0x22f   :  { %3942 = vmatpush3.bf16.msra.mxu0 %v4191_v6 }
 0x230   :  { %3943 = vmatprep.subr.bf16.mxu0 %v4192_v9 }
 0x233   :  { %3944 = vmatpush3.bf16.msra.mxu0 %v4193_v11 }
 0x234   :  { %3945 = vmatprep.subr.bf16.mxu0 %v4194_v12 }
 0x237   :  { %3946 = vmatpush3.bf16.msra.mxu0 %v4195_v13 }
 0x238   :  { %3947 = vmatprep.subr.bf16.mxu0 %v4196_v14 }
 0x23b   :  { %3948 = vmatpush3.bf16.msra.mxu0 %v4197_v15 }
 0x23c   :  { %3949 = vmatprep.subr.bf16.mxu0 %v4198_v17  ;;  %v4200_v17 = vld [vmem:[#allocation2 + $0x100] ss:$8 sps:$4 sm:$0xff]  }
 0x23f   :  { %3950 = vmatpush3.bf16.msra.mxu0 %v4199_v18  ;;  %v4202_v18 = vld [vmem:[#allocation2 + $0x104] ss:$8 sps:$4 sm:$0xff]  }
 0x240   :  { %1295 = vmatprep.subr.bf16.mxu1 %v4202_v18 }
 0x2f5   :  { %v490_v23 = vpop.f32.mrb[0].mxu0 }
 0x2f6   :  { %v518_v24 = vadd.f32 %v511_v20, %v490_v23  ;;  %v492_v25 = vpop.f32.mrb[1].mxu0  ;;  %v765_v20 = vrot.slane %v193_v19, %v4826_v5 }
 0x2f7   :  { %v519_v26 = vadd.f32 %v515_v22, %v492_v25  ;;  %v494_v27 = vpop.f32.mrb[2].mxu0  ;;  %v769_v22 = vrot.slane %v193_v19, %v4835_v8 }
 0x2f8   :  { %v520_v28 = vsub.f32 0.0, %v518_v24  ;;  %v496_v29 = vpop.f32.mrb[3].mxu0 }
 0x2f9   :  { %v521_v21 = vsub.f32 0.0, %v519_v26 }
 0x2fa   :  { %v522_v30 = vmul.f32 1.442695, %v520_v28 }
 0x2fb   :  { %v524_v31 = vmul.f32 1.442695, %v521_v21 }
 0x2fc   :  { %4542 = vpow2.f32 %v522_v30 }
 0x2fd   :  { %4544 = vpow2.f32 %v524_v31  ;;  %v500_v32 = vpop.f32.mrb[4].mxu0 }
 0x2fe   :  { %v502_v33 = vpop.f32.mrb[5].mxu0 }
 0x2ff   :  { %v504_v34 = vpop.f32.mrb[6].mxu0 }
 0x300   :  { %v505_v35 = vpop.f32.mrb[7].mxu0 }
 0x306   :  { %v4543_v36 = vpop.eup %4542 }
 0x307   :  { %v4545_v37 = vpop.eup %4544  ;;  %v526_v38 = vadd.f32 1.0, %v4543_v36 }
 0x308   :  { %v527_v39 = vadd.f32 1.0, %v4545_v37 }
 0x309   :  { %4546 = vrcp.f32 %v526_v38 }
 0x30a   :  { %4548 = vrcp.f32 %v527_v39 }
 0x313   :  { %v4547_v40 = vpop.eup %4546 }
 0x314   :  { %v4549_v41 = vpop.eup %4548  ;;  %v534_v42 = vsub.f32 1.0, %v4547_v40  ;;  %v532_v51 = vmul.f32 %v4547_v40, %v518_v24 }
 0x315   :  { %v535_v44 = vsub.f32 1.0, %v4549_v41  ;;  %v533_v56 = vmul.f32 %v4549_v41, %v519_v26 }
 0x316   :  { %v536_v45 = vmul.f32 %v534_v42, %v518_v24 }
 0x317   :  { %v537_v46 = vmul.f32 %v535_v44, %v519_v26 }
 0x318   :  { %v538_v47 = vadd.f32 1.0, %v536_v45 }
 0x319   :  { %v539_v48 = vadd.f32 1.0, %v537_v46 }
 0x31a   :  { %v540_v49 = vmul.f32 %v4547_v40, %v538_v47 }
 0x31b   :  { %v541_v50 = vmul.f32 %v4549_v41, %v539_v48 }
 0x31c   :  { %v542_v52 = vmul.f32 %v540_v49, %v494_v27  ;;  %v544_v53 = vmul.f32 %v540_v49, %v500_v32 }
 0x31d   :  { %v543_v54 = vmul.f32 %v541_v50, %v496_v29  ;;  %v545_v55 = vmul.f32 %v541_v50, %v502_v33 }
 0x31e   :  { %v546_v57 = vpack.c.bf16 %v542_v52, %v532_v51  ;;  %v548_v60 = vpack.c.bf16 %v544_v53, %v544_v53 }
 0x31f   :  { %v547_v58 = vpack.c.bf16 %v543_v54, %v533_v56  ;;  %v549_v59 = vpack.c.bf16 %v545_v55, %v545_v55 }
 0x321   :  { %742 = vmatprep.mubr.bf16.mxu1 %v547_v58 }
 0x322   :  { %743 = vmatmul.mubr.bf16.vlgmr.msra.gmra.mrb[0].mxu1 %v546_v57 }
 0x323   :  { %752 = vmatprep.mubr.bf16.mxu1 %v549_v59  ;;  %1296 = vmatpush1.bf16.msra.mxu1 %v4200_v17 }
 0x32a   :  { %753 = vmatmul.mubr.bf16.gmra.mrb[4].mxu1 %v548_v60 }
 0x32b   :  { %3706 = vmatprep.mubr.msk.bf16.mxu1 %vm121_vm0, %v4861_v43 }
 0x3f5   :  { %v744_v23 = vpop.f32.mrb[0].mxu1 }
 0x3f6   :  { %v772_v24 = vadd.f32 %v765_v20, %v744_v23  ;;  %v746_v25 = vpop.f32.mrb[1].mxu1 }
 0x3f7   :  { %v773_v26 = vadd.f32 %v769_v22, %v746_v25  ;;  %v748_v27 = vpop.f32.mrb[2].mxu1 }
 0x3f8   :  { %v774_v28 = vsub.f32 0.0, %v772_v24  ;;  %v750_v29 = vpop.f32.mrb[3].mxu1 }
 0x3f9   :  { %v775_v21 = vsub.f32 0.0, %v773_v26 }
 0x3fa   :  { %v776_v30 = vmul.f32 1.442695, %v774_v28  ;;  %v4203_v28 = vld [vmem:[#allocation2 + $0x110] ss:$8 sps:$4 sm:$0xff]  }
 0x3fb   :  { %v778_v31 = vmul.f32 1.442695, %v775_v21  ;;  %v4211_v21 = vld [vmem:[#allocation2 + $0x134] ss:$8 sps:$4 sm:$0xff]  }
 0x3fc   :  { %4550 = vpow2.f32 %v776_v30  ;;  %v4209_v30 = vld [vmem:[#allocation2 + $0x130] ss:$8 sps:$4 sm:$0xff]  }
 0x3fd   :  { %4552 = vpow2.f32 %v778_v31  ;;  %v754_v32 = vpop.f32.mrb[4].mxu1  ;;  %v4212_v31 = vld [vmem:[#allocation2 + $0x140] ss:$8 sps:$4 sm:$0xff]  }
 0x3fe   :  { %v756_v33 = vpop.f32.mrb[5].mxu1 }
 0x3ff   :  { %v758_v34 = vpop.f32.mrb[6].mxu1 }
 0x400   :  { %v759_v35 = vpop.f32.mrb[7].mxu1  ;;  %v4220_v34 = vld [vmem:[#allocation2 + $0x164] ss:$8 sps:$4 sm:$0xff]  }
 0x401   :  { %v4218_v35 = vld [vmem:[#allocation2 + $0x160] ss:$8 sps:$4 sm:$0xff]  }
 0x406   :  { %v4551_v36 = vpop.eup %4550 }
 0x407   :  { %v4553_v37 = vpop.eup %4552  ;;  %v780_v38 = vadd.f32 1.0, %v4551_v36  ;;  %v4223_v36 = vld [vmem:[#allocation2 + $0x174] ss:$8 sps:$4 sm:$0xff]  }
 0x408   :  { %v781_v39 = vadd.f32 1.0, %v4553_v37  ;;  %v4221_v37 = vld [vmem:[#allocation2 + $0x170] ss:$8 sps:$4 sm:$0xff]  }
 0x409   :  { %4554 = vrcp.f32 %v780_v38  ;;  %v4226_v38 = vld [vmem:[#allocation2 + $0x184] ss:$8 sps:$4 sm:$0xff]  }
 0x40a   :  { %4556 = vrcp.f32 %v781_v39  ;;  %v4224_v39 = vld [vmem:[#allocation2 + $0x180] ss:$8 sps:$4 sm:$0xff]  }
 0x413   :  { %v4555_v40 = vpop.eup %4554 }
 0x414   :  { %v4557_v41 = vpop.eup %4556  ;;  %v788_v42 = vsub.f32 1.0, %v4555_v40  ;;  %v786_v51 = vmul.f32 %v4555_v40, %v772_v24 }
 0x415   :  { %v789_v44 = vsub.f32 1.0, %v4557_v41  ;;  %v787_v54 = vmul.f32 %v4557_v41, %v773_v26 }
 0x416   :  { %v790_v45 = vmul.f32 %v788_v42, %v772_v24  ;;  %v4232_v42 = vld [vmem:[#allocation2 + $0x1a4] ss:$8 sps:$4 sm:$0xff]  }
 0x417   :  { %v791_v46 = vmul.f32 %v789_v44, %v773_v26  ;;  %v4230_v44 = vld [vmem:[#allocation2 + $0x1a0] ss:$8 sps:$4 sm:$0xff]  }
 0x418   :  { %v792_v47 = vadd.f32 1.0, %v790_v45  ;;  %v4235_v45 = vld [vmem:[#allocation2 + $0x1b4] ss:$8 sps:$4 sm:$0xff]  }
 0x419   :  { %v793_v48 = vadd.f32 1.0, %v791_v46  ;;  %v4233_v46 = vld [vmem:[#allocation2 + $0x1b0] ss:$8 sps:$4 sm:$0xff]  }
 0x41a   :  { %v794_v49 = vmul.f32 %v4555_v40, %v792_v47  ;;  %v4229_v40 = vld [vmem:[#allocation2 + $0x194] ss:$8 sps:$4 sm:$0xff]   ;;  %v4238_v47 = vld [vmem:[#allocation2 + $0x1c4] ss:$8 sps:$4 sm:$0xff]  }
 0x41b   :  { %v795_v50 = vmul.f32 %v4557_v41, %v793_v48  ;;  %v4227_v41 = vld [vmem:[#allocation2 + $0x190] ss:$8 sps:$4 sm:$0xff]   ;;  %v4236_v48 = vld [vmem:[#allocation2 + $0x1c0] ss:$8 sps:$4 sm:$0xff]  }
 0x41c   :  { %v796_v52 = vmul.f32 %v794_v49, %v748_v27  ;;  %v798_v53 = vmul.f32 %v794_v49, %v754_v32  ;;  %v4205_v27 = vld [vmem:[#allocation2 + $0x114] ss:$8 sps:$4 sm:$0xff]  }
 0x41d   :  { %v797_v55 = vmul.f32 %v795_v50, %v750_v29  ;;  %v799_v56 = vmul.f32 %v795_v50, %v756_v33  ;;  %1297 = vmatprep.subr.bf16.mxu1 %v4205_v27  ;;  %v4206_v29 = vld [vmem:[#allocation2 + $0x120] ss:$8 sps:$4 sm:$0xff]   ;;  %v4217_v32 = vld [vmem:[#allocation2 + $0x154] ss:$8 sps:$4 sm:$0xff]   ;;  %v4215_v33 = vld [vmem:[#allocation2 + $0x150] ss:$8 sps:$4 sm:$0xff]  }
 0x41e   :  { %v800_v57 = vpack.c.bf16 %v796_v52, %v786_v51  ;;  %v802_v60 = vpack.c.bf16 %v798_v53, %v798_v53  ;;  %1298 = vmatpush1.bf16.msra.mxu1 %v4203_v28  ;;  %v4241_v49 = vld [vmem:[#allocation2 + $0x1d4] ss:$8 sps:$4 sm:$0xff]   ;;  %v4239_v50 = vld [vmem:[#allocation2 + $0x1d0] ss:$8 sps:$4 sm:$0xff]   ;;  %v4244_v51 = vld [vmem:[#allocation2 + $0x1e4] ss:$8 sps:$4 sm:$0xff]  }
 0x41f   :  { %v801_v58 = vpack.c.bf16 %v797_v55, %v787_v54  ;;  %v803_v59 = vpack.c.bf16 %v799_v56, %v799_v56  ;;  %v4242_v52 = vld [vmem:[#allocation2 + $0x1e0] ss:$8 sps:$4 sm:$0xff]   ;;  %v4247_v53 = vld [vmem:[#allocation2 + $0x1f4] ss:$8 sps:$4 sm:$0xff]   ;;  %v4245_v54 = vld [vmem:[#allocation2 + $0x1f0] ss:$8 sps:$4 sm:$0xff]  }
 0x420   :  { %v4248_v55 = vld [vmem:[#allocation4 + $0x100] ss:$8 sps:$4 sm:$0xff]   ;;  %v4250_v56 = vld [vmem:[#allocation4 + $0x104] ss:$8 sps:$4 sm:$0xff]  }
 0x421   :  { %932 = vmatprep.mubr.bf16.mxu0 %v801_v58  ;;  %1549 = vmatprep.subr.bf16.mxu0 %v4250_v56  ;;  %v4251_v58 = vld [vmem:[#allocation4 + $0x110] ss:$8 sps:$4 sm:$0xff]   ;;  %v4266_v56 = vld [vmem:[#allocation4 + $0x160] ss:$8 sps:$4 sm:$0xff]  }
 0x422   :  { %933 = vmatmul.mubr.bf16.vlgmr.msra.gmra.mrb[8].mxu0 %v800_v57  ;;  %v4253_v57 = vld [vmem:[#allocation4 + $0x114] ss:$8 sps:$4 sm:$0xff]  }
 0x423   :  { %940 = vmatprep.mubr.bf16.mxu0 %v803_v59  ;;  %1550 = vmatpush1.bf16.msra.mxu0 %v4248_v55  ;;  %v4256_v59 = vld [vmem:[#allocation4 + $0x124] ss:$8 sps:$4 sm:$0xff]  }
 0x424   :  { %1551 = vmatprep.subr.bf16.mxu0 %v4253_v57  ;;  %v4268_v55 = vld [vmem:[#allocation4 + $0x164] ss:$8 sps:$4 sm:$0xff]   ;;  %v4271_v57 = vld [vmem:[#allocation4 + $0x174] ss:$8 sps:$4 sm:$0xff]  }
 0x427   :  { %1552 = vmatpush1.bf16.msra.mxu0 %v4251_v58  ;;  %v4269_v58 = vld [vmem:[#allocation4 + $0x170] ss:$8 sps:$4 sm:$0xff]  }
 0x428   :  { %1553 = vmatprep.subr.bf16.mxu0 %v4256_v59  ;;  %v4274_v59 = vld [vmem:[#allocation4 + $0x184] ss:$8 sps:$4 sm:$0xff]  }
 0x42a   :  { %941 = vmatmul.mubr.bf16.gmra.mrb[12].mxu0 %v802_v60  ;;  %v4254_v60 = vld [vmem:[#allocation4 + $0x120] ss:$8 sps:$4 sm:$0xff]  }
 0x42b   :  { %1554 = vmatpush1.bf16.msra.mxu0 %v4254_v60  ;;  %v4272_v60 = vld [vmem:[#allocation4 + $0x180] ss:$8 sps:$4 sm:$0xff]  }
 0x4f5   :  { %v3951_v61 = vpop.f32.mrb[8].mxu0 }
 0x4f6   :  { %v3952_v62 = vpop.f32.mrb[9].mxu0 }
 0x4f7   :  { %v3953_v63 = vadd.f32 %v3952_v62, %v3951_v61  ;;  %v3954_v1 = vpop.f32.mrb[10].mxu0  ;;  %v4259_v61 = vld [vmem:[#allocation4 + $0x134] ss:$8 sps:$4 sm:$0xff]   ;;  %v4257_v62 = vld [vmem:[#allocation4 + $0x130] ss:$8 sps:$4 sm:$0xff]  }
 0x4f8   :  { %v3955_v2 = vpop.f32.mrb[11].mxu0  ;;  %1555 = vmatprep.subr.bf16.mxu0 %v4259_v61  ;;  %v4277_v61 = vld [vmem:[#allocation4 + $0x194] ss:$8 sps:$4 sm:$0xff]  }
 0x4f9   :  { %v948_v4 = vadd.f32 %v3953_v63, %v4845_v16  ;;  %v3956_v6 = vadd.f32 %v3955_v2, %v3954_v1  ;;  %v4262_v63 = vld [vmem:[#allocation4 + $0x144] ss:$8 sps:$4 sm:$0xff]   ;;  %1556 = vmatpush1.bf16.msra.mxu0 %v4257_v62  ;;  %v4260_v1 = vld [vmem:[#allocation4 + $0x140] ss:$8 sps:$4 sm:$0xff]   ;;  %v4275_v62 = vld [vmem:[#allocation4 + $0x190] ss:$8 sps:$4 sm:$0xff]  }
 0x4fa   :  { %1557 = vmatprep.subr.bf16.mxu0 %v4262_v63  ;;  %v4280_v63 = vld [vmem:[#allocation4 + $0x1a4] ss:$8 sps:$4 sm:$0xff]  }
 0x4fb   :  { %v4891_v9 = vadd.f32 %v3666_v3, %v948_v4  ;;  %v4900_v23 = vadd.f32 %v3956_v6, %v4832_v7  ;;  %v4208_v7 = vld [vmem:[#allocation2 + $0x124] ss:$8 sps:$4 sm:$0xff]  }
 0x4fc   :  { %1299 = vmatprep.subr.bf16.mxu1 %v4208_v7 }
 0x4fd   :  { %v3957_v11 = vpop.f32.mrb[12].mxu0  ;;  %1067 = vadd.xlane.f32.xlu1 %v4891_v9  ;;  %1300 = vmatpush1.bf16.msra.mxu1 %v4206_v29 }
 0x4fe   :  { %v3958_v12 = vpop.f32.mrb[13].mxu0  ;;  %1301 = vmatprep.subr.bf16.mxu1 %v4211_v21  ;;  %1558 = vmatpush1.bf16.msra.mxu0 %v4260_v1  ;;  %v4278_v1 = vld [vmem:[#allocation4 + $0x1a0] ss:$8 sps:$4 sm:$0xff]  }
 0x4ff   :  { %v3959_v13 = vadd.f32 %v3958_v12, %v3957_v11  ;;  %v3960_v14 = vpop.f32.mrb[14].mxu0  ;;  %v3672_v11 = vld [vmem:[%s5093_s4 + $0x1] ss:$0 sm:$0xff] }
 0x500   :  { %v3961_v15 = vpop.f32.mrb[15].mxu0 }
 0x501   :  { %v4905_v25 = vadd.f32 %v3959_v13, %v4838_v10  ;;  %1302 = vmatpush1.bf16.msra.mxu1 %v4209_v30  ;;  %v4214_v10 = vld [vmem:[#allocation2 + $0x144] ss:$8 sps:$4 sm:$0xff]   ;;  %v3673_v13 = vld [vmem:[%s5094_s5 + $0x1] ss:$0 sm:$0xff] }
 0x502   :  { %1303 = vmatprep.subr.bf16.mxu1 %v4214_v10 }
 0x505   :  { %1304 = vmatpush1.bf16.msra.mxu1 %v4212_v31 }
 0x506   :  { %1305 = vmatprep.subr.bf16.mxu1 %v4217_v32 }
 0x509   :  { %1306 = vmatpush1.bf16.msra.mxu1 %v4215_v33 }
 0x50a   :  { %1307 = vmatprep.subr.bf16.mxu1 %v4220_v34 }
 0x50d   :  { %1308 = vmatpush1.bf16.msra.mxu1 %v4218_v35 }
 0x50e   :  { %1309 = vmatprep.subr.bf16.mxu1 %v4223_v36 }
 0x511   :  { %1310 = vmatpush1.bf16.msra.mxu1 %v4221_v37 }
 0x512   :  { %1311 = vmatprep.subr.bf16.mxu1 %v4226_v38 }
 0x515   :  { %1312 = vmatpush1.bf16.msra.mxu1 %v4224_v39 }
 0x516   :  { %1313 = vmatprep.subr.bf16.mxu1 %v4229_v40 }
 0x519   :  { %1314 = vmatpush1.bf16.msra.mxu1 %v4227_v41 }
 0x51a   :  { %1315 = vmatprep.subr.bf16.mxu1 %v4232_v42 }
 0x51d   :  { %1316 = vmatpush1.bf16.msra.mxu1 %v4230_v44 }
 0x51e   :  { %1317 = vmatprep.subr.bf16.mxu1 %v4235_v45 }
 0x521   :  { %1318 = vmatpush1.bf16.msra.mxu1 %v4233_v46 }
 0x522   :  { %1319 = vmatprep.subr.bf16.mxu1 %v4238_v47 }
 0x525   :  { %1320 = vmatpush1.bf16.msra.mxu1 %v4236_v48 }
 0x526   :  { %1321 = vmatprep.subr.bf16.mxu1 %v4241_v49 }
 0x529   :  { %1322 = vmatpush1.bf16.msra.mxu1 %v4239_v50 }
 0x52a   :  { %1323 = vmatprep.subr.bf16.mxu1 %v4244_v51 }
 0x52d   :  { %1324 = vmatpush1.bf16.msra.mxu1 %v4242_v52 }
 0x52e   :  { %1325 = vmatprep.subr.bf16.mxu1 %v4247_v53  ;;  %v4265_v53 = vld [vmem:[#allocation4 + $0x154] ss:$8 sps:$4 sm:$0xff]  }
 0x52f   :  { %1559 = vmatprep.subr.bf16.mxu0 %v4265_v53 }
 0x531   :  { %1326 = vmatpush1.bf16.msra.mxu1 %v4245_v54  ;;  %v4263_v54 = vld [vmem:[#allocation4 + $0x150] ss:$8 sps:$4 sm:$0xff]  }
 0x532   :  { %1560 = vmatpush1.bf16.msra.mxu0 %v4263_v54 }
 0x533   :  { %1561 = vmatprep.subr.bf16.mxu0 %v4268_v55 }
 0x536   :  { %1562 = vmatpush1.bf16.msra.mxu0 %v4266_v56 }
 0x537   :  { %1563 = vmatprep.subr.bf16.mxu0 %v4271_v57 }
 0x53a   :  { %1564 = vmatpush1.bf16.msra.mxu0 %v4269_v58 }
 0x53b   :  { %1565 = vmatprep.subr.bf16.mxu0 %v4274_v59  ;;  %v4296_v59 = vld [vmem:[#allocation6 + $0xc0] sm:$0xff]  }
 0x53c   :  { %3963 = vmatprep.subr.bf16.mxu1 %v4296_v59 }
 0x53e   :  { %1566 = vmatpush1.bf16.msra.mxu0 %v4272_v60  ;;  %v4297_v60 = vld [vmem:[#allocation6 + $0x80] sm:$0xff]  }
 0x53f   :  { %1567 = vmatprep.subr.bf16.mxu0 %v4277_v61  ;;  %v4298_v61 = vld [vmem:[#allocation6 + $0xc8] sm:$0xff]  }
 0x542   :  { %1568 = vmatpush1.bf16.msra.mxu0 %v4275_v62  ;;  %v4299_v62 = vld [vmem:[#allocation6 + $0x88] sm:$0xff]  }
 0x543   :  { %1569 = vmatprep.subr.bf16.mxu0 %v4280_v63  ;;  %v4300_v63 = vld [vmem:[#allocation6 + $0xd0] sm:$0xff]  }
 0x546   :  { %1570 = vmatpush1.bf16.msra.mxu0 %v4278_v1  ;;  %v4301_v1 = vld [vmem:[#allocation6 + $0x90] sm:$0xff]  }
 0x58a   :  { %v1068_v19 = vpop.xlane.xlu1 %1067 }
 0x58b   :  { %v1069_v20 = vmul.f32 0.0078125, %v1068_v19 }
 0x58d   :  { %v4895_v22 = vsub.f32 %v4891_v9, %v1069_v20 }
 0x58f   :  { %v1071_v16 = vmul.f32 %v4895_v22, %v4895_v22  ;;  %v1106_v24 = vmul.f32 %v4895_v22, %v4900_v23  ;;  %v1121_v26 = vmul.f32 %v4895_v22, %v4905_v25 }
 0x591   :  { %1072 = vadd.xlane.f32.xlu1 %v1071_v16 }
 0x595   :  { %1107 = vadd.xlane.f32.xlu1 %v1106_v24 }
 0x599   :  { %1103 = vadd.xlane.f32.xlu1 %v4900_v23 }
 0x59d   :  { %1122 = vadd.xlane.f32.xlu1 %v1121_v26 }
 0x5a1   :  { %1118 = vadd.xlane.f32.xlu1 %v4905_v25 }
 0x61e   :  { %v1073_v2 = vpop.xlane.xlu1 %1072 }
 0x61f   :  { %v1074_v3 = vmul.f32 0.0078125, %v1073_v2  ;;  %v4283_v2 = vld [vmem:[#allocation4 + $0x1b4] ss:$8 sps:$4 sm:$0xff]  }
 0x620   :  { %1571 = vmatprep.subr.bf16.mxu0 %v4283_v2  ;;  %v4302_v2 = vld [vmem:[#allocation6 + $0xd8] sm:$0xff]  }
 0x621   :  { %v1075_v4 = vadd.f32 1e-05, %v1074_v3  ;;  %v4281_v3 = vld [vmem:[#allocation4 + $0x1b0] ss:$8 sps:$4 sm:$0xff]  }
 0x622   :  { %v1108_v19 = vpop.xlane.xlu1 %1107  ;;  %1572 = vmatpush1.bf16.msra.mxu0 %v4281_v3  ;;  %v4303_v3 = vld [vmem:[#allocation6 + $0x98] sm:$0xff]  }
 0x623   :  { %4558 = vrsqrt.f32 %v1075_v4  ;;  %v1109_v27 = vmul.f32 0.0078125, %v1108_v19  ;;  %v4286_v4 = vld [vmem:[#allocation4 + $0x1c4] ss:$8 sps:$4 sm:$0xff]  }
 0x624   :  { %1573 = vmatprep.subr.bf16.mxu0 %v4286_v4  ;;  %v4304_v4 = vld [vmem:[#allocation6 + $0xe0] sm:$0xff]  }
 0x626   :  { %v1104_v20 = vpop.xlane.xlu1 %1103 }
 0x627   :  { %v1105_v21 = vmul.f32 0.0078125, %v1104_v20 }
 0x629   :  { %v1110_v32 = vsub.f32 %v4900_v23, %v1105_v21 }
 0x62a   :  { %v1123_v26 = vpop.xlane.xlu1 %1122 }
 0x62b   :  { %v1124_v7 = vmul.f32 0.0078125, %v1123_v26 }
 0x62d   :  { %v4559_v6 = vpop.eup %4558 }
 0x62e   :  { %v1077_v12 = vmul.f32 %v4559_v6, %v4895_v22  ;;  %v1112_v28 = vmul.f32 %v4559_v6, %v1109_v27  ;;  %v1119_v29 = vpop.xlane.xlu1 %1118  ;;  %v1127_v30 = vmul.f32 %v4559_v6, %v1124_v7  ;;  %v1111_v35 = vmul.f32 %v4559_v6, %v1110_v32 }
 0x62f   :  { %v1120_v10 = vmul.f32 0.0078125, %v1119_v29 }
 0x630   :  { %v1084_v14 = vmul.f32 %v3672_v11, %v1077_v12  ;;  %v1113_v22 = vmul.f32 %v4559_v6, %v1112_v28  ;;  %v1128_v36 = vmul.f32 %v4559_v6, %v1127_v30 }
 0x631   :  { %v1125_v37 = vsub.f32 %v4905_v25, %v1120_v10 }
 0x632   :  { %v1091_v15 = vadd.f32 %v3673_v13, %v1084_v14  ;;  %v1114_v31 = vmul.f32 %v1113_v22, %v1077_v12  ;;  %v1129_v41 = vmul.f32 %v1128_v36, %v1077_v12  ;;  %v4287_v12 = vld [vmem:[#allocation4 + $0x1d0] ss:$8 sps:$4 sm:$0xff]   ;;  %v4292_v13 = vld [vmem:[#allocation4 + $0x1e4] ss:$8 sps:$4 sm:$0xff]   ;;  %v4290_v14 = vld [vmem:[#allocation4 + $0x1e0] ss:$8 sps:$4 sm:$0xff]  }
 0x633   :  { %v1126_v42 = vmul.f32 %v4559_v6, %v1125_v37  ;;  %v4284_v6 = vld [vmem:[#allocation4 + $0x1c0] ss:$8 sps:$4 sm:$0xff]  }
 0x634   :  { %v1092_v17 = vsub.f32 0.0, %v1091_v15  ;;  %v1115_v39 = vsub.f32 %v1111_v35, %v1114_v31  ;;  %1574 = vmatpush1.bf16.msra.mxu0 %v4284_v6  ;;  %v4305_v6 = vld [vmem:[#allocation6 + $0xa0] sm:$0xff]  }
 0x635   :  { %v1130_v47 = vsub.f32 %v1126_v42, %v1129_v41 }
 0x636   :  { %v1093_v18 = vmul.f32 1.442695, %v1092_v17  ;;  %v1116_v45 = vmul.f32 %v3672_v11, %v1115_v39  ;;  %v4293_v17 = vld [vmem:[#allocation4 + $0x1f0] ss:$8 sps:$4 sm:$0xff]  }
 0x637   :  { %v1131_v50 = vmul.f32 %v3672_v11, %v1130_v47  ;;  %v4289_v11 = vld [vmem:[#allocation4 + $0x1d4] ss:$8 sps:$4 sm:$0xff]  }
 0x638   :  { %4560 = vpow2.f32 %v1093_v18  ;;  %1575 = vmatprep.subr.bf16.mxu0 %v4289_v11  ;;  %v3669_v18 = vld [vmem:[%s5096_s7 + $0x2] sm:$0x3]  ;;  %v4306_v11 = vld [vmem:[#allocation6 + $0xe8] sm:$0xff]  }
 0x639   :  { %1576 = vmatpush1.bf16.msra.mxu0 %v4287_v12  ;;  %v1350_v19 = vrot.slane %v3669_v18, %v4826_v5  ;;  %v1354_v20 = vrot.slane %v3669_v18, %v4835_v8  ;;  %v4307_v12 = vld [vmem:[#allocation6 + $0xa8] sm:$0xff]   ;;  %v3670_v18 = vld [vmem:[%s5098_s9 + $0x2] sm:$0x3] }
 0x63a   :  { %1577 = vmatprep.subr.bf16.mxu0 %v4292_v13  ;;  %v4308_v13 = vld [vmem:[#allocation6 + $0xf0] sm:$0xff]  }
 0x63d   :  { %1578 = vmatpush1.bf16.msra.mxu0 %v4290_v14  ;;  %v4309_v14 = vld [vmem:[#allocation6 + $0xb0] sm:$0xff]  }
 0x642   :  { %v4561_v16 = vpop.eup %4560 }
 0x643   :  { %v1095_v24 = vadd.f32 1.0, %v4561_v16 }
 0x645   :  { %4562 = vrcp.f32 %v1095_v24 }
 0x64f   :  { %v4563_v33 = vpop.eup %4562 }
 0x650   :  { %v1099_v34 = vsub.f32 1.0, %v4563_v33  ;;  %v1098_v48 = vmul.f32 %v4563_v33, %v1091_v15 }
 0x652   :  { %v1100_v38 = vmul.f32 %v1099_v34, %v1091_v15  ;;  %v4295_v15 = vld [vmem:[#allocation4 + $0x1f4] ss:$8 sps:$4 sm:$0xff]  }
 0x653   :  { %1579 = vmatprep.subr.bf16.mxu0 %v4295_v15  ;;  %v4310_v15 = vld [vmem:[#allocation6 + $0xf8] sm:$0xff]  }
 0x654   :  { %v1101_v40 = vadd.f32 1.0, %v1100_v38  ;;  %1580 = vmatpush1.bf16.msra.mxu0 %v4293_v17  ;;  %v4311_v17 = vld [vmem:[#allocation6 + $0xb8] sm:$0xff]  }
 0x656   :  { %v1102_v44 = vmul.f32 %v4563_v33, %v1101_v40 }
 0x658   :  { %v1117_v46 = vmul.f32 %v1116_v45, %v1102_v44  ;;  %v1132_v51 = vmul.f32 %v1131_v50, %v1102_v44 }
 0x65a   :  { %v1133_v49 = vpack.c.bf16 %v1117_v46, %v1098_v48  ;;  %v1134_v52 = vpack.c.bf16 %v1132_v51, %v1132_v51 }
 0x65c   :  { %1328 = vmatmul.mubr.bf16.vlgmr.msra.gmra.mrb[8].mxu1 %v1133_v49 }
 0x65d   :  { %1337 = vmatprep.mubr.bf16.mxu1 %v4702_v0  ;;  %3964 = vmatpush3.bf16.msra.mxu1 %v4297_v60 }
 0x65e   :  { %3965 = vmatprep.subr.bf16.mxu1 %v4298_v61 }
 0x661   :  { %3966 = vmatpush3.bf16.msra.mxu1 %v4299_v62 }
 0x662   :  { %3967 = vmatprep.subr.bf16.mxu1 %v4300_v63 }
 0x664   :  { %1338 = vmatmul.mubr.bf16.gmra.mrb[12].mxu1 %v1134_v52 }
 0x665   :  { %3968 = vmatpush3.bf16.msra.mxu1 %v4301_v1  ;;  %v3755_v1 = vld [vmem:[%s5100_s11 + $0x1] ss:$0 sm:$0xff] }
 0x666   :  { %3969 = vmatprep.subr.bf16.mxu1 %v4302_v2 }
 0x669   :  { %3970 = vmatpush3.bf16.msra.mxu1 %v4303_v3 }
 0x66a   :  { %3971 = vmatprep.subr.bf16.mxu1 %v4304_v4 }
 0x66d   :  { %3972 = vmatpush3.bf16.msra.mxu1 %v4305_v6 }
 0x66e   :  { %3973 = vmatprep.subr.bf16.mxu1 %v4306_v11 }
 0x671   :  { %3974 = vmatpush3.bf16.msra.mxu1 %v4307_v12 }
 0x672   :  { %3975 = vmatprep.subr.bf16.mxu1 %v4308_v13 }
 0x675   :  { %3976 = vmatpush3.bf16.msra.mxu1 %v4309_v14 }
 0x676   :  { %3977 = vmatprep.subr.bf16.mxu1 %v4310_v15  ;;  %v4312_v15 = vld [vmem:[#allocation2 + $0x200] ss:$8 sps:$4 sm:$0xff]  }
 0x679   :  { %3978 = vmatpush3.bf16.msra.mxu1 %v4311_v17  ;;  %v4314_v17 = vld [vmem:[#allocation2 + $0x204] ss:$8 sps:$4 sm:$0xff]  }
 0x67a   :  { %2134 = vmatprep.subr.bf16.mxu0 %v4314_v17 }
 0x72f   :  { %v1329_v16 = vpop.f32.mrb[8].mxu1 }
 0x730   :  { %v1357_v24 = vadd.f32 %v1350_v19, %v1329_v16  ;;  %v1331_v26 = vpop.f32.mrb[9].mxu1  ;;  %v1604_v19 = vrot.slane %v3670_v18, %v4826_v5 }
 0x731   :  { %v1358_v27 = vadd.f32 %v1354_v20, %v1331_v26  ;;  %v1333_v28 = vpop.f32.mrb[10].mxu1  ;;  %v1608_v20 = vrot.slane %v3670_v18, %v4835_v8 }
 0x732   :  { %v1359_v7 = vsub.f32 0.0, %v1357_v24  ;;  %v1335_v29 = vpop.f32.mrb[11].mxu1 }
 0x733   :  { %v1360_v22 = vsub.f32 0.0, %v1358_v27 }
 0x734   :  { %v1361_v21 = vmul.f32 1.442695, %v1359_v7 }
 0x735   :  { %v1363_v30 = vmul.f32 1.442695, %v1360_v22 }
 0x736   :  { %4564 = vpow2.f32 %v1361_v21 }
 0x737   :  { %4566 = vpow2.f32 %v1363_v30  ;;  %v1339_v10 = vpop.f32.mrb[12].mxu1 }
 0x738   :  { %v1341_v31 = vpop.f32.mrb[13].mxu1 }
 0x739   :  { %v1343_v32 = vpop.f32.mrb[14].mxu1 }
 0x73a   :  { %v1344_v33 = vpop.f32.mrb[15].mxu1 }
 0x740   :  { %v4565_v34 = vpop.eup %4564 }
 0x741   :  { %v4567_v35 = vpop.eup %4566  ;;  %v1365_v36 = vadd.f32 1.0, %v4565_v34 }
 0x742   :  { %v1366_v37 = vadd.f32 1.0, %v4567_v35 }
 0x743   :  { %4568 = vrcp.f32 %v1365_v36 }
 0x744   :  { %4570 = vrcp.f32 %v1366_v37 }
 0x74d   :  { %v4569_v38 = vpop.eup %4568 }
 0x74e   :  { %v4571_v39 = vpop.eup %4570  ;;  %v1373_v40 = vsub.f32 1.0, %v4569_v38  ;;  %v1371_v49 = vmul.f32 %v4569_v38, %v1357_v24 }
 0x74f   :  { %v1374_v41 = vsub.f32 1.0, %v4571_v39  ;;  %v1372_v52 = vmul.f32 %v4571_v39, %v1358_v27 }
 0x750   :  { %v1375_v42 = vmul.f32 %v1373_v40, %v1357_v24 }
 0x751   :  { %v1376_v44 = vmul.f32 %v1374_v41, %v1358_v27 }
 0x752   :  { %v1377_v45 = vadd.f32 1.0, %v1375_v42 }
 0x753   :  { %v1378_v46 = vadd.f32 1.0, %v1376_v44 }
 0x754   :  { %v1379_v47 = vmul.f32 %v4569_v38, %v1377_v45 }
 0x755   :  { %v1380_v48 = vmul.f32 %v4571_v39, %v1378_v46 }
 0x756   :  { %v1381_v50 = vmul.f32 %v1379_v47, %v1333_v28  ;;  %v1383_v51 = vmul.f32 %v1379_v47, %v1339_v10 }
 0x757   :  { %v1382_v53 = vmul.f32 %v1380_v48, %v1335_v29  ;;  %v1384_v54 = vmul.f32 %v1380_v48, %v1341_v31 }
 0x758   :  { %v1385_v55 = vpack.c.bf16 %v1381_v50, %v1371_v49  ;;  %v1387_v58 = vpack.c.bf16 %v1383_v51, %v1383_v51 }
 0x759   :  { %v1386_v56 = vpack.c.bf16 %v1382_v53, %v1372_v52  ;;  %v1388_v57 = vpack.c.bf16 %v1384_v54, %v1384_v54 }
 0x75b   :  { %1581 = vmatprep.mubr.bf16.mxu0 %v1386_v56 }
 0x75c   :  { %1582 = vmatmul.mubr.bf16.vlgmr.msra.gmra.mrb[16].mxu0 %v1385_v55 }
 0x75d   :  { %1591 = vmatprep.mubr.bf16.mxu0 %v1388_v57  ;;  %2135 = vmatpush1.bf16.msra.mxu0 %v4312_v15 }
 0x764   :  { %1592 = vmatmul.mubr.bf16.gmra.mrb[20].mxu0 %v1387_v58 }
 0x765   :  { %3795 = vmatprep.mubr.msk.bf16.mxu0 %vm121_vm0, %v4861_v43 }
 0x82f   :  { %v1583_v16 = vpop.f32.mrb[16].mxu0 }
 0x830   :  { %v1611_v24 = vadd.f32 %v1604_v19, %v1583_v16  ;;  %v1585_v26 = vpop.f32.mrb[17].mxu0 }
 0x831   :  { %v1612_v27 = vadd.f32 %v1608_v20, %v1585_v26  ;;  %v1587_v28 = vpop.f32.mrb[18].mxu0 }
 0x832   :  { %v1613_v7 = vsub.f32 0.0, %v1611_v24  ;;  %v1589_v29 = vpop.f32.mrb[19].mxu0 }
 0x833   :  { %v1614_v22 = vsub.f32 0.0, %v1612_v27 }
 0x834   :  { %v1615_v21 = vmul.f32 1.442695, %v1613_v7  ;;  %v4320_v7 = vld [vmem:[#allocation2 + $0x224] ss:$8 sps:$4 sm:$0xff]  }
 0x835   :  { %v1617_v30 = vmul.f32 1.442695, %v1614_v22  ;;  %v4321_v22 = vld [vmem:[#allocation2 + $0x230] ss:$8 sps:$4 sm:$0xff]  }
 0x836   :  { %4572 = vpow2.f32 %v1615_v21  ;;  %v4326_v21 = vld [vmem:[#allocation2 + $0x244] ss:$8 sps:$4 sm:$0xff]  }
 0x837   :  { %4574 = vpow2.f32 %v1617_v30  ;;  %v1593_v10 = vpop.f32.mrb[20].mxu0  ;;  %v4324_v30 = vld [vmem:[#allocation2 + $0x240] ss:$8 sps:$4 sm:$0xff]  }
 0x838   :  { %v1595_v31 = vpop.f32.mrb[21].mxu0 }
 0x839   :  { %v1597_v32 = vpop.f32.mrb[22].mxu0 }
 0x83a   :  { %v1598_v33 = vpop.f32.mrb[23].mxu0  ;;  %v4332_v32 = vld [vmem:[#allocation2 + $0x264] ss:$8 sps:$4 sm:$0xff]  }
 0x83b   :  { %v4330_v33 = vld [vmem:[#allocation2 + $0x260] ss:$8 sps:$4 sm:$0xff]  }
 0x840   :  { %v4573_v34 = vpop.eup %4572 }
 0x841   :  { %v4575_v35 = vpop.eup %4574  ;;  %v1619_v36 = vadd.f32 1.0, %v4573_v34  ;;  %v4335_v34 = vld [vmem:[#allocation2 + $0x274] ss:$8 sps:$4 sm:$0xff]  }
 0x842   :  { %v1620_v37 = vadd.f32 1.0, %v4575_v35  ;;  %v4333_v35 = vld [vmem:[#allocation2 + $0x270] ss:$8 sps:$4 sm:$0xff]  }
 0x843   :  { %4576 = vrcp.f32 %v1619_v36  ;;  %v4338_v36 = vld [vmem:[#allocation2 + $0x284] ss:$8 sps:$4 sm:$0xff]  }
 0x844   :  { %4578 = vrcp.f32 %v1620_v37  ;;  %v4336_v37 = vld [vmem:[#allocation2 + $0x280] ss:$8 sps:$4 sm:$0xff]  }
 0x84d   :  { %v4577_v38 = vpop.eup %4576 }
 0x84e   :  { %v4579_v39 = vpop.eup %4578  ;;  %v1627_v40 = vsub.f32 1.0, %v4577_v38  ;;  %v1625_v49 = vmul.f32 %v4577_v38, %v1611_v24 }
 0x84f   :  { %v1628_v41 = vsub.f32 1.0, %v4579_v39  ;;  %v1626_v52 = vmul.f32 %v4579_v39, %v1612_v27 }
 0x850   :  { %v1629_v42 = vmul.f32 %v1627_v40, %v1611_v24  ;;  %v4344_v40 = vld [vmem:[#allocation2 + $0x2a4] ss:$8 sps:$4 sm:$0xff]  }
 0x851   :  { %v1630_v44 = vmul.f32 %v1628_v41, %v1612_v27  ;;  %v4342_v41 = vld [vmem:[#allocation2 + $0x2a0] ss:$8 sps:$4 sm:$0xff]  }
 0x852   :  { %v1631_v45 = vadd.f32 1.0, %v1629_v42  ;;  %v4347_v42 = vld [vmem:[#allocation2 + $0x2b4] ss:$8 sps:$4 sm:$0xff]  }
 0x853   :  { %v1632_v46 = vadd.f32 1.0, %v1630_v44  ;;  %v4345_v44 = vld [vmem:[#allocation2 + $0x2b0] ss:$8 sps:$4 sm:$0xff]  }
 0x854   :  { %v1633_v47 = vmul.f32 %v4577_v38, %v1631_v45  ;;  %v4341_v38 = vld [vmem:[#allocation2 + $0x294] ss:$8 sps:$4 sm:$0xff]   ;;  %v4350_v45 = vld [vmem:[#allocation2 + $0x2c4] ss:$8 sps:$4 sm:$0xff]  }
 0x855   :  { %v1634_v48 = vmul.f32 %v4579_v39, %v1632_v46  ;;  %v4339_v39 = vld [vmem:[#allocation2 + $0x290] ss:$8 sps:$4 sm:$0xff]   ;;  %v4348_v46 = vld [vmem:[#allocation2 + $0x2c0] ss:$8 sps:$4 sm:$0xff]  }
 0x856   :  { %v1635_v50 = vmul.f32 %v1633_v47, %v1587_v28  ;;  %v1637_v51 = vmul.f32 %v1633_v47, %v1593_v10  ;;  %v4315_v28 = vld [vmem:[#allocation2 + $0x210] ss:$8 sps:$4 sm:$0xff]   ;;  %v4329_v10 = vld [vmem:[#allocation2 + $0x254] ss:$8 sps:$4 sm:$0xff]  }
 0x857   :  { %v1636_v53 = vmul.f32 %v1634_v48, %v1589_v29  ;;  %v1638_v54 = vmul.f32 %v1634_v48, %v1595_v31  ;;  %v4318_v29 = vld [vmem:[#allocation2 + $0x220] ss:$8 sps:$4 sm:$0xff]   ;;  %v4327_v31 = vld [vmem:[#allocation2 + $0x250] ss:$8 sps:$4 sm:$0xff]   ;;  %v4353_v47 = vld [vmem:[#allocation2 + $0x2d4] ss:$8 sps:$4 sm:$0xff]  }
 0x858   :  { %v1639_v55 = vpack.c.bf16 %v1635_v50, %v1625_v49  ;;  %v1641_v58 = vpack.c.bf16 %v1637_v51, %v1637_v51  ;;  %v4351_v48 = vld [vmem:[#allocation2 + $0x2d0] ss:$8 sps:$4 sm:$0xff]   ;;  %v4356_v49 = vld [vmem:[#allocation2 + $0x2e4] ss:$8 sps:$4 sm:$0xff]   ;;  %v4354_v50 = vld [vmem:[#allocation2 + $0x2e0] ss:$8 sps:$4 sm:$0xff]  }
 0x859   :  { %v1640_v56 = vpack.c.bf16 %v1636_v53, %v1626_v52  ;;  %v1642_v57 = vpack.c.bf16 %v1638_v54, %v1638_v54  ;;  %v4359_v51 = vld [vmem:[#allocation2 + $0x2f4] ss:$8 sps:$4 sm:$0xff]   ;;  %v4357_v52 = vld [vmem:[#allocation2 + $0x2f0] ss:$8 sps:$4 sm:$0xff]   ;;  %v4360_v53 = vld [vmem:[#allocation4 + $0x200] ss:$8 sps:$4 sm:$0xff]  }
 0x85a   :  { %v4362_v54 = vld [vmem:[#allocation4 + $0x204] ss:$8 sps:$4 sm:$0xff]  }
 0x85b   :  { %1771 = vmatprep.mubr.bf16.mxu1 %v1640_v56  ;;  %2388 = vmatprep.subr.bf16.mxu1 %v4362_v54  ;;  %v4363_v56 = vld [vmem:[#allocation4 + $0x210] ss:$8 sps:$4 sm:$0xff]   ;;  %v4378_v54 = vld [vmem:[#allocation4 + $0x260] ss:$8 sps:$4 sm:$0xff]  }
 0x85c   :  { %1772 = vmatmul.mubr.bf16.vlgmr.msra.gmra.mrb[16].mxu1 %v1639_v55  ;;  %v4365_v55 = vld [vmem:[#allocation4 + $0x214] ss:$8 sps:$4 sm:$0xff]  }
 0x85d   :  { %1779 = vmatprep.mubr.bf16.mxu1 %v1642_v57  ;;  %2389 = vmatpush1.bf16.msra.mxu1 %v4360_v53  ;;  %v4368_v57 = vld [vmem:[#allocation4 + $0x224] ss:$8 sps:$4 sm:$0xff]  }
 0x85e   :  { %2390 = vmatprep.subr.bf16.mxu1 %v4365_v55  ;;  %v4380_v53 = vld [vmem:[#allocation4 + $0x264] ss:$8 sps:$4 sm:$0xff]   ;;  %v4383_v55 = vld [vmem:[#allocation4 + $0x274] ss:$8 sps:$4 sm:$0xff]  }
 0x861   :  { %2391 = vmatpush1.bf16.msra.mxu1 %v4363_v56  ;;  %v4381_v56 = vld [vmem:[#allocation4 + $0x270] ss:$8 sps:$4 sm:$0xff]  }
 0x862   :  { %2392 = vmatprep.subr.bf16.mxu1 %v4368_v57  ;;  %v4386_v57 = vld [vmem:[#allocation4 + $0x284] ss:$8 sps:$4 sm:$0xff]  }
 0x864   :  { %1780 = vmatmul.mubr.bf16.gmra.mrb[20].mxu1 %v1641_v58  ;;  %v4366_v58 = vld [vmem:[#allocation4 + $0x220] ss:$8 sps:$4 sm:$0xff]  }
 0x865   :  { %2393 = vmatpush1.bf16.msra.mxu1 %v4366_v58  ;;  %v4384_v58 = vld [vmem:[#allocation4 + $0x280] ss:$8 sps:$4 sm:$0xff]  }
 0x92f   :  { %v3979_v59 = vpop.f32.mrb[16].mxu1 }
 0x930   :  { %v3980_v60 = vpop.f32.mrb[17].mxu1 }
 0x931   :  { %v3981_v61 = vadd.f32 %v3980_v60, %v3979_v59  ;;  %v3982_v62 = vpop.f32.mrb[18].mxu1  ;;  %v4371_v59 = vld [vmem:[#allocation4 + $0x234] ss:$8 sps:$4 sm:$0xff]   ;;  %v4369_v60 = vld [vmem:[#allocation4 + $0x230] ss:$8 sps:$4 sm:$0xff]  }
 0x932   :  { %v3983_v63 = vpop.f32.mrb[19].mxu1  ;;  %2394 = vmatprep.subr.bf16.mxu1 %v4371_v59  ;;  %v4389_v59 = vld [vmem:[#allocation4 + $0x294] ss:$8 sps:$4 sm:$0xff]  }
 0x933   :  { %v1787_v2 = vadd.f32 %v3981_v61, %v4891_v9  ;;  %v3984_v3 = vadd.f32 %v3983_v63, %v3982_v62  ;;  %v4374_v61 = vld [vmem:[#allocation4 + $0x244] ss:$8 sps:$4 sm:$0xff]   ;;  %2395 = vmatpush1.bf16.msra.mxu1 %v4369_v60  ;;  %v4372_v62 = vld [vmem:[#allocation4 + $0x240] ss:$8 sps:$4 sm:$0xff]   ;;  %v4387_v60 = vld [vmem:[#allocation4 + $0x290] ss:$8 sps:$4 sm:$0xff]  }
 0x934   :  { %2396 = vmatprep.subr.bf16.mxu1 %v4374_v61  ;;  %v4392_v61 = vld [vmem:[#allocation4 + $0x2a4] ss:$8 sps:$4 sm:$0xff]  }
 0x935   :  { %v4937_v4 = vadd.f32 %v3755_v1, %v1787_v2  ;;  %v4941_v20 = vadd.f32 %v3984_v3, %v4900_v23  ;;  %v4317_v23 = vld [vmem:[#allocation2 + $0x214] ss:$8 sps:$4 sm:$0xff]  }
 0x936   :  { %2136 = vmatprep.subr.bf16.mxu0 %v4317_v23 }
 0x937   :  { %v3985_v6 = vpop.f32.mrb[20].mxu1  ;;  %1906 = vadd.xlane.f32.xlu0 %v4937_v4  ;;  %2137 = vmatpush1.bf16.msra.mxu0 %v4315_v28 }
 0x938   :  { %v3986_v11 = vpop.f32.mrb[21].mxu1  ;;  %2138 = vmatprep.subr.bf16.mxu0 %v4320_v7  ;;  %2397 = vmatpush1.bf16.msra.mxu1 %v4372_v62  ;;  %v4390_v62 = vld [vmem:[#allocation4 + $0x2a0] ss:$8 sps:$4 sm:$0xff]  }
 0x939   :  { %v3987_v12 = vadd.f32 %v3986_v11, %v3985_v6  ;;  %v3988_v13 = vpop.f32.mrb[22].mxu1  ;;  %v3761_v6 = vld [vmem:[%s5093_s4 + $0x2] ss:$0 sm:$0xff] }
 0x93a   :  { %v3989_v14 = vpop.f32.mrb[23].mxu1 }
 0x93b   :  { %v4951_v26 = vadd.f32 %v3987_v12, %v4905_v25  ;;  %2139 = vmatpush1.bf16.msra.mxu0 %v4318_v29  ;;  %v4323_v25 = vld [vmem:[#allocation2 + $0x234] ss:$8 sps:$4 sm:$0xff]   ;;  %v3762_v12 = vld [vmem:[%s5094_s5 + $0x2] ss:$0 sm:$0xff] }
 0x93c   :  { %2140 = vmatprep.subr.bf16.mxu0 %v4323_v25 }
 0x93f   :  { %2141 = vmatpush1.bf16.msra.mxu0 %v4321_v22 }
 0x940   :  { %2142 = vmatprep.subr.bf16.mxu0 %v4326_v21 }
 0x943   :  { %2143 = vmatpush1.bf16.msra.mxu0 %v4324_v30 }
 0x944   :  { %2144 = vmatprep.subr.bf16.mxu0 %v4329_v10 }
 0x947   :  { %2145 = vmatpush1.bf16.msra.mxu0 %v4327_v31 }
 0x948   :  { %2146 = vmatprep.subr.bf16.mxu0 %v4332_v32 }
 0x94b   :  { %2147 = vmatpush1.bf16.msra.mxu0 %v4330_v33 }
 0x94c   :  { %2148 = vmatprep.subr.bf16.mxu0 %v4335_v34 }
 0x94f   :  { %2149 = vmatpush1.bf16.msra.mxu0 %v4333_v35 }
 0x950   :  { %2150 = vmatprep.subr.bf16.mxu0 %v4338_v36 }
 0x953   :  { %2151 = vmatpush1.bf16.msra.mxu0 %v4336_v37 }
 0x954   :  { %2152 = vmatprep.subr.bf16.mxu0 %v4341_v38 }
 0x957   :  { %2153 = vmatpush1.bf16.msra.mxu0 %v4339_v39 }
 0x958   :  { %2154 = vmatprep.subr.bf16.mxu0 %v4344_v40 }
 0x95b   :  { %2155 = vmatpush1.bf16.msra.mxu0 %v4342_v41 }
 0x95c   :  { %2156 = vmatprep.subr.bf16.mxu0 %v4347_v42 }
 0x95f   :  { %2157 = vmatpush1.bf16.msra.mxu0 %v4345_v44 }
 0x960   :  { %2158 = vmatprep.subr.bf16.mxu0 %v4350_v45 }
 0x963   :  { %2159 = vmatpush1.bf16.msra.mxu0 %v4348_v46 }
 0x964   :  { %2160 = vmatprep.subr.bf16.mxu0 %v4353_v47 }
 0x967   :  { %2161 = vmatpush1.bf16.msra.mxu0 %v4351_v48 }
 0x968   :  { %2162 = vmatprep.subr.bf16.mxu0 %v4356_v49 }
 0x96b   :  { %2163 = vmatpush1.bf16.msra.mxu0 %v4354_v50 }
 0x96c   :  { %2164 = vmatprep.subr.bf16.mxu0 %v4359_v51  ;;  %v4377_v51 = vld [vmem:[#allocation4 + $0x254] ss:$8 sps:$4 sm:$0xff]  }
 0x96d   :  { %2398 = vmatprep.subr.bf16.mxu1 %v4377_v51 }
 0x96f   :  { %2165 = vmatpush1.bf16.msra.mxu0 %v4357_v52  ;;  %v4375_v52 = vld [vmem:[#allocation4 + $0x250] ss:$8 sps:$4 sm:$0xff]  }
 0x970   :  { %2399 = vmatpush1.bf16.msra.mxu1 %v4375_v52 }
 0x971   :  { %2400 = vmatprep.subr.bf16.mxu1 %v4380_v53 }
 0x974   :  { %2401 = vmatpush1.bf16.msra.mxu1 %v4378_v54 }
 0x975   :  { %2402 = vmatprep.subr.bf16.mxu1 %v4383_v55 }
 0x978   :  { %2403 = vmatpush1.bf16.msra.mxu1 %v4381_v56 }
 0x979   :  { %2404 = vmatprep.subr.bf16.mxu1 %v4386_v57  ;;  %v4408_v57 = vld [vmem:[#allocation6 + $0x140] sm:$0xff]  }
 0x97a   :  { %3991 = vmatprep.subr.bf16.mxu0 %v4408_v57 }
 0x97c   :  { %2405 = vmatpush1.bf16.msra.mxu1 %v4384_v58  ;;  %v4409_v58 = vld [vmem:[#allocation6 + $0x100] sm:$0xff]  }
 0x97d   :  { %2406 = vmatprep.subr.bf16.mxu1 %v4389_v59  ;;  %v4410_v59 = vld [vmem:[#allocation6 + $0x148] sm:$0xff]  }
 0x980   :  { %2407 = vmatpush1.bf16.msra.mxu1 %v4387_v60  ;;  %v4411_v60 = vld [vmem:[#allocation6 + $0x108] sm:$0xff]  }
 0x981   :  { %2408 = vmatprep.subr.bf16.mxu1 %v4392_v61  ;;  %v4412_v61 = vld [vmem:[#allocation6 + $0x150] sm:$0xff]  }
 0x984   :  { %2409 = vmatpush1.bf16.msra.mxu1 %v4390_v62  ;;  %v4413_v62 = vld [vmem:[#allocation6 + $0x110] sm:$0xff]  }
 0x9c4   :  { %v1907_v18 = vpop.xlane.xlu0 %1906 }
 0x9c5   :  { %v1908_v19 = vmul.f32 0.0078125, %v1907_v18 }
 0x9c7   :  { %v4944_v9 = vsub.f32 %v4937_v4, %v1908_v19 }
 0x9c9   :  { %v1945_v16 = vmul.f32 %v4944_v9, %v4941_v20  ;;  %v1910_v24 = vmul.f32 %v4944_v9, %v4944_v9  ;;  %v1960_v27 = vmul.f32 %v4944_v9, %v4951_v26 }
 0x9cb   :  { %1946 = vadd.xlane.f32.xlu0 %v1945_v16  ;;  %1911 = vadd.xlane.f32.xlu1 %v1910_v24 }
 0x9cf   :  { %1961 = vadd.xlane.f32.xlu0 %v1960_v27  ;;  %1942 = vadd.xlane.f32.xlu1 %v4941_v20 }
 0x9d3   :  { %1957 = vadd.xlane.f32.xlu1 %v4951_v26 }
 0xa58   :  { %v1912_v63 = vpop.xlane.xlu1 %1911  ;;  %v1947_v18 = vpop.xlane.xlu0 %1946 }
 0xa59   :  { %v1913_v1 = vmul.f32 0.0078125, %v1912_v63  ;;  %v1948_v24 = vmul.f32 0.0078125, %v1947_v18  ;;  %v4395_v63 = vld [vmem:[#allocation4 + $0x2b4] ss:$8 sps:$4 sm:$0xff]  }
 0xa5a   :  { %2410 = vmatprep.subr.bf16.mxu1 %v4395_v63  ;;  %v4414_v63 = vld [vmem:[#allocation6 + $0x158] sm:$0xff]  }
 0xa5b   :  { %v1914_v2 = vadd.f32 1e-05, %v1913_v1  ;;  %v4393_v1 = vld [vmem:[#allocation4 + $0x2b0] ss:$8 sps:$4 sm:$0xff]  }
 0xa5c   :  { %v1962_v23 = vpop.xlane.xlu0 %1961  ;;  %v1943_v28 = vpop.xlane.xlu1 %1942  ;;  %2411 = vmatpush1.bf16.msra.mxu1 %v4393_v1  ;;  %v4415_v1 = vld [vmem:[#allocation6 + $0x118] sm:$0xff]  }
 0xa5d   :  { %4580 = vrsqrt.f32 %v1914_v2  ;;  %v1963_v7 = vmul.f32 0.0078125, %v1962_v23  ;;  %v4398_v2 = vld [vmem:[#allocation4 + $0x2c4] ss:$8 sps:$4 sm:$0xff]  }
 0xa5e   :  { %2412 = vmatprep.subr.bf16.mxu1 %v4398_v2  ;;  %v4416_v2 = vld [vmem:[#allocation6 + $0x160] sm:$0xff]  }
 0xa60   :  { %v1958_v22 = vpop.xlane.xlu1 %1957 }
 0xa61   :  { %v1959_v34 = vmul.f32 0.0078125, %v1958_v22 }
 0xa63   :  { %v1964_v39 = vsub.f32 %v4951_v26, %v1959_v34 }
 0xa67   :  { %v4581_v3 = vpop.eup %4580 }
 0xa68   :  { %v1916_v11 = vmul.f32 %v4581_v3, %v4944_v9  ;;  %v1951_v27 = vmul.f32 %v4581_v3, %v1948_v24  ;;  %v1944_v9 = vmul.f32 0.0078125, %v1943_v28  ;;  %v1966_v25 = vmul.f32 %v4581_v3, %v1963_v7 }
 0xa69   :  { %v1965_v42 = vmul.f32 %v4581_v3, %v1964_v39 }
 0xa6a   :  { %v1923_v13 = vmul.f32 %v3761_v6, %v1916_v11  ;;  %v1952_v29 = vmul.f32 %v4581_v3, %v1951_v27  ;;  %v1949_v30 = vsub.f32 %v4941_v20, %v1944_v9  ;;  %v1967_v31 = vmul.f32 %v4581_v3, %v1966_v25 }
 0xa6c   :  { %v1930_v14 = vadd.f32 %v3762_v12, %v1923_v13  ;;  %v1953_v21 = vmul.f32 %v1952_v29, %v1916_v11  ;;  %v1950_v33 = vmul.f32 %v4581_v3, %v1949_v30  ;;  %v1968_v37 = vmul.f32 %v1967_v31, %v1916_v11  ;;  %v4396_v3 = vld [vmem:[#allocation4 + $0x2c0] ss:$8 sps:$4 sm:$0xff]   ;;  %v4399_v11 = vld [vmem:[#allocation4 + $0x2d0] ss:$8 sps:$4 sm:$0xff]   ;;  %v4404_v12 = vld [vmem:[#allocation4 + $0x2e4] ss:$8 sps:$4 sm:$0xff]  }
 0xa6d   :  { %2413 = vmatpush1.bf16.msra.mxu1 %v4396_v3  ;;  %v4402_v13 = vld [vmem:[#allocation4 + $0x2e0] ss:$8 sps:$4 sm:$0xff]  }
 0xa6e   :  { %v1931_v15 = vsub.f32 0.0, %v1930_v14  ;;  %v1954_v36 = vsub.f32 %v1950_v33, %v1953_v21  ;;  %v1969_v45 = vsub.f32 %v1965_v42, %v1968_v37  ;;  %v4417_v3 = vld [vmem:[#allocation6 + $0x120] sm:$0xff]  }
 0xa70   :  { %v1932_v17 = vmul.f32 1.442695, %v1931_v15  ;;  %v1955_v41 = vmul.f32 %v3761_v6, %v1954_v36  ;;  %v1970_v48 = vmul.f32 %v3761_v6, %v1969_v45  ;;  %v4401_v6 = vld [vmem:[#allocation4 + $0x2d4] ss:$8 sps:$4 sm:$0xff]   ;;  %v4405_v15 = vld [vmem:[#allocation4 + $0x2f0] ss:$8 sps:$4 sm:$0xff]  }
 0xa71   :  { %2414 = vmatprep.subr.bf16.mxu1 %v4401_v6  ;;  %v4419_v6 = vld [vmem:[#allocation6 + $0x128] sm:$0xff]  }
 0xa72   :  { %4582 = vpow2.f32 %v1932_v17  ;;  %2415 = vmatpush1.bf16.msra.mxu1 %v4399_v11  ;;  %v3758_v17 = vld [vmem:[%s5096_s7 + $0x4] sm:$0x3]  ;;  %v4420_v11 = vld [vmem:[#allocation6 + $0x170] sm:$0xff]  }
 0xa73   :  { %2416 = vmatprep.subr.bf16.mxu1 %v4404_v12  ;;  %v2189_v18 = vrot.slane %v3758_v17, %v4826_v5  ;;  %v4421_v12 = vld [vmem:[#allocation6 + $0x130] sm:$0xff]  }
 0xa76   :  { %2417 = vmatpush1.bf16.msra.mxu1 %v4402_v13  ;;  %v4422_v13 = vld [vmem:[#allocation6 + $0x178] sm:$0xff]  }
 0xa7c   :  { %v4583_v19 = vpop.eup %4582 }
 0xa7d   :  { %v1934_v16 = vadd.f32 1.0, %v4583_v19  ;;  %v2193_v19 = vrot.slane %v3758_v17, %v4835_v8 }
 0xa7f   :  { %4584 = vrcp.f32 %v1934_v16 }
 0xa89   :  { %v4585_v10 = vpop.eup %4584 }
 0xa8a   :  { %v1938_v32 = vsub.f32 1.0, %v4585_v10  ;;  %v1937_v46 = vmul.f32 %v4585_v10, %v1930_v14 }
 0xa8c   :  { %v1939_v35 = vmul.f32 %v1938_v32, %v1930_v14  ;;  %v4407_v14 = vld [vmem:[#allocation4 + $0x2f4] ss:$8 sps:$4 sm:$0xff]  }
 0xa8d   :  { %2418 = vmatprep.subr.bf16.mxu1 %v4407_v14  ;;  %v4423_v14 = vld [vmem:[#allocation6 + $0x138] sm:$0xff]  }
 0xa8e   :  { %v1940_v38 = vadd.f32 1.0, %v1939_v35  ;;  %2419 = vmatpush1.bf16.msra.mxu1 %v4405_v15  ;;  %v3759_v15 = vld [vmem:[%s5098_s9 + $0x4] sm:$0x3] }
 0xa8f   :  { %v2443_v17 = vrot.slane %v3759_v15, %v4826_v5 }
 0xa90   :  { %v1941_v40 = vmul.f32 %v4585_v10, %v1940_v38 }
 0xa92   :  { %v1956_v44 = vmul.f32 %v1955_v41, %v1941_v40  ;;  %v1971_v49 = vmul.f32 %v1970_v48, %v1941_v40 }
 0xa94   :  { %v1972_v47 = vpack.c.bf16 %v1956_v44, %v1937_v46  ;;  %v1973_v50 = vpack.c.bf16 %v1971_v49, %v1971_v49 }
 0xa96   :  { %2167 = vmatmul.mubr.bf16.vlgmr.msra.gmra.mrb[24].mxu0 %v1972_v47 }
 0xa97   :  { %2176 = vmatprep.mubr.bf16.mxu0 %v4702_v0  ;;  %3992 = vmatpush3.bf16.msra.mxu0 %v4409_v58 }
 0xa98   :  { %3993 = vmatprep.subr.bf16.mxu0 %v4410_v59 }
 0xa9b   :  { %3994 = vmatpush3.bf16.msra.mxu0 %v4411_v60 }
 0xa9c   :  { %3995 = vmatprep.subr.bf16.mxu0 %v4412_v61  ;;  %v3844_v61 = vld [vmem:[%s5100_s11 + $0x2] ss:$0 sm:$0xff] }
 0xa9e   :  { %2177 = vmatmul.mubr.bf16.gmra.mrb[28].mxu0 %v1973_v50 }
 0xa9f   :  { %3996 = vmatpush3.bf16.msra.mxu0 %v4413_v62 }
 0xaa0   :  { %3997 = vmatprep.subr.bf16.mxu0 %v4414_v63 }
 0xaa3   :  { %3998 = vmatpush3.bf16.msra.mxu0 %v4415_v1 }
 0xaa4   :  { %3999 = vmatprep.subr.bf16.mxu0 %v4416_v2 }
 0xaa7   :  { %4000 = vmatpush3.bf16.msra.mxu0 %v4417_v3 }
 0xb69   :  { %v2168_v16 = vpop.f32.mrb[24].mxu0 }
 0xb6a   :  { %v2196_v24 = vadd.f32 %v2189_v18, %v2168_v16  ;;  %v2170_v27 = vpop.f32.mrb[25].mxu0  ;;  %v2447_v18 = vrot.slane %v3759_v15, %v4835_v8 }
 0xb6b   :  { %v2197_v23 = vadd.f32 %v2193_v19, %v2170_v27  ;;  %v2172_v28 = vpop.f32.mrb[26].mxu0 }
 0xb6c   :  { %v2198_v7 = vsub.f32 0.0, %v2196_v24  ;;  %v2174_v29 = vpop.f32.mrb[27].mxu0 }
 0xb6d   :  { %v2199_v9 = vsub.f32 0.0, %v2197_v23 }
 0xb6e   :  { %v2200_v25 = vmul.f32 1.442695, %v2198_v7 }
 0xb6f   :  { %v2202_v22 = vmul.f32 1.442695, %v2199_v9 }
 0xb70   :  { %4586 = vpow2.f32 %v2200_v25 }
 0xb71   :  { %4588 = vpow2.f32 %v2202_v22  ;;  %v2178_v21 = vpop.f32.mrb[28].mxu0 }
 0xb72   :  { %v2180_v30 = vpop.f32.mrb[29].mxu0 }
 0xb73   :  { %v2182_v10 = vpop.f32.mrb[30].mxu0 }
 0xb74   :  { %v2183_v31 = vpop.f32.mrb[31].mxu0 }
 0xb7a   :  { %v4587_v32 = vpop.eup %4586 }
 0xb7b   :  { %v4589_v33 = vpop.eup %4588  ;;  %v2204_v34 = vadd.f32 1.0, %v4587_v32 }
 0xb7c   :  { %v2205_v35 = vadd.f32 1.0, %v4589_v33 }
 0xb7d   :  { %4590 = vrcp.f32 %v2204_v34 }
 0xb7e   :  { %4592 = vrcp.f32 %v2205_v35 }
 0xb87   :  { %v4591_v36 = vpop.eup %4590 }
 0xb88   :  { %v4593_v37 = vpop.eup %4592  ;;  %v2212_v38 = vsub.f32 1.0, %v4591_v36  ;;  %v2210_v47 = vmul.f32 %v4591_v36, %v2196_v24 }
 0xb89   :  { %v2213_v39 = vsub.f32 1.0, %v4593_v37  ;;  %v2211_v50 = vmul.f32 %v4593_v37, %v2197_v23 }
 0xb8a   :  { %v2214_v40 = vmul.f32 %v2212_v38, %v2196_v24 }
 0xb8b   :  { %v2215_v41 = vmul.f32 %v2213_v39, %v2197_v23 }
 0xb8c   :  { %v2216_v42 = vadd.f32 1.0, %v2214_v40 }
 0xb8d   :  { %v2217_v44 = vadd.f32 1.0, %v2215_v41 }
 0xb8e   :  { %v2218_v45 = vmul.f32 %v4591_v36, %v2216_v42 }
 0xb8f   :  { %v2219_v46 = vmul.f32 %v4593_v37, %v2217_v44 }
 0xb90   :  { %v2220_v48 = vmul.f32 %v2218_v45, %v2172_v28  ;;  %v2222_v49 = vmul.f32 %v2218_v45, %v2178_v21 }
 0xb91   :  { %v2221_v51 = vmul.f32 %v2219_v46, %v2174_v29  ;;  %v2223_v52 = vmul.f32 %v2219_v46, %v2180_v30 }
 0xb92   :  { %v2224_v53 = vpack.c.bf16 %v2220_v48, %v2210_v47  ;;  %v2226_v56 = vpack.c.bf16 %v2222_v49, %v2222_v49 }
 0xb93   :  { %v2225_v54 = vpack.c.bf16 %v2221_v51, %v2211_v50  ;;  %v2227_v55 = vpack.c.bf16 %v2223_v52, %v2223_v52 }
 0xb95   :  { %2420 = vmatprep.mubr.bf16.mxu1 %v2225_v54 }
 0xb96   :  { %2421 = vmatmul.mubr.bf16.vlgmr.msra.gmra.mrb[24].mxu1 %v2224_v53 }
 0xb97   :  { %2430 = vmatprep.mubr.bf16.mxu1 %v2227_v55 }
 0xb9e   :  { %2431 = vmatmul.mubr.bf16.gmra.mrb[28].mxu1 %v2226_v56 }
 0xb9f   :  { %3884 = vmatprep.mubr.msk.bf16.mxu1 %vm121_vm0, %v4861_v43  ;;  %v4418_v43 = vld [vmem:[#allocation6 + $0x168] sm:$0xff]  }
 0xba0   :  { %4001 = vmatprep.subr.bf16.mxu0 %v4418_v43 }
 0xba1   :  { %4002 = vmatpush3.bf16.msra.mxu0 %v4419_v6 }
 0xba2   :  { %4003 = vmatprep.subr.bf16.mxu0 %v4420_v11 }
 0xba5   :  { %4004 = vmatpush3.bf16.msra.mxu0 %v4421_v12  ;;  %v4424_v12 = vld [vmem:[#allocation2 + $0x300] ss:$8 sps:$4 sm:$0xff]  }
 0xba6   :  { %4005 = vmatprep.subr.bf16.mxu0 %v4422_v13  ;;  %v4426_v13 = vld [vmem:[#allocation2 + $0x304] ss:$8 sps:$4 sm:$0xff]  }
 0xba7   :  { %2973 = vmatprep.subr.bf16.mxu1 %v4426_v13 }
 0xba8   :  { %2974 = vmatpush1.bf16.msra.mxu1 %v4424_v12 }
 0xba9   :  { %4006 = vmatpush3.bf16.msra.mxu0 %v4423_v14 }
 0xc69   :  { %v2422_v19 = vpop.f32.mrb[24].mxu1 }
 0xc6a   :  { %v2450_v16 = vadd.f32 %v2443_v17, %v2422_v19  ;;  %v2424_v24 = vpop.f32.mrb[25].mxu1 }
 0xc6b   :  { %v2451_v27 = vadd.f32 %v2447_v18, %v2424_v24  ;;  %v2426_v23 = vpop.f32.mrb[26].mxu1 }
 0xc6c   :  { %v2452_v28 = vsub.f32 0.0, %v2450_v16  ;;  %v2428_v7 = vpop.f32.mrb[27].mxu1 }
 0xc6d   :  { %v2453_v29 = vsub.f32 0.0, %v2451_v27 }
 0xc6e   :  { %v2454_v9 = vmul.f32 1.442695, %v2452_v28  ;;  %v4430_v28 = vld [vmem:[#allocation2 + $0x320] ss:$8 sps:$4 sm:$0xff]  }
 0xc6f   :  { %v2456_v25 = vmul.f32 1.442695, %v2453_v29  ;;  %v4438_v29 = vld [vmem:[#allocation2 + $0x344] ss:$8 sps:$4 sm:$0xff]  }
 0xc70   :  { %4594 = vpow2.f32 %v2454_v9  ;;  %v4436_v9 = vld [vmem:[#allocation2 + $0x340] ss:$8 sps:$4 sm:$0xff]  }
 0xc71   :  { %4596 = vpow2.f32 %v2456_v25  ;;  %v2432_v22 = vpop.f32.mrb[28].mxu1  ;;  %v4441_v25 = vld [vmem:[#allocation2 + $0x354] ss:$8 sps:$4 sm:$0xff]  }
 0xc72   :  { %v2434_v21 = vpop.f32.mrb[29].mxu1 }
 0xc73   :  { %v2436_v30 = vpop.f32.mrb[30].mxu1 }
 0xc74   :  { %v2437_v10 = vpop.f32.mrb[31].mxu1  ;;  %v4442_v30 = vld [vmem:[#allocation2 + $0x360] ss:$8 sps:$4 sm:$0xff]  }
 0xc75   :  { %v4447_v10 = vld [vmem:[#allocation2 + $0x374] ss:$8 sps:$4 sm:$0xff]  }
 0xc7a   :  { %v4595_v31 = vpop.eup %4594 }
 0xc7b   :  { %v4597_v32 = vpop.eup %4596  ;;  %v2458_v33 = vadd.f32 1.0, %v4595_v31  ;;  %v4445_v31 = vld [vmem:[#allocation2 + $0x370] ss:$8 sps:$4 sm:$0xff]  }
 0xc7c   :  { %v2459_v34 = vadd.f32 1.0, %v4597_v32  ;;  %v4450_v32 = vld [vmem:[#allocation2 + $0x384] ss:$8 sps:$4 sm:$0xff]  }
 0xc7d   :  { %4598 = vrcp.f32 %v2458_v33  ;;  %v4448_v33 = vld [vmem:[#allocation2 + $0x380] ss:$8 sps:$4 sm:$0xff]  }
 0xc7e   :  { %4600 = vrcp.f32 %v2459_v34  ;;  %v4453_v34 = vld [vmem:[#allocation2 + $0x394] ss:$8 sps:$4 sm:$0xff]  }
 0xc87   :  { %v4599_v35 = vpop.eup %4598 }
 0xc88   :  { %v4601_v36 = vpop.eup %4600  ;;  %v2466_v37 = vsub.f32 1.0, %v4599_v35  ;;  %v2464_v46 = vmul.f32 %v4599_v35, %v2450_v16 }
 0xc89   :  { %v2467_v38 = vsub.f32 1.0, %v4601_v36  ;;  %v2465_v49 = vmul.f32 %v4601_v36, %v2451_v27 }
 0xc8a   :  { %v2468_v39 = vmul.f32 %v2466_v37, %v2450_v16  ;;  %v4454_v37 = vld [vmem:[#allocation2 + $0x3a0] ss:$8 sps:$4 sm:$0xff]  }
 0xc8b   :  { %v2469_v40 = vmul.f32 %v2467_v38, %v2451_v27  ;;  %v4427_v27 = vld [vmem:[#allocation2 + $0x310] ss:$8 sps:$4 sm:$0xff]   ;;  %v4459_v38 = vld [vmem:[#allocation2 + $0x3b4] ss:$8 sps:$4 sm:$0xff]  }
 0xc8c   :  { %v2470_v41 = vadd.f32 1.0, %v2468_v39  ;;  %v4457_v39 = vld [vmem:[#allocation2 + $0x3b0] ss:$8 sps:$4 sm:$0xff]  }
 0xc8d   :  { %v2471_v42 = vadd.f32 1.0, %v2469_v40  ;;  %v4462_v40 = vld [vmem:[#allocation2 + $0x3c4] ss:$8 sps:$4 sm:$0xff]  }
 0xc8e   :  { %v2472_v44 = vmul.f32 %v4599_v35, %v2470_v41  ;;  %v4451_v35 = vld [vmem:[#allocation2 + $0x390] ss:$8 sps:$4 sm:$0xff]   ;;  %v4460_v41 = vld [vmem:[#allocation2 + $0x3c0] ss:$8 sps:$4 sm:$0xff]  }
 0xc8f   :  { %v2473_v45 = vmul.f32 %v4601_v36, %v2471_v42  ;;  %v4456_v36 = vld [vmem:[#allocation2 + $0x3a4] ss:$8 sps:$4 sm:$0xff]   ;;  %v4465_v42 = vld [vmem:[#allocation2 + $0x3d4] ss:$8 sps:$4 sm:$0xff]  }
 0xc90   :  { %v2474_v47 = vmul.f32 %v2472_v44, %v2426_v23  ;;  %v2476_v48 = vmul.f32 %v2472_v44, %v2432_v22  ;;  %v4432_v23 = vld [vmem:[#allocation2 + $0x324] ss:$8 sps:$4 sm:$0xff]   ;;  %v4439_v22 = vld [vmem:[#allocation2 + $0x350] ss:$8 sps:$4 sm:$0xff]  }
 0xc91   :  { %v2475_v50 = vmul.f32 %v2473_v45, %v2428_v7  ;;  %v2477_v51 = vmul.f32 %v2473_v45, %v2434_v21  ;;  %v4433_v7 = vld [vmem:[#allocation2 + $0x330] ss:$8 sps:$4 sm:$0xff]   ;;  %v4444_v21 = vld [vmem:[#allocation2 + $0x364] ss:$8 sps:$4 sm:$0xff]  }
 0xc92   :  { %v2478_v52 = vpack.c.bf16 %v2474_v47, %v2464_v46  ;;  %v2480_v55 = vpack.c.bf16 %v2476_v48, %v2476_v48  ;;  %v4463_v44 = vld [vmem:[#allocation2 + $0x3d0] ss:$8 sps:$4 sm:$0xff]   ;;  %v4468_v45 = vld [vmem:[#allocation2 + $0x3e4] ss:$8 sps:$4 sm:$0xff]   ;;  %v4466_v46 = vld [vmem:[#allocation2 + $0x3e0] ss:$8 sps:$4 sm:$0xff]  }
 0xc93   :  { %v2479_v53 = vpack.c.bf16 %v2475_v50, %v2465_v49  ;;  %v2481_v54 = vpack.c.bf16 %v2477_v51, %v2477_v51  ;;  %v4471_v47 = vld [vmem:[#allocation2 + $0x3f4] ss:$8 sps:$4 sm:$0xff]   ;;  %v4469_v48 = vld [vmem:[#allocation2 + $0x3f0] ss:$8 sps:$4 sm:$0xff]   ;;  %v4472_v49 = vld [vmem:[#allocation4 + $0x300] ss:$8 sps:$4 sm:$0xff]  }
 0xc94   :  { %v4474_v50 = vld [vmem:[#allocation4 + $0x304] ss:$8 sps:$4 sm:$0xff]   ;;  %v4477_v51 = vld [vmem:[#allocation4 + $0x314] ss:$8 sps:$4 sm:$0xff]  }
 0xc95   :  { %2610 = vmatprep.mubr.bf16.mxu0 %v2479_v53  ;;  %3227 = vmatprep.subr.bf16.mxu0 %v4474_v50  ;;  %v4480_v53 = vld [vmem:[#allocation4 + $0x324] ss:$8 sps:$4 sm:$0xff]   ;;  %v4495_v50 = vld [vmem:[#allocation4 + $0x374] ss:$8 sps:$4 sm:$0xff]  }
 0xc96   :  { %2611 = vmatmul.mubr.bf16.vlgmr.msra.gmra.mrb[32].mxu0 %v2478_v52  ;;  %v4475_v52 = vld [vmem:[#allocation4 + $0x310] ss:$8 sps:$4 sm:$0xff]  }
 0xc97   :  { %2618 = vmatprep.mubr.bf16.mxu0 %v2481_v54  ;;  %3228 = vmatpush1.bf16.msra.mxu0 %v4472_v49  ;;  %v4478_v54 = vld [vmem:[#allocation4 + $0x320] ss:$8 sps:$4 sm:$0xff]  }
 0xc98   :  { %3229 = vmatprep.subr.bf16.mxu0 %v4477_v51  ;;  %v4490_v49 = vld [vmem:[#allocation4 + $0x360] ss:$8 sps:$4 sm:$0xff]   ;;  %v4493_v51 = vld [vmem:[#allocation4 + $0x370] ss:$8 sps:$4 sm:$0xff]  }
 0xc9b   :  { %3230 = vmatpush1.bf16.msra.mxu0 %v4475_v52  ;;  %v4498_v52 = vld [vmem:[#allocation4 + $0x384] ss:$8 sps:$4 sm:$0xff]  }
 0xc9c   :  { %3231 = vmatprep.subr.bf16.mxu0 %v4480_v53  ;;  %v4496_v53 = vld [vmem:[#allocation4 + $0x380] ss:$8 sps:$4 sm:$0xff]  }
 0xc9e   :  { %2619 = vmatmul.mubr.bf16.gmra.mrb[36].mxu0 %v2480_v55  ;;  %v4483_v55 = vld [vmem:[#allocation4 + $0x334] ss:$8 sps:$4 sm:$0xff]  }
 0xc9f   :  { %3232 = vmatpush1.bf16.msra.mxu0 %v4478_v54  ;;  %v4499_v54 = vld [vmem:[#allocation4 + $0x390] ss:$8 sps:$4 sm:$0xff]  }
 0xca0   :  { %3233 = vmatprep.subr.bf16.mxu0 %v4483_v55  ;;  %v4504_v55 = vld [vmem:[#allocation4 + $0x3a4] ss:$8 sps:$4 sm:$0xff]  }
 0xd69   :  { %v4007_v56 = vpop.f32.mrb[32].mxu0 }
 0xd6a   :  { %v4008_v57 = vpop.f32.mrb[33].mxu0 }
 0xd6b   :  { %v4009_v58 = vadd.f32 %v4008_v57, %v4007_v56  ;;  %v4010_v59 = vpop.f32.mrb[34].mxu0  ;;  %v4481_v56 = vld [vmem:[#allocation4 + $0x330] ss:$8 sps:$4 sm:$0xff]   ;;  %v4486_v57 = vld [vmem:[#allocation4 + $0x344] ss:$8 sps:$4 sm:$0xff]  }
 0xd6c   :  { %v4011_v60 = vpop.f32.mrb[35].mxu0  ;;  %3234 = vmatpush1.bf16.msra.mxu0 %v4481_v56  ;;  %v4502_v56 = vld [vmem:[#allocation4 + $0x3a0] ss:$8 sps:$4 sm:$0xff]  }
 0xd6d   :  { %v2626_v62 = vadd.f32 %v4009_v58, %v4937_v4  ;;  %v4012_v63 = vadd.f32 %v4011_v60, %v4010_v59  ;;  %v4484_v58 = vld [vmem:[#allocation4 + $0x340] ss:$8 sps:$4 sm:$0xff]   ;;  %3235 = vmatprep.subr.bf16.mxu0 %v4486_v57  ;;  %v4507_v57 = vld [vmem:[#allocation4 + $0x3b4] ss:$8 sps:$4 sm:$0xff]  }
 0xd6f   :  { %v4983_v1 = vadd.f32 %v3844_v61, %v2626_v62  ;;  %v4987_v17 = vadd.f32 %v4012_v63, %v4941_v20  ;;  %v4429_v20 = vld [vmem:[#allocation2 + $0x314] ss:$8 sps:$4 sm:$0xff]   ;;  %v3850_v63 = vld [vmem:[%s5093_s4 + $0x3] ss:$0 sm:$0xff] }
 0xd70   :  { %2975 = vmatprep.subr.bf16.mxu1 %v4429_v20  ;;  %3236 = vmatpush1.bf16.msra.mxu0 %v4484_v58  ;;  %v4505_v58 = vld [vmem:[#allocation4 + $0x3b0] ss:$8 sps:$4 sm:$0xff]  }
 0xd71   :  { %v4013_v2 = vpop.f32.mrb[36].mxu0  ;;  %2745 = vadd.xlane.f32.xlu0 %v4983_v1  ;;  %2976 = vmatpush1.bf16.msra.mxu1 %v4427_v27 }
 0xd72   :  { %v4014_v3 = vpop.f32.mrb[37].mxu0  ;;  %2977 = vmatprep.subr.bf16.mxu1 %v4432_v23 }
 0xd73   :  { %v4015_v43 = vadd.f32 %v4014_v3, %v4013_v2  ;;  %v4016_v6 = vpop.f32.mrb[38].mxu0  ;;  %v3851_v3 = vld [vmem:[%s5094_s5 + $0x3] ss:$0 sm:$0xff] }
 0xd74   :  { %v4017_v11 = vpop.f32.mrb[39].mxu0 }
 0xd75   :  { %v4997_v16 = vadd.f32 %v4015_v43, %v4951_v26  ;;  %2978 = vmatpush1.bf16.msra.mxu1 %v4430_v28  ;;  %v4435_v26 = vld [vmem:[#allocation2 + $0x334] ss:$8 sps:$4 sm:$0xff]  }
 0xd76   :  { %2979 = vmatprep.subr.bf16.mxu1 %v4435_v26 }
 0xd79   :  { %2980 = vmatpush1.bf16.msra.mxu1 %v4433_v7 }
 0xd7a   :  { %2981 = vmatprep.subr.bf16.mxu1 %v4438_v29 }
 0xd7d   :  { %2982 = vmatpush1.bf16.msra.mxu1 %v4436_v9 }
 0xd7e   :  { %2983 = vmatprep.subr.bf16.mxu1 %v4441_v25 }
 0xd81   :  { %2984 = vmatpush1.bf16.msra.mxu1 %v4439_v22 }
 0xd82   :  { %2985 = vmatprep.subr.bf16.mxu1 %v4444_v21 }
 0xd85   :  { %2986 = vmatpush1.bf16.msra.mxu1 %v4442_v30 }
 0xd86   :  { %2987 = vmatprep.subr.bf16.mxu1 %v4447_v10 }
 0xd89   :  { %2988 = vmatpush1.bf16.msra.mxu1 %v4445_v31 }
 0xd8a   :  { %2989 = vmatprep.subr.bf16.mxu1 %v4450_v32 }
 0xd8d   :  { %2990 = vmatpush1.bf16.msra.mxu1 %v4448_v33 }
 0xd8e   :  { %2991 = vmatprep.subr.bf16.mxu1 %v4453_v34 }
 0xd91   :  { %2992 = vmatpush1.bf16.msra.mxu1 %v4451_v35 }
 0xd92   :  { %2993 = vmatprep.subr.bf16.mxu1 %v4456_v36 }
 0xd95   :  { %2994 = vmatpush1.bf16.msra.mxu1 %v4454_v37 }
 0xd96   :  { %2995 = vmatprep.subr.bf16.mxu1 %v4459_v38 }
 0xd99   :  { %2996 = vmatpush1.bf16.msra.mxu1 %v4457_v39 }
 0xd9a   :  { %2997 = vmatprep.subr.bf16.mxu1 %v4462_v40 }
 0xd9d   :  { %2998 = vmatpush1.bf16.msra.mxu1 %v4460_v41 }
 0xd9e   :  { %2999 = vmatprep.subr.bf16.mxu1 %v4465_v42 }
 0xda1   :  { %3000 = vmatpush1.bf16.msra.mxu1 %v4463_v44 }
 0xda2   :  { %3001 = vmatprep.subr.bf16.mxu1 %v4468_v45 }
 0xda5   :  { %3002 = vmatpush1.bf16.msra.mxu1 %v4466_v46  ;;  %v4489_v46 = vld [vmem:[#allocation4 + $0x354] ss:$8 sps:$4 sm:$0xff]  }
 0xda6   :  { %3003 = vmatprep.subr.bf16.mxu1 %v4471_v47  ;;  %v4487_v47 = vld [vmem:[#allocation4 + $0x350] ss:$8 sps:$4 sm:$0xff]   ;;  %3237 = vmatprep.subr.bf16.mxu0 %v4489_v46 }
 0xda7   :  { %3238 = vmatpush1.bf16.msra.mxu0 %v4487_v47 }
 0xda9   :  { %3004 = vmatpush1.bf16.msra.mxu1 %v4469_v48  ;;  %v4492_v48 = vld [vmem:[#allocation4 + $0x364] ss:$8 sps:$4 sm:$0xff]  }
 0xdaa   :  { %3239 = vmatprep.subr.bf16.mxu0 %v4492_v48 }
 0xdab   :  { %3240 = vmatpush1.bf16.msra.mxu0 %v4490_v49 }
 0xdac   :  { %3241 = vmatprep.subr.bf16.mxu0 %v4495_v50  ;;  %v4520_v50 = vld [vmem:[#allocation6 + $0x1c0] sm:$0xff]  }
 0xdad   :  { %4019 = vmatprep.subr.bf16.mxu1 %v4520_v50 }
 0xdaf   :  { %3242 = vmatpush1.bf16.msra.mxu0 %v4493_v51  ;;  %v4521_v51 = vld [vmem:[#allocation6 + $0x180] sm:$0xff]  }
 0xdb0   :  { %3243 = vmatprep.subr.bf16.mxu0 %v4498_v52  ;;  %v4522_v52 = vld [vmem:[#allocation6 + $0x1c8] sm:$0xff]  }
 0xdb3   :  { %3244 = vmatpush1.bf16.msra.mxu0 %v4496_v53  ;;  %v4523_v53 = vld [vmem:[#allocation6 + $0x188] sm:$0xff]  }
 0xdfe   :  { %v2746_v14 = vpop.xlane.xlu0 %2745 }
 0xdff   :  { %v2747_v15 = vmul.f32 0.0078125, %v2746_v14 }
 0xe01   :  { %v4990_v4 = vsub.f32 %v4983_v1, %v2747_v15 }
 0xe03   :  { %v2784_v18 = vmul.f32 %v4990_v4, %v4987_v17  ;;  %v2749_v19 = vmul.f32 %v4990_v4, %v4990_v4  ;;  %v2799_v24 = vmul.f32 %v4990_v4, %v4997_v16 }
 0xe05   :  { %2785 = vadd.xlane.f32.xlu0 %v2784_v18  ;;  %2750 = vadd.xlane.f32.xlu1 %v2749_v19 }
 0xe09   :  { %2800 = vadd.xlane.f32.xlu0 %v2799_v24  ;;  %2781 = vadd.xlane.f32.xlu1 %v4987_v17 }
 0xe0d   :  { %2796 = vadd.xlane.f32.xlu1 %v4997_v16 }
 0xe92   :  { %v2751_v59 = vpop.xlane.xlu1 %2750  ;;  %v2786_v13 = vpop.xlane.xlu0 %2785 }
 0xe93   :  { %v2752_v60 = vmul.f32 0.0078125, %v2751_v59  ;;  %v2787_v18 = vmul.f32 0.0078125, %v2786_v13  ;;  %v4510_v59 = vld [vmem:[#allocation4 + $0x3c4] ss:$8 sps:$4 sm:$0xff]  }
 0xe95   :  { %v2753_v61 = vadd.f32 1e-05, %v2752_v60  ;;  %v4508_v60 = vld [vmem:[#allocation4 + $0x3c0] ss:$8 sps:$4 sm:$0xff]  }
 0xe96   :  { %v2801_v24 = vpop.xlane.xlu0 %2800  ;;  %v2782_v20 = vpop.xlane.xlu1 %2781 }
 0xe97   :  { %4602 = vrsqrt.f32 %v2753_v61  ;;  %v2802_v27 = vmul.f32 0.0078125, %v2801_v24  ;;  %v4513_v61 = vld [vmem:[#allocation4 + $0x3d4] ss:$8 sps:$4 sm:$0xff]  }
 0xe9a   :  { %v2797_v26 = vpop.xlane.xlu1 %2796 }
 0xe9b   :  { %v2798_v30 = vmul.f32 0.0078125, %v2797_v26 }
 0xe9d   :  { %v2803_v34 = vsub.f32 %v4997_v16, %v2798_v30 }
 0xea1   :  { %v4603_v62 = vpop.eup %4602 }
 0xea2   :  { %v2755_v2 = vmul.f32 %v4603_v62, %v4990_v4  ;;  %v2790_v19 = vmul.f32 %v4603_v62, %v2787_v18  ;;  %v2783_v4 = vmul.f32 0.0078125, %v2782_v20  ;;  %v2805_v28 = vmul.f32 %v4603_v62, %v2802_v27 }
 0xea3   :  { %v2804_v37 = vmul.f32 %v4603_v62, %v2803_v34 }
 0xea4   :  { %v2762_v43 = vmul.f32 %v3850_v63, %v2755_v2  ;;  %v2791_v23 = vmul.f32 %v4603_v62, %v2790_v19  ;;  %v2788_v29 = vsub.f32 %v4987_v17, %v2783_v4  ;;  %v2806_v25 = vmul.f32 %v4603_v62, %v2805_v28 }
 0xea6   :  { %v2769_v6 = vadd.f32 %v3851_v3, %v2762_v43  ;;  %v2792_v7 = vmul.f32 %v2791_v23, %v2755_v2  ;;  %v2789_v21 = vmul.f32 %v4603_v62, %v2788_v29  ;;  %v2807_v32 = vmul.f32 %v2806_v25, %v2755_v2  ;;  %v4511_v62 = vld [vmem:[#allocation4 + $0x3d0] ss:$8 sps:$4 sm:$0xff]   ;;  %v4514_v2 = vld [vmem:[#allocation4 + $0x3e0] ss:$8 sps:$4 sm:$0xff]   ;;  %v4519_v3 = vld [vmem:[#allocation4 + $0x3f4] ss:$8 sps:$4 sm:$0xff]  }
 0xea7   :  { %v4517_v43 = vld [vmem:[#allocation4 + $0x3f0] ss:$8 sps:$4 sm:$0xff]  }
 0xea8   :  { %v2770_v11 = vsub.f32 0.0, %v2769_v6  ;;  %v2793_v31 = vsub.f32 %v2789_v21, %v2792_v7  ;;  %v2808_v39 = vsub.f32 %v2804_v37, %v2807_v32 }
 0xeaa   :  { %v2771_v12 = vmul.f32 1.442695, %v2770_v11  ;;  %v2794_v36 = vmul.f32 %v3850_v63, %v2793_v31  ;;  %v2809_v42 = vmul.f32 %v3850_v63, %v2808_v39  ;;  %v4516_v63 = vld [vmem:[#allocation4 + $0x3e4] ss:$8 sps:$4 sm:$0xff]  }
 0xeac   :  { %4604 = vpow2.f32 %v2771_v12 }
 0xeb6   :  { %v4605_v14 = vpop.eup %4604 }
 0xeb7   :  { %v2773_v15 = vadd.f32 1.0, %v4605_v14 }
 0xeb9   :  { %4606 = vrcp.f32 %v2773_v15 }
 0xec3   :  { %v4607_v9 = vpop.eup %4606 }
 0xec4   :  { %v2777_v22 = vsub.f32 1.0, %v4607_v9  ;;  %v2776_v40 = vmul.f32 %v4607_v9, %v2769_v6 }
 0xec6   :  { %v2778_v10 = vmul.f32 %v2777_v22, %v2769_v6  ;;  %v3847_v6 = vld [vmem:[%s5096_s7 + $0x6] sm:$0x3] }
 0xec7   :  { %v3028_v11 = vrot.slane %v3847_v6, %v4826_v5  ;;  %v3032_v12 = vrot.slane %v3847_v6, %v4835_v8  ;;  %v3477_v6 = vld [vmem:[%s5101_s12 + $0x10] sm:$0xff] }
 0xec8   :  { %v2779_v33 = vadd.f32 1.0, %v2778_v10 }
 0xeca   :  { %v2780_v35 = vmul.f32 %v4607_v9, %v2779_v33 }
 0xecc   :  { %v2795_v38 = vmul.f32 %v2794_v36, %v2780_v35  ;;  %v2810_v44 = vmul.f32 %v2809_v42, %v2780_v35 }
 0xece   :  { %v2811_v41 = vpack.c.bf16 %v2795_v38, %v2776_v40  ;;  %v2812_v45 = vpack.c.bf16 %v2810_v44, %v2810_v44 }
 0xed0   :  { %3006 = vmatmul.mubr.bf16.vlgmr.msra.gmra.mrb[32].mxu1 %v2811_v41 }
 0xed1   :  { %3015 = vmatprep.mubr.bf16.mxu1 %v4702_v0  ;;  %v4501_v0 = vld [vmem:[#allocation4 + $0x394] ss:$8 sps:$4 sm:$0xff]   ;;  %4020 = vmatpush3.bf16.msra.mxu1 %v4521_v51 }
 0xed2   :  { %3245 = vmatprep.subr.bf16.mxu0 %v4501_v0  ;;  %4021 = vmatprep.subr.bf16.mxu1 %v4522_v52  ;;  %v4524_v0 = vld [vmem:[#allocation6 + $0x1d0] sm:$0xff]  }
 0xed3   :  { %3246 = vmatpush1.bf16.msra.mxu0 %v4499_v54  ;;  %v4525_v54 = vld [vmem:[#allocation6 + $0x190] sm:$0xff]  }
 0xed4   :  { %3247 = vmatprep.subr.bf16.mxu0 %v4504_v55  ;;  %v4526_v55 = vld [vmem:[#allocation6 + $0x1d8] sm:$0xff]  }
 0xed5   :  { %4022 = vmatpush3.bf16.msra.mxu1 %v4523_v53 }
 0xed6   :  { %4023 = vmatprep.subr.bf16.mxu1 %v4524_v0 }
 0xed7   :  { %3248 = vmatpush1.bf16.msra.mxu0 %v4502_v56  ;;  %v4527_v56 = vld [vmem:[#allocation6 + $0x198] sm:$0xff]  }
 0xed8   :  { %3016 = vmatmul.mubr.bf16.gmra.mrb[36].mxu1 %v2812_v45  ;;  %3249 = vmatprep.subr.bf16.mxu0 %v4507_v57  ;;  %v4528_v57 = vld [vmem:[#allocation6 + $0x1e0] sm:$0xff]  }
 0xed9   :  { %4024 = vmatpush3.bf16.msra.mxu1 %v4525_v54 }
 0xeda   :  { %4025 = vmatprep.subr.bf16.mxu1 %v4526_v55 }
 0xedb   :  { %3250 = vmatpush1.bf16.msra.mxu0 %v4505_v58  ;;  %v4529_v58 = vld [vmem:[#allocation6 + $0x1a0] sm:$0xff]  }
 0xedc   :  { %3251 = vmatprep.subr.bf16.mxu0 %v4510_v59  ;;  %v4530_v59 = vld [vmem:[#allocation6 + $0x1e8] sm:$0xff]  }
 0xedd   :  { %4026 = vmatpush3.bf16.msra.mxu1 %v4527_v56 }
 0xede   :  { %4027 = vmatprep.subr.bf16.mxu1 %v4528_v57  ;;  %v3483_v57 = vld [vmem:[%s5101_s12 + $0x40] sm:$0xff] }
 0xedf   :  { %3252 = vmatpush1.bf16.msra.mxu0 %v4508_v60  ;;  %v4531_v60 = vld [vmem:[#allocation6 + $0x1a8] sm:$0xff]  }
 0xee0   :  { %3253 = vmatprep.subr.bf16.mxu0 %v4513_v61  ;;  %v4532_v61 = vld [vmem:[#allocation6 + $0x1f0] sm:$0xff]  }
 0xee1   :  { %4028 = vmatpush3.bf16.msra.mxu1 %v4529_v58  ;;  %v3484_v58 = vld [vmem:[%s5101_s12 + $0x48] sm:$0xff] }
 0xee2   :  { %4029 = vmatprep.subr.bf16.mxu1 %v4530_v59  ;;  %v3495_v59 = vpack.c.bf16 %v3484_v58, %v3483_v57 }
 0xee3   :  { %3254 = vmatpush1.bf16.msra.mxu0 %v4511_v62  ;;  %v4533_v62 = vld [vmem:[#allocation6 + $0x1b0] sm:$0xff]  }
 0xee4   :  { %3255 = vmatprep.subr.bf16.mxu0 %v4516_v63  ;;  %v4534_v63 = vld [vmem:[#allocation6 + $0x1f8] sm:$0xff]  }
 0xee5   :  { %4030 = vmatpush3.bf16.msra.mxu1 %v4531_v60  ;;  %v3485_v60 = vld [vmem:[%s5101_s12 + $0x50] sm:$0xff] }
 0xee6   :  { %4031 = vmatprep.subr.bf16.mxu1 %v4532_v61  ;;  %v3486_v61 = vld [vmem:[%s5101_s12 + $0x58] sm:$0xff] }
 0xee7   :  { %3256 = vmatpush1.bf16.msra.mxu0 %v4514_v2  ;;  %v4535_v2 = vld [vmem:[#allocation6 + $0x1b8] sm:$0xff]  }
 0xee8   :  { %3257 = vmatprep.subr.bf16.mxu0 %v4519_v3  ;;  %v3475_v3 = vld [vmem:[%s5101_s12] sm:$0xff] }
 0xee9   :  { %4032 = vmatpush3.bf16.msra.mxu1 %v4533_v62  ;;  %v3496_v62 = vpack.c.bf16 %v3486_v61, %v3485_v60 }
 0xeea   :  { %4033 = vmatprep.subr.bf16.mxu1 %v4534_v63  ;;  %v3487_v63 = vld [vmem:[%s5101_s12 + $0x60] sm:$0xff] }
 0xeeb   :  { %3258 = vmatpush1.bf16.msra.mxu0 %v4517_v43  ;;  %v3476_v43 = vld [vmem:[%s5101_s12 + $0x8] sm:$0xff] }
 0xeed   :  { %4034 = vmatpush3.bf16.msra.mxu1 %v4535_v2  ;;  %v3488_v2 = vld [vmem:[%s5101_s12 + $0x68] sm:$0xff] }
 0xfa3   :  { %v3007_v13 = vpop.f32.mrb[32].mxu1 }
 0xfa4   :  { %v3035_v14 = vadd.f32 %v3028_v11, %v3007_v13  ;;  %v3009_v15 = vpop.f32.mrb[33].mxu1  ;;  %v3491_v11 = vpack.c.bf16 %v3476_v43, %v3475_v3  ;;  %v3497_v3 = vpack.c.bf16 %v3488_v2, %v3487_v63  ;;  %v3489_v43 = vld [vmem:[%s5101_s12 + $0x70] sm:$0xff] }
 0xfa5   :  { %v3036_v18 = vadd.f32 %v3032_v12, %v3009_v15  ;;  %v3011_v19 = vpop.f32.mrb[34].mxu1  ;;  %v3478_v12 = vld [vmem:[%s5101_s12 + $0x18] sm:$0xff]  ;;  %v3480_v15 = vld [vmem:[%s5101_s12 + $0x28] sm:$0xff] }
 0xfa6   :  { %v3037_v24 = vsub.f32 0.0, %v3035_v14  ;;  %v3013_v20 = vpop.f32.mrb[35].mxu1  ;;  %v3492_v13 = vpack.c.bf16 %v3478_v12, %v3477_v6  ;;  %4057 = vmatprep.subr.bf16.mxu0 %v3491_v11  ;;  %v3490_v6 = vld [vmem:[%s5101_s12 + $0x78] sm:$0xff] }
 0xfa7   :  { %v3038_v27 = vsub.f32 0.0, %v3036_v18 }
 0xfa8   :  { %v3039_v23 = vmul.f32 1.442695, %v3037_v24  ;;  %v3482_v24 = vld [vmem:[%s5101_s12 + $0x38] sm:$0xff] }
 0xfa9   :  { %v3041_v4 = vmul.f32 1.442695, %v3038_v27  ;;  %v3848_v27 = vld [vmem:[%s5098_s9 + $0x6] sm:$0x3] }
 0xfaa   :  { %4608 = vpow2.f32 %v3039_v23  ;;  %v3282_v23 = vrot.slane %v3848_v27, %v4826_v5 }
 0xfab   :  { %4610 = vpow2.f32 %v3041_v4  ;;  %v3017_v28 = vpop.f32.mrb[36].mxu1  ;;  %v3286_v4 = vrot.slane %v3848_v27, %v4835_v8 }
 0xfac   :  { %v3019_v26 = vpop.f32.mrb[37].mxu1 }
 0xfad   :  { %v3021_v7 = vpop.f32.mrb[38].mxu1 }
 0xfae   :  { %v3022_v29 = vpop.f32.mrb[39].mxu1 }
 0xfb4   :  { %v4609_v9 = vpop.eup %4608 }
 0xfb5   :  { %v4611_v25 = vpop.eup %4610  ;;  %v3043_v22 = vadd.f32 1.0, %v4609_v9 }
 0xfb6   :  { %v3044_v21 = vadd.f32 1.0, %v4611_v25 }
 0xfb7   :  { %4612 = vrcp.f32 %v3043_v22 }
 0xfb8   :  { %4614 = vrcp.f32 %v3044_v21 }
 0xfc1   :  { %v4613_v30 = vpop.eup %4612 }
 0xfc2   :  { %v4615_v10 = vpop.eup %4614  ;;  %v3051_v31 = vsub.f32 1.0, %v4613_v30  ;;  %v3049_v39 = vmul.f32 %v4613_v30, %v3035_v14 }
 0xfc3   :  { %v3052_v32 = vsub.f32 1.0, %v4615_v10  ;;  %v3050_v42 = vmul.f32 %v4615_v10, %v3036_v18 }
 0xfc4   :  { %v3053_v33 = vmul.f32 %v3051_v31, %v3035_v14  ;;  %v3479_v14 = vld [vmem:[%s5101_s12 + $0x20] sm:$0xff] }
 0xfc5   :  { %v3054_v34 = vmul.f32 %v3052_v32, %v3036_v18  ;;  %v3493_v18 = vpack.c.bf16 %v3480_v15, %v3479_v14 }
 0xfc6   :  { %v3055_v35 = vadd.f32 1.0, %v3053_v33 }
 0xfc7   :  { %v3056_v36 = vadd.f32 1.0, %v3054_v34 }
 0xfc8   :  { %v3057_v37 = vmul.f32 %v4613_v30, %v3055_v35 }
 0xfc9   :  { %v3058_v38 = vmul.f32 %v4615_v10, %v3056_v36 }
 0xfca   :  { %v3059_v40 = vmul.f32 %v3057_v37, %v3011_v19  ;;  %v3061_v41 = vmul.f32 %v3057_v37, %v3017_v28  ;;  %v3481_v19 = vld [vmem:[%s5101_s12 + $0x30] sm:$0xff] }
 0xfcb   :  { %v3060_v44 = vmul.f32 %v3058_v38, %v3013_v20  ;;  %v3062_v45 = vmul.f32 %v3058_v38, %v3019_v26  ;;  %v3494_v20 = vpack.c.bf16 %v3482_v24, %v3481_v19 }
 0xfcc   :  { %v3063_v46 = vpack.c.bf16 %v3059_v40, %v3049_v39  ;;  %v3065_v49 = vpack.c.bf16 %v3061_v41, %v3061_v41 }
 0xfcd   :  { %v3064_v47 = vpack.c.bf16 %v3060_v44, %v3050_v42  ;;  %v3066_v48 = vpack.c.bf16 %v3062_v45, %v3062_v45 }
 0xfcf   :  { %3259 = vmatprep.mubr.bf16.mxu0 %v3064_v47 }
 0xfd0   :  { %3260 = vmatmul.mubr.bf16.vlgmr.msra.gmra.mrb[40].mxu0 %v3063_v46 }
 0xfd1   :  { %3269 = vmatprep.mubr.bf16.mxu0 %v3066_v48  ;;  %4058 = vmatpush3.bf16.msra.mxu0 %v3491_v11  ;;  %v3498_v11 = vpack.c.bf16 %v3490_v6, %v3489_v43 }
 0xfd2   :  { %4059 = vmatprep.subr.bf16.mxu0 %v3492_v13 }
 0xfd5   :  { %4060 = vmatpush3.bf16.msra.mxu0 %v3492_v13 }
 0xfd6   :  { %4061 = vmatprep.subr.bf16.mxu0 %v3493_v18 }
 0xfd8   :  { %3270 = vmatmul.mubr.bf16.gmra.mrb[44].mxu0 %v3065_v49 }
 0xfd9   :  { %4062 = vmatpush3.bf16.msra.mxu0 %v3493_v18  ;;  %v3933_v18 = vld [vmem:[%s5100_s11 + $0x3] ss:$0 sm:$0xff] }
 0xfda   :  { %4063 = vmatprep.subr.bf16.mxu0 %v3494_v20 }
 0xfdd   :  { %4064 = vmatpush3.bf16.msra.mxu0 %v3494_v20 }
 0xfde   :  { %4065 = vmatprep.subr.bf16.mxu0 %v3495_v59 }
 0xfe1   :  { %4066 = vmatpush3.bf16.msra.mxu0 %v3495_v59 }
 0xfe2   :  { %4067 = vmatprep.subr.bf16.mxu0 %v3496_v62 }
 0xfe5   :  { %4068 = vmatpush3.bf16.msra.mxu0 %v3496_v62 }
 0xfe6   :  { %4069 = vmatprep.subr.bf16.mxu0 %v3497_v3 }
 0xfe9   :  { %4070 = vmatpush3.bf16.msra.mxu0 %v3497_v3 }
 0xfea   :  { %4071 = vmatprep.subr.bf16.mxu0 %v3498_v11 }
 0xfed   :  { %4072 = vmatpush3.bf16.msra.mxu0 %v3498_v11 }
0x10a3   :  { %v3261_v28 = vpop.f32.mrb[40].mxu0 }
0x10a4   :  { %v3289_v26 = vadd.f32 %v3282_v23, %v3261_v28  ;;  %v3263_v7 = vpop.f32.mrb[41].mxu0 }
0x10a5   :  { %v3290_v29 = vadd.f32 %v3286_v4, %v3263_v7  ;;  %v3265_v9 = vpop.f32.mrb[42].mxu0 }
0x10a6   :  { %v3291_v25 = vsub.f32 0.0, %v3289_v26  ;;  %v3267_v22 = vpop.f32.mrb[43].mxu0 }
0x10a7   :  { %v3292_v21 = vsub.f32 0.0, %v3290_v29 }
0x10a8   :  { %v3293_v30 = vmul.f32 1.442695, %v3291_v25 }
0x10a9   :  { %v3295_v10 = vmul.f32 1.442695, %v3292_v21  ;;  %v3934_v21 = vld [vmem:[%s5102_s13] ss:$0 sm:$0xff] }
0x10aa   :  { %4616 = vpow2.f32 %v3293_v30 }
0x10ab   :  { %4618 = vpow2.f32 %v3295_v10  ;;  %v3271_v31 = vpop.f32.mrb[44].mxu0 }
0x10ac   :  { %v3273_v32 = vpop.f32.mrb[45].mxu0 }
0x10ad   :  { %v3275_v33 = vpop.f32.mrb[46].mxu0 }
0x10ae   :  { %v3276_v34 = vpop.f32.mrb[47].mxu0 }
0x10b4   :  { %v4617_v35 = vpop.eup %4616 }
0x10b5   :  { %v4619_v5 = vpop.eup %4618  ;;  %v3297_v36 = vadd.f32 1.0, %v4617_v35 }
0x10b6   :  { %v3298_v8 = vadd.f32 1.0, %v4619_v5 }
0x10b7   :  { %4620 = vrcp.f32 %v3297_v36 }
0x10b8   :  { %4622 = vrcp.f32 %v3298_v8 }
0x10c1   :  { %v4621_v37 = vpop.eup %4620 }
0x10c2   :  { %v4623_v38 = vpop.eup %4622  ;;  %v3305_v39 = vsub.f32 1.0, %v4621_v37  ;;  %v3303_v48 = vmul.f32 %v4621_v37, %v3289_v26 }
0x10c3   :  { %v3306_v40 = vsub.f32 1.0, %v4623_v38  ;;  %v3304_v51 = vmul.f32 %v4623_v38, %v3290_v29 }
0x10c4   :  { %v3307_v41 = vmul.f32 %v3305_v39, %v3289_v26 }
0x10c5   :  { %v3308_v42 = vmul.f32 %v3306_v40, %v3290_v29 }
0x10c6   :  { %v3309_v44 = vadd.f32 1.0, %v3307_v41 }
0x10c7   :  { %v3310_v45 = vadd.f32 1.0, %v3308_v42 }
0x10c8   :  { %v3311_v46 = vmul.f32 %v4621_v37, %v3309_v44 }
0x10c9   :  { %v3312_v47 = vmul.f32 %v4623_v38, %v3310_v45 }
0x10ca   :  { %v3313_v49 = vmul.f32 %v3311_v46, %v3265_v9  ;;  %v3315_v50 = vmul.f32 %v3311_v46, %v3271_v31 }
0x10cb   :  { %v3314_v52 = vmul.f32 %v3312_v47, %v3267_v22  ;;  %v3316_v53 = vmul.f32 %v3312_v47, %v3273_v32  ;;  %v4624_v32 = vld [vmem:[%s5089_s0] sm:$0xff] }
0x10cc   :  { %v3317_v0 = vpack.c.bf16 %v3313_v49, %v3303_v48  ;;  %v3319_v56 = vpack.c.bf16 %v3315_v50, %v3315_v50 }
0x10cd   :  { %v3318_v54 = vpack.c.bf16 %v3314_v52, %v3304_v51  ;;  %v3320_v55 = vpack.c.bf16 %v3316_v53, %v3316_v53 }
0x10cf   :  { %3449 = vmatprep.mubr.bf16.mxu1 %v3318_v54 }
0x10d0   :  { %3450 = vmatmul.mubr.bf16.vlgmr.msra.gmra.mrb[40].mxu1 %v3317_v0 }
0x10d1   :  { %3457 = vmatprep.mubr.bf16.mxu1 %v3320_v55 }
0x10d8   :  { %3458 = vmatmul.mubr.bf16.gmra.mrb[44].mxu1 %v3319_v56 }
0x11a3   :  { %v4035_v12 = vpop.f32.mrb[40].mxu1 }
0x11a4   :  { %v4036_v13 = vpop.f32.mrb[41].mxu1 }
0x11a5   :  { %v4037_v14 = vadd.f32 %v4036_v13, %v4035_v12  ;;  %v4038_v15 = vpop.f32.mrb[42].mxu1 }
0x11a6   :  { %v4039_v19 = vpop.f32.mrb[43].mxu1 }
0x11a7   :  { %v3465_v24 = vadd.f32 %v4037_v14, %v4983_v1  ;;  %v4040_v20 = vadd.f32 %v4039_v19, %v4038_v15 }
0x11a9   :  { %v3472_v27 = vadd.f32 %v3933_v18, %v3465_v24  ;;  %v3473_v23 = vadd.f32 %v4040_v20, %v4987_v17 }
0x11ab   :  { %v4041_v4 = vpop.f32.mrb[44].mxu1  ;;  %v3500_v28 = vpack.c.bf16 %v3473_v23, %v3472_v27 }
0x11ac   :  { %v4042_v26 = vpop.f32.mrb[45].mxu1 }
0x11ad   :  { %v4043_v7 = vadd.f32 %v4042_v26, %v4041_v4  ;;  %v4044_v29 = vpop.f32.mrb[46].mxu1  ;;  %4073 = vmatprep.mubr.bf16.mxu0 %v3500_v28 }
0x11ae   :  { %v4045_v9 = vpop.f32.mrb[47].mxu1 }
0x11af   :  { %v3474_v25 = vadd.f32 %v4043_v7, %v4997_v16 }
0x11b1   :  { %v3501_v22 = vpack.c.bf16 %v3474_v25, %v3474_v25 }
0x11b3   :  { %4074 = vmatmul.mubr.bf16.vlgmr.msra.gmra.mrb[48].mxu0 %v3501_v22 }
0x1286   :  { %v4075_v1 = vpop.f32.mrb[48].mxu0 }
0x1287   :  { %v3536_v30 = vpop.f32.mrb[49].mxu0 }
0x1288   :  { %v3556_v10 = vadd.f32 %v3934_v21, %v3536_v30  ;;  %v4076_v31 = vpop.f32.mrb[50].mxu0 }
0x1289   :  { %v3539_v17 = vpop.f32.mrb[51].mxu0 }
0x128a   :  { %v3557_v33 = vsub.f32 %v4624_v32, %v3556_v10 }
0x128c   :  { %v3559_v34 = vmul.f32 %v3557_v33, %v3539_v17  ;;  %v3566_v35 = vmul.f32 %v4075_v1, %v3557_v33  ;;  %v3558_v37 = vmul.f32 2.0, %v3557_v33 }
0x128e   :  { %v3567_v16 = vsel %vm3560_vm1, %v3566_v35, 0.0  ;;  %v3561_v5 = vsel %vm3560_vm1, %v3559_v34, 0.0 }
0x128f   :  { %3568 = vadd.xlane.f32.xlu1 %v3567_v16  ;;  %3562 = vadd.xlane.f32.xlu0 %v3561_v5 }
0x131c   :  { %v3569_v36 = vpop.xlane.xlu1 %3568  ;;  %v3563_v8 = vpop.xlane.xlu0 %3562 }
0x131d   :  { %v3570_v38 = vmul.f32 2.0, %v3569_v36  ;;  %v3564_v39 = vmul.f32 2.0, %v3563_v8 }
0x131f   :  { %v3571_v40 = vsub.f32 %v3558_v37, %v3570_v38  ;;  %v3565_v41 = vsub.f32 %v3558_v37, %v3564_v39 }
0x1321   :  { %3573 = vst.msk [vmem:[%s5103_s14] sm:$0xff] %vm3572_vm2, %v3565_v41 }
0x1322   :  { %3575 = vst.msk [vmem:[%s5103_s14] sm:$0xff] %vm3574_vm3, %v3571_v40 }
0x1323   :  { %3580 = vsyncpa [#allocation3], 1 }
0x1324   :  { %3581 = vsyncpa [#allocation5], 1 }

</bundles_post_ra>
